<compile_context>
chip_gen: v5e
topology: v5e:2x2
jax: 0.10.0
libtpu: 0.0.40
codegen_flags: <defaults>
</compile_context>

<pallas_src>
import jax
import jax.numpy as jnp
from jax.experimental import pallas as pl
from jax.experimental.pallas import tpu as pltpu

N = 10                       # fixed by out.view(10, -1)
L = 2800                     # input length
L1 = (L - 5) // 3 + 1        # 932 (conv1 output length)
L2 = (L1 - 5) // 3 + 1       # 310 (conv2 output length == Linear in_features)
PHASE = 9                    # composite stride of conv2(conv1(.)) over x
W = L2 + 1                   # 311 working positions per residue
NPLANES = 11                 # distinct input offsets j = 0..10 the kernel needs
PAD_LEN = PHASE * (W - 1) + NPLANES   # 2801 (one zero of padding)
NEG_SLOPE = 0.1


def _leaky(a):
    # max(a, 0.1*a) == LeakyReLU(0.1) since 0 < slope < 1; 2 VALU ops.
    return jnp.maximum(a, NEG_SLOPE * a)


def discriminator_kernel(xq_ref, w1_ref, b1_ref, w2_ref, b2_ref,
                         lw_ref, lb_ref, y_ref):
    # xq_ref : (11, N, 311) VMEM  deinterleaved input, xq[j,n,u] = x[n, 9u+j]
    # w1_ref : (7, 5)       SMEM  conv1 weight (out_ch, tap)
    # b1_ref : (7,)         SMEM  conv1 bias
    # w2_ref : (7, 5)       SMEM  conv2 weight (in_ch, tap)
    # b2_ref : (1,)         SMEM  conv2 bias
    # lw_ref : (1, 310)     VMEM  linear weight
    # lb_ref : (1,)         SMEM  linear bias
    # y_ref  : (N, 1)       VMEM  output

    # conv2 accumulators over 311 positions:
    #   accA collects taps k2 = 0,1,2 (aligned),
    #   accB collects taps k2 = 3,4 (consumed via a single +1 lane shift at the end).
    accA = None
    accB = None

    for c in range(7):
        # Hoist scalar SMEM reads (one per scalar per channel).
        w1c = [w1_ref[c, k] for k in range(5)]
        w2c = [w2_ref[c, k] for k in range(5)]
        b1c = b1_ref[c]

        # conv1 pre-activations at the three residues (mod 3) conv2 touches:
        #   a_r[n, u] = sum_k1 w1[c,k1] * x[n, 9u + 3r + k1]
        # Planes are loaded at point of use (aligned full-plane vld, no shifts).
        a0 = (w1c[0] * xq_ref[0] + w1c[1] * xq_ref[1] + w1c[2] * xq_ref[2]
              + w1c[3] * xq_ref[3] + w1c[4] * xq_ref[4])
        a1 = (w1c[0] * xq_ref[3] + w1c[1] * xq_ref[4] + w1c[2] * xq_ref[5]
              + w1c[3] * xq_ref[6] + w1c[4] * xq_ref[7])
        h0 = _leaky(a0 + b1c)          # h[c, 3u]     for u = 0..310
        h1 = _leaky(a1 + b1c)          # h[c, 3u + 1] for u = 0..310
        cB = w2c[3] * h0 + w2c[4] * h1

        a2 = (w1c[0] * xq_ref[6] + w1c[1] * xq_ref[7] + w1c[2] * xq_ref[8]
              + w1c[3] * xq_ref[9] + w1c[4] * xq_ref[10])
        h2 = _leaky(a2 + b1c)          # h[c, 3u + 2] (lane 310 is garbage,
                                       #               discarded below)
        cA = w2c[0] * h0 + w2c[1] * h1 + w2c[2] * h2

        if c == 0:                      # fold c = 0 into accumulator init
            accA, accB = cA, cB
        else:
            accA = accA + cA
            accB = accB + cB

    # conv2[s] = accA[s] + accB[s+1] + b2   for s = 0..309  (one lane shift)
    out2 = _leaky(accA[:, :L2] + accB[:, 1:L2 + 1] + b2_ref[0])   # (N, 310)

    # Linear(310 -> 1): XLU lane reduction (free slot; kept off the MXU).
    y_ref[...] = jnp.sum(out2 * lw_ref[...], axis=1, keepdims=True) + lb_ref[0]


def _discriminator_forward(x, params):
    w1, b1, w2, b2, lw, lb = params
    # Deinterleave in the wrapper: xq[j, n, u] = x[n, 0, 9u + j], j = 0..10.
    # Built from 11 strided slices so the output's minor dim (311) is lane-dense;
    # fused into the same jit as the pallas_call.
    xpad = jnp.pad(x[:, 0, :], ((0, 0), (0, PAD_LEN - L)))          # (N, 2801)
    planes = [jax.lax.slice(xpad, (0, j), (N, j + PHASE * (W - 1) + 1),
                            (1, PHASE))                             # (N, 311)
              for j in range(NPLANES)]
    xq = jnp.stack(planes, axis=0)                                  # (11, N, 311)

    vmem = pltpu.MemorySpace.VMEM
    smem = pltpu.MemorySpace.SMEM
    return pl.pallas_call(
        discriminator_kernel,
        out_shape=jax.ShapeDtypeStruct((N, 1), jnp.float32),
        in_specs=[
            pl.BlockSpec(memory_space=vmem),   # xq (11, N, 311)
            pl.BlockSpec(memory_space=smem),   # w1 (7, 5)
            pl.BlockSpec(memory_space=smem),   # b1 (7,)
            pl.BlockSpec(memory_space=smem),   # w2 (7, 5)
            pl.BlockSpec(memory_space=smem),   # b2 (1,)
            pl.BlockSpec(memory_space=vmem),   # lw (1, 310)
            pl.BlockSpec(memory_space=smem),   # lb (1,)
        ],
        out_specs=pl.BlockSpec(memory_space=vmem),
        cost_estimate=pl.CostEstimate(flops=900_000, transcendentals=0,
                                      bytes_accessed=150_000),
    )(xq, w1[:, 0, :], b1, w2[0], b2, lw, lb)


discriminator_forward = jax.jit(_discriminator_forward)


def init_params(key):
    # Deterministic synthetic weights with PyTorch-style uniform init ranges.
    ks = jax.random.split(key, 6)

    def u(k, shape, fan_in):
        bound = float(fan_in) ** -0.5
        return jax.random.uniform(k, shape, jnp.float32, -bound, bound)

    w1 = u(ks[0], (7, 1, 5), 1 * 5)      # Conv1d(1, 7, 5)
    b1 = u(ks[1], (7,), 1 * 5)
    w2 = u(ks[2], (1, 7, 5), 7 * 5)      # Conv1d(7, 1, 5)
    b2 = u(ks[3], (1,), 7 * 5)
    lw = u(ks[4], (1, L2), L2)           # Linear(310, 1)
    lb = u(ks[5], (1,), L2)
    return w1, b1, w2, b2, lw, lb


def reference_forward(x, params):
    # Pure-JAX reference (mirrors the PyTorch forward) for correctness check.
    w1, b1, w2, b2, lw, lb = params
    h = jax.lax.conv_general_dilated(x, w1, (3,), 'VALID',
                                     dimension_numbers=('NCH', 'OIH', 'NCH'))
    h = _leaky(h + b1[None, :, None])
    h = jax.lax.conv_general_dilated(h, w2, (3,), 'VALID',
                                     dimension_numbers=('NCH', 'OIH', 'NCH'))
    h = _leaky(h + b2[None, :, None])
    out = h.reshape(10, -1)
    return out @ lw.T + lb[None, :]


if __name__ == "__main__":
    key = jax.random.PRNGKey(0)
    kx, kp = jax.random.split(key)
    x = jax.random.normal(kx, (N, 1, L), jnp.float32)   # NCL, like PyTorch
    params = init_params(kp)

    y = discriminator_forward(x, params)
    y = jax.block_until_ready(y)

    y_ref = reference_forward(x, params)
    assert y.shape == (N, 1)
    if not jnp.allclose(y, y_ref, atol=1e-3, rtol=1e-3):
        raise AssertionError(
            f"mismatch vs reference, max abs err = {jnp.max(jnp.abs(y - y_ref))}")
    print("KERNEL_OK")
</pallas_src>

<mosaic_0001>
module attributes {stable_mosaic.version = 11 : i64} {
  func.func @discriminator_kernel(%arg0: memref<11x10x311xf32, #tpu.memory_space<vmem>>, %arg1: memref<7x5xf32, #tpu.memory_space<smem>>, %arg2: memref<7xf32, #tpu.memory_space<smem>>, %arg3: memref<7x5xf32, #tpu.memory_space<smem>>, %arg4: memref<1xf32, #tpu.memory_space<smem>>, %arg5: memref<1x310xf32, #tpu.memory_space<vmem>>, %arg6: memref<1xf32, #tpu.memory_space<smem>>, %arg7: memref<10x1xf32, #tpu.memory_space<vmem>>) attributes {dimension_semantics = [], scalar_prefetch = 0 : i64, scratch_operands = 0 : i64, tpu.core_type = #tpu.core_type<tc>} {
    %c0 = arith.constant 0 : index
    %c0_0 = arith.constant 0 : index
    %0 = memref.load %arg1[%c0, %c0_0] : memref<7x5xf32, #tpu.memory_space<smem>>
    %c0_1 = arith.constant 0 : index
    %c1 = arith.constant 1 : index
    %1 = memref.load %arg1[%c0_1, %c1] : memref<7x5xf32, #tpu.memory_space<smem>>
    %c0_2 = arith.constant 0 : index
    %c2 = arith.constant 2 : index
    %2 = memref.load %arg1[%c0_2, %c2] : memref<7x5xf32, #tpu.memory_space<smem>>
    %c0_3 = arith.constant 0 : index
    %c3 = arith.constant 3 : index
    %3 = memref.load %arg1[%c0_3, %c3] : memref<7x5xf32, #tpu.memory_space<smem>>
    %c0_4 = arith.constant 0 : index
    %c4 = arith.constant 4 : index
    %4 = memref.load %arg1[%c0_4, %c4] : memref<7x5xf32, #tpu.memory_space<smem>>
    %c0_5 = arith.constant 0 : index
    %c0_6 = arith.constant 0 : index
    %5 = memref.load %arg3[%c0_5, %c0_6] : memref<7x5xf32, #tpu.memory_space<smem>>
    %c0_7 = arith.constant 0 : index
    %c1_8 = arith.constant 1 : index
    %6 = memref.load %arg3[%c0_7, %c1_8] : memref<7x5xf32, #tpu.memory_space<smem>>
    %c0_9 = arith.constant 0 : index
    %c2_10 = arith.constant 2 : index
    %7 = memref.load %arg3[%c0_9, %c2_10] : memref<7x5xf32, #tpu.memory_space<smem>>
    %c0_11 = arith.constant 0 : index
    %c3_12 = arith.constant 3 : index
    %8 = memref.load %arg3[%c0_11, %c3_12] : memref<7x5xf32, #tpu.memory_space<smem>>
    %c0_13 = arith.constant 0 : index
    %c4_14 = arith.constant 4 : index
    %9 = memref.load %arg3[%c0_13, %c4_14] : memref<7x5xf32, #tpu.memory_space<smem>>
    %c0_15 = arith.constant 0 : index
    %10 = memref.load %arg2[%c0_15] : memref<7xf32, #tpu.memory_space<smem>>
    %c0_16 = arith.constant 0 : index
    %c0_17 = arith.constant 0 : index
    %c0_18 = arith.constant 0 : index
    %11 = vector.load %arg0[%c0_16, %c0_17, %c0_18] : memref<11x10x311xf32, #tpu.memory_space<vmem>>, vector<1x10x311xf32>
    %12 = vector.shape_cast %11 : vector<1x10x311xf32> to vector<10x311xf32>
    %13 = vector.broadcast %0 : f32 to vector<10x311xf32>
    %14 = arith.mulf %13, %12 : vector<10x311xf32>
    %c1_19 = arith.constant 1 : index
    %c0_20 = arith.constant 0 : index
    %c0_21 = arith.constant 0 : index
    %15 = vector.load %arg0[%c1_19, %c0_20, %c0_21] : memref<11x10x311xf32, #tpu.memory_space<vmem>>, vector<1x10x311xf32>
    %16 = vector.shape_cast %15 : vector<1x10x311xf32> to vector<10x311xf32>
    %17 = vector.broadcast %1 : f32 to vector<10x311xf32>
    %18 = arith.mulf %17, %16 : vector<10x311xf32>
    %19 = arith.addf %14, %18 : vector<10x311xf32>
    %c2_22 = arith.constant 2 : index
    %c0_23 = arith.constant 0 : index
    %c0_24 = arith.constant 0 : index
    %20 = vector.load %arg0[%c2_22, %c0_23, %c0_24] : memref<11x10x311xf32, #tpu.memory_space<vmem>>, vector<1x10x311xf32>
    %21 = vector.shape_cast %20 : vector<1x10x311xf32> to vector<10x311xf32>
    %22 = vector.broadcast %2 : f32 to vector<10x311xf32>
    %23 = arith.mulf %22, %21 : vector<10x311xf32>
    %24 = arith.addf %19, %23 : vector<10x311xf32>
    %c3_25 = arith.constant 3 : index
    %c0_26 = arith.constant 0 : index
    %c0_27 = arith.constant 0 : index
    %25 = vector.load %arg0[%c3_25, %c0_26, %c0_27] : memref<11x10x311xf32, #tpu.memory_space<vmem>>, vector<1x10x311xf32>
    %26 = vector.shape_cast %25 : vector<1x10x311xf32> to vector<10x311xf32>
    %27 = vector.broadcast %3 : f32 to vector<10x311xf32>
    %28 = arith.mulf %27, %26 : vector<10x311xf32>
    %29 = arith.addf %24, %28 : vector<10x311xf32>
    %c4_28 = arith.constant 4 : index
    %c0_29 = arith.constant 0 : index
    %c0_30 = arith.constant 0 : index
    %30 = vector.load %arg0[%c4_28, %c0_29, %c0_30] : memref<11x10x311xf32, #tpu.memory_space<vmem>>, vector<1x10x311xf32>
    %31 = vector.shape_cast %30 : vector<1x10x311xf32> to vector<10x311xf32>
    %32 = vector.broadcast %4 : f32 to vector<10x311xf32>
    %33 = arith.mulf %32, %31 : vector<10x311xf32>
    %34 = arith.addf %29, %33 : vector<10x311xf32>
    %c3_31 = arith.constant 3 : index
    %c0_32 = arith.constant 0 : index
    %c0_33 = arith.constant 0 : index
    %35 = vector.load %arg0[%c3_31, %c0_32, %c0_33] : memref<11x10x311xf32, #tpu.memory_space<vmem>>, vector<1x10x311xf32>
    %36 = vector.shape_cast %35 : vector<1x10x311xf32> to vector<10x311xf32>
    %37 = vector.broadcast %0 : f32 to vector<10x311xf32>
    %38 = arith.mulf %37, %36 : vector<10x311xf32>
    %c4_34 = arith.constant 4 : index
    %c0_35 = arith.constant 0 : index
    %c0_36 = arith.constant 0 : index
    %39 = vector.load %arg0[%c4_34, %c0_35, %c0_36] : memref<11x10x311xf32, #tpu.memory_space<vmem>>, vector<1x10x311xf32>
    %40 = vector.shape_cast %39 : vector<1x10x311xf32> to vector<10x311xf32>
    %41 = vector.broadcast %1 : f32 to vector<10x311xf32>
    %42 = arith.mulf %41, %40 : vector<10x311xf32>
    %43 = arith.addf %38, %42 : vector<10x311xf32>
    %c5 = arith.constant 5 : index
    %c0_37 = arith.constant 0 : index
    %c0_38 = arith.constant 0 : index
    %44 = vector.load %arg0[%c5, %c0_37, %c0_38] : memref<11x10x311xf32, #tpu.memory_space<vmem>>, vector<1x10x311xf32>
    %45 = vector.shape_cast %44 : vector<1x10x311xf32> to vector<10x311xf32>
    %46 = vector.broadcast %2 : f32 to vector<10x311xf32>
    %47 = arith.mulf %46, %45 : vector<10x311xf32>
    %48 = arith.addf %43, %47 : vector<10x311xf32>
    %c6 = arith.constant 6 : index
    %c0_39 = arith.constant 0 : index
    %c0_40 = arith.constant 0 : index
    %49 = vector.load %arg0[%c6, %c0_39, %c0_40] : memref<11x10x311xf32, #tpu.memory_space<vmem>>, vector<1x10x311xf32>
    %50 = vector.shape_cast %49 : vector<1x10x311xf32> to vector<10x311xf32>
    %51 = vector.broadcast %3 : f32 to vector<10x311xf32>
    %52 = arith.mulf %51, %50 : vector<10x311xf32>
    %53 = arith.addf %48, %52 : vector<10x311xf32>
    %c7 = arith.constant 7 : index
    %c0_41 = arith.constant 0 : index
    %c0_42 = arith.constant 0 : index
    %54 = vector.load %arg0[%c7, %c0_41, %c0_42] : memref<11x10x311xf32, #tpu.memory_space<vmem>>, vector<1x10x311xf32>
    %55 = vector.shape_cast %54 : vector<1x10x311xf32> to vector<10x311xf32>
    %56 = vector.broadcast %4 : f32 to vector<10x311xf32>
    %57 = arith.mulf %56, %55 : vector<10x311xf32>
    %58 = arith.addf %53, %57 : vector<10x311xf32>
    %59 = vector.broadcast %10 : f32 to vector<10x311xf32>
    %60 = arith.addf %34, %59 : vector<10x311xf32>
    %cst = arith.constant 1.000000e-01 : f32
    %61 = vector.broadcast %cst : f32 to vector<10x311xf32>
    %62 = arith.mulf %61, %60 : vector<10x311xf32>
    %63 = arith.maximumf %60, %62 : vector<10x311xf32>
    %64 = vector.broadcast %10 : f32 to vector<10x311xf32>
    %65 = arith.addf %58, %64 : vector<10x311xf32>
    %cst_43 = arith.constant 1.000000e-01 : f32
    %66 = vector.broadcast %cst_43 : f32 to vector<10x311xf32>
    %67 = arith.mulf %66, %65 : vector<10x311xf32>
    %68 = arith.maximumf %65, %67 : vector<10x311xf32>
    %69 = vector.broadcast %8 : f32 to vector<10x311xf32>
    %70 = arith.mulf %69, %63 : vector<10x311xf32>
    %71 = vector.broadcast %9 : f32 to vector<10x311xf32>
    %72 = arith.mulf %71, %68 : vector<10x311xf32>
    %73 = arith.addf %70, %72 : vector<10x311xf32>
    %c6_44 = arith.constant 6 : index
    %c0_45 = arith.constant 0 : index
    %c0_46 = arith.constant 0 : index
    %74 = vector.load %arg0[%c6_44, %c0_45, %c0_46] : memref<11x10x311xf32, #tpu.memory_space<vmem>>, vector<1x10x311xf32>
    %75 = vector.shape_cast %74 : vector<1x10x311xf32> to vector<10x311xf32>
    %76 = vector.broadcast %0 : f32 to vector<10x311xf32>
    %77 = arith.mulf %76, %75 : vector<10x311xf32>
    %c7_47 = arith.constant 7 : index
    %c0_48 = arith.constant 0 : index
    %c0_49 = arith.constant 0 : index
    %78 = vector.load %arg0[%c7_47, %c0_48, %c0_49] : memref<11x10x311xf32, #tpu.memory_space<vmem>>, vector<1x10x311xf32>
    %79 = vector.shape_cast %78 : vector<1x10x311xf32> to vector<10x311xf32>
    %80 = vector.broadcast %1 : f32 to vector<10x311xf32>
    %81 = arith.mulf %80, %79 : vector<10x311xf32>
    %82 = arith.addf %77, %81 : vector<10x311xf32>
    %c8 = arith.constant 8 : index
    %c0_50 = arith.constant 0 : index
    %c0_51 = arith.constant 0 : index
    %83 = vector.load %arg0[%c8, %c0_50, %c0_51] : memref<11x10x311xf32, #tpu.memory_space<vmem>>, vector<1x10x311xf32>
    %84 = vector.shape_cast %83 : vector<1x10x311xf32> to vector<10x311xf32>
    %85 = vector.broadcast %2 : f32 to vector<10x311xf32>
    %86 = arith.mulf %85, %84 : vector<10x311xf32>
    %87 = arith.addf %82, %86 : vector<10x311xf32>
    %c9 = arith.constant 9 : index
    %c0_52 = arith.constant 0 : index
    %c0_53 = arith.constant 0 : index
    %88 = vector.load %arg0[%c9, %c0_52, %c0_53] : memref<11x10x311xf32, #tpu.memory_space<vmem>>, vector<1x10x311xf32>
    %89 = vector.shape_cast %88 : vector<1x10x311xf32> to vector<10x311xf32>
    %90 = vector.broadcast %3 : f32 to vector<10x311xf32>
    %91 = arith.mulf %90, %89 : vector<10x311xf32>
    %92 = arith.addf %87, %91 : vector<10x311xf32>
    %c10 = arith.constant 10 : index
    %c0_54 = arith.constant 0 : index
    %c0_55 = arith.constant 0 : index
    %93 = vector.load %arg0[%c10, %c0_54, %c0_55] : memref<11x10x311xf32, #tpu.memory_space<vmem>>, vector<1x10x311xf32>
    %94 = vector.shape_cast %93 : vector<1x10x311xf32> to vector<10x311xf32>
    %95 = vector.broadcast %4 : f32 to vector<10x311xf32>
    %96 = arith.mulf %95, %94 : vector<10x311xf32>
    %97 = arith.addf %92, %96 : vector<10x311xf32>
    %98 = vector.broadcast %10 : f32 to vector<10x311xf32>
    %99 = arith.addf %97, %98 : vector<10x311xf32>
    %cst_56 = arith.constant 1.000000e-01 : f32
    %100 = vector.broadcast %cst_56 : f32 to vector<10x311xf32>
    %101 = arith.mulf %100, %99 : vector<10x311xf32>
    %102 = arith.maximumf %99, %101 : vector<10x311xf32>
    %103 = vector.broadcast %5 : f32 to vector<10x311xf32>
    %104 = arith.mulf %103, %63 : vector<10x311xf32>
    %105 = vector.broadcast %6 : f32 to vector<10x311xf32>
    %106 = arith.mulf %105, %68 : vector<10x311xf32>
    %107 = arith.addf %104, %106 : vector<10x311xf32>
    %108 = vector.broadcast %7 : f32 to vector<10x311xf32>
    %109 = arith.mulf %108, %102 : vector<10x311xf32>
    %110 = arith.addf %107, %109 : vector<10x311xf32>
    %c1_57 = arith.constant 1 : index
    %c0_58 = arith.constant 0 : index
    %111 = memref.load %arg1[%c1_57, %c0_58] : memref<7x5xf32, #tpu.memory_space<smem>>
    %c1_59 = arith.constant 1 : index
    %c1_60 = arith.constant 1 : index
    %112 = memref.load %arg1[%c1_59, %c1_60] : memref<7x5xf32, #tpu.memory_space<smem>>
    %c1_61 = arith.constant 1 : index
    %c2_62 = arith.constant 2 : index
    %113 = memref.load %arg1[%c1_61, %c2_62] : memref<7x5xf32, #tpu.memory_space<smem>>
    %c1_63 = arith.constant 1 : index
    %c3_64 = arith.constant 3 : index
    %114 = memref.load %arg1[%c1_63, %c3_64] : memref<7x5xf32, #tpu.memory_space<smem>>
    %c1_65 = arith.constant 1 : index
    %c4_66 = arith.constant 4 : index
    %115 = memref.load %arg1[%c1_65, %c4_66] : memref<7x5xf32, #tpu.memory_space<smem>>
    %c1_67 = arith.constant 1 : index
    %c0_68 = arith.constant 0 : index
    %116 = memref.load %arg3[%c1_67, %c0_68] : memref<7x5xf32, #tpu.memory_space<smem>>
    %c1_69 = arith.constant 1 : index
    %c1_70 = arith.constant 1 : index
    %117 = memref.load %arg3[%c1_69, %c1_70] : memref<7x5xf32, #tpu.memory_space<smem>>
    %c1_71 = arith.constant 1 : index
    %c2_72 = arith.constant 2 : index
    %118 = memref.load %arg3[%c1_71, %c2_72] : memref<7x5xf32, #tpu.memory_space<smem>>
    %c1_73 = arith.constant 1 : index
    %c3_74 = arith.constant 3 : index
    %119 = memref.load %arg3[%c1_73, %c3_74] : memref<7x5xf32, #tpu.memory_space<smem>>
    %c1_75 = arith.constant 1 : index
    %c4_76 = arith.constant 4 : index
    %120 = memref.load %arg3[%c1_75, %c4_76] : memref<7x5xf32, #tpu.memory_space<smem>>
    %c1_77 = arith.constant 1 : index
    %121 = memref.load %arg2[%c1_77] : memref<7xf32, #tpu.memory_space<smem>>
    %c0_78 = arith.constant 0 : index
    %c0_79 = arith.constant 0 : index
    %c0_80 = arith.constant 0 : index
    %122 = vector.load %arg0[%c0_78, %c0_79, %c0_80] : memref<11x10x311xf32, #tpu.memory_space<vmem>>, vector<1x10x311xf32>
    %123 = vector.shape_cast %122 : vector<1x10x311xf32> to vector<10x311xf32>
    %124 = vector.broadcast %111 : f32 to vector<10x311xf32>
    %125 = arith.mulf %124, %123 : vector<10x311xf32>
    %c1_81 = arith.constant 1 : index
    %c0_82 = arith.constant 0 : index
    %c0_83 = arith.constant 0 : index
    %126 = vector.load %arg0[%c1_81, %c0_82, %c0_83] : memref<11x10x311xf32, #tpu.memory_space<vmem>>, vector<1x10x311xf32>
    %127 = vector.shape_cast %126 : vector<1x10x311xf32> to vector<10x311xf32>
    %128 = vector.broadcast %112 : f32 to vector<10x311xf32>
    %129 = arith.mulf %128, %127 : vector<10x311xf32>
    %130 = arith.addf %125, %129 : vector<10x311xf32>
    %c2_84 = arith.constant 2 : index
    %c0_85 = arith.constant 0 : index
    %c0_86 = arith.constant 0 : index
    %131 = vector.load %arg0[%c2_84, %c0_85, %c0_86] : memref<11x10x311xf32, #tpu.memory_space<vmem>>, vector<1x10x311xf32>
    %132 = vector.shape_cast %131 : vector<1x10x311xf32> to vector<10x311xf32>
    %133 = vector.broadcast %113 : f32 to vector<10x311xf32>
    %134 = arith.mulf %133, %132 : vector<10x311xf32>
    %135 = arith.addf %130, %134 : vector<10x311xf32>
    %c3_87 = arith.constant 3 : index
    %c0_88 = arith.constant 0 : index
    %c0_89 = arith.constant 0 : index
    %136 = vector.load %arg0[%c3_87, %c0_88, %c0_89] : memref<11x10x311xf32, #tpu.memory_space<vmem>>, vector<1x10x311xf32>
    %137 = vector.shape_cast %136 : vector<1x10x311xf32> to vector<10x311xf32>
    %138 = vector.broadcast %114 : f32 to vector<10x311xf32>
    %139 = arith.mulf %138, %137 : vector<10x311xf32>
    %140 = arith.addf %135, %139 : vector<10x311xf32>
    %c4_90 = arith.constant 4 : index
    %c0_91 = arith.constant 0 : index
    %c0_92 = arith.constant 0 : index
    %141 = vector.load %arg0[%c4_90, %c0_91, %c0_92] : memref<11x10x311xf32, #tpu.memory_space<vmem>>, vector<1x10x311xf32>
    %142 = vector.shape_cast %141 : vector<1x10x311xf32> to vector<10x311xf32>
    %143 = vector.broadcast %115 : f32 to vector<10x311xf32>
    %144 = arith.mulf %143, %142 : vector<10x311xf32>
    %145 = arith.addf %140, %144 : vector<10x311xf32>
    %c3_93 = arith.constant 3 : index
    %c0_94 = arith.constant 0 : index
    %c0_95 = arith.constant 0 : index
    %146 = vector.load %arg0[%c3_93, %c0_94, %c0_95] : memref<11x10x311xf32, #tpu.memory_space<vmem>>, vector<1x10x311xf32>
    %147 = vector.shape_cast %146 : vector<1x10x311xf32> to vector<10x311xf32>
    %148 = vector.broadcast %111 : f32 to vector<10x311xf32>
    %149 = arith.mulf %148, %147 : vector<10x311xf32>
    %c4_96 = arith.constant 4 : index
    %c0_97 = arith.constant 0 : index
    %c0_98 = arith.constant 0 : index
    %150 = vector.load %arg0[%c4_96, %c0_97, %c0_98] : memref<11x10x311xf32, #tpu.memory_space<vmem>>, vector<1x10x311xf32>
    %151 = vector.shape_cast %150 : vector<1x10x311xf32> to vector<10x311xf32>
    %152 = vector.broadcast %112 : f32 to vector<10x311xf32>
    %153 = arith.mulf %152, %151 : vector<10x311xf32>
    %154 = arith.addf %149, %153 : vector<10x311xf32>
    %c5_99 = arith.constant 5 : index
    %c0_100 = arith.constant 0 : index
    %c0_101 = arith.constant 0 : index
    %155 = vector.load %arg0[%c5_99, %c0_100, %c0_101] : memref<11x10x311xf32, #tpu.memory_space<vmem>>, vector<1x10x311xf32>
    %156 = vector.shape_cast %155 : vector<1x10x311xf32> to vector<10x311xf32>
    %157 = vector.broadcast %113 : f32 to vector<10x311xf32>
    %158 = arith.mulf %157, %156 : vector<10x311xf32>
    %159 = arith.addf %154, %158 : vector<10x311xf32>
    %c6_102 = arith.constant 6 : index
    %c0_103 = arith.constant 0 : index
    %c0_104 = arith.constant 0 : index
    %160 = vector.load %arg0[%c6_102, %c0_103, %c0_104] : memref<11x10x311xf32, #tpu.memory_space<vmem>>, vector<1x10x311xf32>
    %161 = vector.shape_cast %160 : vector<1x10x311xf32> to vector<10x311xf32>
    %162 = vector.broadcast %114 : f32 to vector<10x311xf32>
    %163 = arith.mulf %162, %161 : vector<10x311xf32>
    %164 = arith.addf %159, %163 : vector<10x311xf32>
    %c7_105 = arith.constant 7 : index
    %c0_106 = arith.constant 0 : index
    %c0_107 = arith.constant 0 : index
    %165 = vector.load %arg0[%c7_105, %c0_106, %c0_107] : memref<11x10x311xf32, #tpu.memory_space<vmem>>, vector<1x10x311xf32>
    %166 = vector.shape_cast %165 : vector<1x10x311xf32> to vector<10x311xf32>
    %167 = vector.broadcast %115 : f32 to vector<10x311xf32>
    %168 = arith.mulf %167, %166 : vector<10x311xf32>
    %169 = arith.addf %164, %168 : vector<10x311xf32>
    %170 = vector.broadcast %121 : f32 to vector<10x311xf32>
    %171 = arith.addf %145, %170 : vector<10x311xf32>
    %cst_108 = arith.constant 1.000000e-01 : f32
    %172 = vector.broadcast %cst_108 : f32 to vector<10x311xf32>
    %173 = arith.mulf %172, %171 : vector<10x311xf32>
    %174 = arith.maximumf %171, %173 : vector<10x311xf32>
    %175 = vector.broadcast %121 : f32 to vector<10x311xf32>
    %176 = arith.addf %169, %175 : vector<10x311xf32>
    %cst_109 = arith.constant 1.000000e-01 : f32
    %177 = vector.broadcast %cst_109 : f32 to vector<10x311xf32>
    %178 = arith.mulf %177, %176 : vector<10x311xf32>
    %179 = arith.maximumf %176, %178 : vector<10x311xf32>
    %180 = vector.broadcast %119 : f32 to vector<10x311xf32>
    %181 = arith.mulf %180, %174 : vector<10x311xf32>
    %182 = vector.broadcast %120 : f32 to vector<10x311xf32>
    %183 = arith.mulf %182, %179 : vector<10x311xf32>
    %184 = arith.addf %181, %183 : vector<10x311xf32>
    %c6_110 = arith.constant 6 : index
    %c0_111 = arith.constant 0 : index
    %c0_112 = arith.constant 0 : index
    %185 = vector.load %arg0[%c6_110, %c0_111, %c0_112] : memref<11x10x311xf32, #tpu.memory_space<vmem>>, vector<1x10x311xf32>
    %186 = vector.shape_cast %185 : vector<1x10x311xf32> to vector<10x311xf32>
    %187 = vector.broadcast %111 : f32 to vector<10x311xf32>
    %188 = arith.mulf %187, %186 : vector<10x311xf32>
    %c7_113 = arith.constant 7 : index
    %c0_114 = arith.constant 0 : index
    %c0_115 = arith.constant 0 : index
    %189 = vector.load %arg0[%c7_113, %c0_114, %c0_115] : memref<11x10x311xf32, #tpu.memory_space<vmem>>, vector<1x10x311xf32>
    %190 = vector.shape_cast %189 : vector<1x10x311xf32> to vector<10x311xf32>
    %191 = vector.broadcast %112 : f32 to vector<10x311xf32>
    %192 = arith.mulf %191, %190 : vector<10x311xf32>
    %193 = arith.addf %188, %192 : vector<10x311xf32>
    %c8_116 = arith.constant 8 : index
    %c0_117 = arith.constant 0 : index
    %c0_118 = arith.constant 0 : index
    %194 = vector.load %arg0[%c8_116, %c0_117, %c0_118] : memref<11x10x311xf32, #tpu.memory_space<vmem>>, vector<1x10x311xf32>
    %195 = vector.shape_cast %194 : vector<1x10x311xf32> to vector<10x311xf32>
    %196 = vector.broadcast %113 : f32 to vector<10x311xf32>
    %197 = arith.mulf %196, %195 : vector<10x311xf32>
    %198 = arith.addf %193, %197 : vector<10x311xf32>
    %c9_119 = arith.constant 9 : index
    %c0_120 = arith.constant 0 : index
    %c0_121 = arith.constant 0 : index
    %199 = vector.load %arg0[%c9_119, %c0_120, %c0_121] : memref<11x10x311xf32, #tpu.memory_space<vmem>>, vector<1x10x311xf32>
    %200 = vector.shape_cast %199 : vector<1x10x311xf32> to vector<10x311xf32>
    %201 = vector.broadcast %114 : f32 to vector<10x311xf32>
    %202 = arith.mulf %201, %200 : vector<10x311xf32>
    %203 = arith.addf %198, %202 : vector<10x311xf32>
    %c10_122 = arith.constant 10 : index
    %c0_123 = arith.constant 0 : index
    %c0_124 = arith.constant 0 : index
    %204 = vector.load %arg0[%c10_122, %c0_123, %c0_124] : memref<11x10x311xf32, #tpu.memory_space<vmem>>, vector<1x10x311xf32>
    %205 = vector.shape_cast %204 : vector<1x10x311xf32> to vector<10x311xf32>
    %206 = vector.broadcast %115 : f32 to vector<10x311xf32>
    %207 = arith.mulf %206, %205 : vector<10x311xf32>
    %208 = arith.addf %203, %207 : vector<10x311xf32>
    %209 = vector.broadcast %121 : f32 to vector<10x311xf32>
    %210 = arith.addf %208, %209 : vector<10x311xf32>
    %cst_125 = arith.constant 1.000000e-01 : f32
    %211 = vector.broadcast %cst_125 : f32 to vector<10x311xf32>
    %212 = arith.mulf %211, %210 : vector<10x311xf32>
    %213 = arith.maximumf %210, %212 : vector<10x311xf32>
    %214 = vector.broadcast %116 : f32 to vector<10x311xf32>
    %215 = arith.mulf %214, %174 : vector<10x311xf32>
    %216 = vector.broadcast %117 : f32 to vector<10x311xf32>
    %217 = arith.mulf %216, %179 : vector<10x311xf32>
    %218 = arith.addf %215, %217 : vector<10x311xf32>
    %219 = vector.broadcast %118 : f32 to vector<10x311xf32>
    %220 = arith.mulf %219, %213 : vector<10x311xf32>
    %221 = arith.addf %218, %220 : vector<10x311xf32>
    %222 = arith.addf %110, %221 : vector<10x311xf32>
    %223 = arith.addf %73, %184 : vector<10x311xf32>
    %c2_126 = arith.constant 2 : index
    %c0_127 = arith.constant 0 : index
    %224 = memref.load %arg1[%c2_126, %c0_127] : memref<7x5xf32, #tpu.memory_space<smem>>
    %c2_128 = arith.constant 2 : index
    %c1_129 = arith.constant 1 : index
    %225 = memref.load %arg1[%c2_128, %c1_129] : memref<7x5xf32, #tpu.memory_space<smem>>
    %c2_130 = arith.constant 2 : index
    %c2_131 = arith.constant 2 : index
    %226 = memref.load %arg1[%c2_130, %c2_131] : memref<7x5xf32, #tpu.memory_space<smem>>
    %c2_132 = arith.constant 2 : index
    %c3_133 = arith.constant 3 : index
    %227 = memref.load %arg1[%c2_132, %c3_133] : memref<7x5xf32, #tpu.memory_space<smem>>
    %c2_134 = arith.constant 2 : index
    %c4_135 = arith.constant 4 : index
    %228 = memref.load %arg1[%c2_134, %c4_135] : memref<7x5xf32, #tpu.memory_space<smem>>
    %c2_136 = arith.constant 2 : index
    %c0_137 = arith.constant 0 : index
    %229 = memref.load %arg3[%c2_136, %c0_137] : memref<7x5xf32, #tpu.memory_space<smem>>
    %c2_138 = arith.constant 2 : index
    %c1_139 = arith.constant 1 : index
    %230 = memref.load %arg3[%c2_138, %c1_139] : memref<7x5xf32, #tpu.memory_space<smem>>
    %c2_140 = arith.constant 2 : index
    %c2_141 = arith.constant 2 : index
    %231 = memref.load %arg3[%c2_140, %c2_141] : memref<7x5xf32, #tpu.memory_space<smem>>
    %c2_142 = arith.constant 2 : index
    %c3_143 = arith.constant 3 : index
    %232 = memref.load %arg3[%c2_142, %c3_143] : memref<7x5xf32, #tpu.memory_space<smem>>
    %c2_144 = arith.constant 2 : index
    %c4_145 = arith.constant 4 : index
    %233 = memref.load %arg3[%c2_144, %c4_145] : memref<7x5xf32, #tpu.memory_space<smem>>
    %c2_146 = arith.constant 2 : index
    %234 = memref.load %arg2[%c2_146] : memref<7xf32, #tpu.memory_space<smem>>
    %c0_147 = arith.constant 0 : index
    %c0_148 = arith.constant 0 : index
    %c0_149 = arith.constant 0 : index
    %235 = vector.load %arg0[%c0_147, %c0_148, %c0_149] : memref<11x10x311xf32, #tpu.memory_space<vmem>>, vector<1x10x311xf32>
    %236 = vector.shape_cast %235 : vector<1x10x311xf32> to vector<10x311xf32>
    %237 = vector.broadcast %224 : f32 to vector<10x311xf32>
    %238 = arith.mulf %237, %236 : vector<10x311xf32>
    %c1_150 = arith.constant 1 : index
    %c0_151 = arith.constant 0 : index
    %c0_152 = arith.constant 0 : index
    %239 = vector.load %arg0[%c1_150, %c0_151, %c0_152] : memref<11x10x311xf32, #tpu.memory_space<vmem>>, vector<1x10x311xf32>
    %240 = vector.shape_cast %239 : vector<1x10x311xf32> to vector<10x311xf32>
    %241 = vector.broadcast %225 : f32 to vector<10x311xf32>
    %242 = arith.mulf %241, %240 : vector<10x311xf32>
    %243 = arith.addf %238, %242 : vector<10x311xf32>
    %c2_153 = arith.constant 2 : index
    %c0_154 = arith.constant 0 : index
    %c0_155 = arith.constant 0 : index
    %244 = vector.load %arg0[%c2_153, %c0_154, %c0_155] : memref<11x10x311xf32, #tpu.memory_space<vmem>>, vector<1x10x311xf32>
    %245 = vector.shape_cast %244 : vector<1x10x311xf32> to vector<10x311xf32>
    %246 = vector.broadcast %226 : f32 to vector<10x311xf32>
    %247 = arith.mulf %246, %245 : vector<10x311xf32>
    %248 = arith.addf %243, %247 : vector<10x311xf32>
    %c3_156 = arith.constant 3 : index
    %c0_157 = arith.constant 0 : index
    %c0_158 = arith.constant 0 : index
    %249 = vector.load %arg0[%c3_156, %c0_157, %c0_158] : memref<11x10x311xf32, #tpu.memory_space<vmem>>, vector<1x10x311xf32>
    %250 = vector.shape_cast %249 : vector<1x10x311xf32> to vector<10x311xf32>
    %251 = vector.broadcast %227 : f32 to vector<10x311xf32>
    %252 = arith.mulf %251, %250 : vector<10x311xf32>
    %253 = arith.addf %248, %252 : vector<10x311xf32>
    %c4_159 = arith.constant 4 : index
    %c0_160 = arith.constant 0 : index
    %c0_161 = arith.constant 0 : index
    %254 = vector.load %arg0[%c4_159, %c0_160, %c0_161] : memref<11x10x311xf32, #tpu.memory_space<vmem>>, vector<1x10x311xf32>
    %255 = vector.shape_cast %254 : vector<1x10x311xf32> to vector<10x311xf32>
    %256 = vector.broadcast %228 : f32 to vector<10x311xf32>
    %257 = arith.mulf %256, %255 : vector<10x311xf32>
    %258 = arith.addf %253, %257 : vector<10x311xf32>
    %c3_162 = arith.constant 3 : index
    %c0_163 = arith.constant 0 : index
    %c0_164 = arith.constant 0 : index
    %259 = vector.load %arg0[%c3_162, %c0_163, %c0_164] : memref<11x10x311xf32, #tpu.memory_space<vmem>>, vector<1x10x311xf32>
    %260 = vector.shape_cast %259 : vector<1x10x311xf32> to vector<10x311xf32>
    %261 = vector.broadcast %224 : f32 to vector<10x311xf32>
    %262 = arith.mulf %261, %260 : vector<10x311xf32>
    %c4_165 = arith.constant 4 : index
    %c0_166 = arith.constant 0 : index
    %c0_167 = arith.constant 0 : index
    %263 = vector.load %arg0[%c4_165, %c0_166, %c0_167] : memref<11x10x311xf32, #tpu.memory_space<vmem>>, vector<1x10x311xf32>
    %264 = vector.shape_cast %263 : vector<1x10x311xf32> to vector<10x311xf32>
    %265 = vector.broadcast %225 : f32 to vector<10x311xf32>
    %266 = arith.mulf %265, %264 : vector<10x311xf32>
    %267 = arith.addf %262, %266 : vector<10x311xf32>
    %c5_168 = arith.constant 5 : index
    %c0_169 = arith.constant 0 : index
    %c0_170 = arith.constant 0 : index
    %268 = vector.load %arg0[%c5_168, %c0_169, %c0_170] : memref<11x10x311xf32, #tpu.memory_space<vmem>>, vector<1x10x311xf32>
    %269 = vector.shape_cast %268 : vector<1x10x311xf32> to vector<10x311xf32>
    %270 = vector.broadcast %226 : f32 to vector<10x311xf32>
    %271 = arith.mulf %270, %269 : vector<10x311xf32>
    %272 = arith.addf %267, %271 : vector<10x311xf32>
    %c6_171 = arith.constant 6 : index
    %c0_172 = arith.constant 0 : index
    %c0_173 = arith.constant 0 : index
    %273 = vector.load %arg0[%c6_171, %c0_172, %c0_173] : memref<11x10x311xf32, #tpu.memory_space<vmem>>, vector<1x10x311xf32>
    %274 = vector.shape_cast %273 : vector<1x10x311xf32> to vector<10x311xf32>
    %275 = vector.broadcast %227 : f32 to vector<10x311xf32>
    %276 = arith.mulf %275, %274 : vector<10x311xf32>
    %277 = arith.addf %272, %276 : vector<10x311xf32>
    %c7_174 = arith.constant 7 : index
    %c0_175 = arith.constant 0 : index
    %c0_176 = arith.constant 0 : index
    %278 = vector.load %arg0[%c7_174, %c0_175, %c0_176] : memref<11x10x311xf32, #tpu.memory_space<vmem>>, vector<1x10x311xf32>
    %279 = vector.shape_cast %278 : vector<1x10x311xf32> to vector<10x311xf32>
    %280 = vector.broadcast %228 : f32 to vector<10x311xf32>
    %281 = arith.mulf %280, %279 : vector<10x311xf32>
    %282 = arith.addf %277, %281 : vector<10x311xf32>
    %283 = vector.broadcast %234 : f32 to vector<10x311xf32>
    %284 = arith.addf %258, %283 : vector<10x311xf32>
    %cst_177 = arith.constant 1.000000e-01 : f32
    %285 = vector.broadcast %cst_177 : f32 to vector<10x311xf32>
    %286 = arith.mulf %285, %284 : vector<10x311xf32>
    %287 = arith.maximumf %284, %286 : vector<10x311xf32>
    %288 = vector.broadcast %234 : f32 to vector<10x311xf32>
    %289 = arith.addf %282, %288 : vector<10x311xf32>
    %cst_178 = arith.constant 1.000000e-01 : f32
    %290 = vector.broadcast %cst_178 : f32 to vector<10x311xf32>
    %291 = arith.mulf %290, %289 : vector<10x311xf32>
    %292 = arith.maximumf %289, %291 : vector<10x311xf32>
    %293 = vector.broadcast %232 : f32 to vector<10x311xf32>
    %294 = arith.mulf %293, %287 : vector<10x311xf32>
    %295 = vector.broadcast %233 : f32 to vector<10x311xf32>
    %296 = arith.mulf %295, %292 : vector<10x311xf32>
    %297 = arith.addf %294, %296 : vector<10x311xf32>
    %c6_179 = arith.constant 6 : index
    %c0_180 = arith.constant 0 : index
    %c0_181 = arith.constant 0 : index
    %298 = vector.load %arg0[%c6_179, %c0_180, %c0_181] : memref<11x10x311xf32, #tpu.memory_space<vmem>>, vector<1x10x311xf32>
    %299 = vector.shape_cast %298 : vector<1x10x311xf32> to vector<10x311xf32>
    %300 = vector.broadcast %224 : f32 to vector<10x311xf32>
    %301 = arith.mulf %300, %299 : vector<10x311xf32>
    %c7_182 = arith.constant 7 : index
    %c0_183 = arith.constant 0 : index
    %c0_184 = arith.constant 0 : index
    %302 = vector.load %arg0[%c7_182, %c0_183, %c0_184] : memref<11x10x311xf32, #tpu.memory_space<vmem>>, vector<1x10x311xf32>
    %303 = vector.shape_cast %302 : vector<1x10x311xf32> to vector<10x311xf32>
    %304 = vector.broadcast %225 : f32 to vector<10x311xf32>
    %305 = arith.mulf %304, %303 : vector<10x311xf32>
    %306 = arith.addf %301, %305 : vector<10x311xf32>
    %c8_185 = arith.constant 8 : index
    %c0_186 = arith.constant 0 : index
    %c0_187 = arith.constant 0 : index
    %307 = vector.load %arg0[%c8_185, %c0_186, %c0_187] : memref<11x10x311xf32, #tpu.memory_space<vmem>>, vector<1x10x311xf32>
    %308 = vector.shape_cast %307 : vector<1x10x311xf32> to vector<10x311xf32>
    %309 = vector.broadcast %226 : f32 to vector<10x311xf32>
    %310 = arith.mulf %309, %308 : vector<10x311xf32>
    %311 = arith.addf %306, %310 : vector<10x311xf32>
    %c9_188 = arith.constant 9 : index
    %c0_189 = arith.constant 0 : index
    %c0_190 = arith.constant 0 : index
    %312 = vector.load %arg0[%c9_188, %c0_189, %c0_190] : memref<11x10x311xf32, #tpu.memory_space<vmem>>, vector<1x10x311xf32>
    %313 = vector.shape_cast %312 : vector<1x10x311xf32> to vector<10x311xf32>
    %314 = vector.broadcast %227 : f32 to vector<10x311xf32>
    %315 = arith.mulf %314, %313 : vector<10x311xf32>
    %316 = arith.addf %311, %315 : vector<10x311xf32>
    %c10_191 = arith.constant 10 : index
    %c0_192 = arith.constant 0 : index
    %c0_193 = arith.constant 0 : index
    %317 = vector.load %arg0[%c10_191, %c0_192, %c0_193] : memref<11x10x311xf32, #tpu.memory_space<vmem>>, vector<1x10x311xf32>
    %318 = vector.shape_cast %317 : vector<1x10x311xf32> to vector<10x311xf32>
    %319 = vector.broadcast %228 : f32 to vector<10x311xf32>
    %320 = arith.mulf %319, %318 : vector<10x311xf32>
    %321 = arith.addf %316, %320 : vector<10x311xf32>
    %322 = vector.broadcast %234 : f32 to vector<10x311xf32>
    %323 = arith.addf %321, %322 : vector<10x311xf32>
    %cst_194 = arith.constant 1.000000e-01 : f32
    %324 = vector.broadcast %cst_194 : f32 to vector<10x311xf32>
    %325 = arith.mulf %324, %323 : vector<10x311xf32>
    %326 = arith.maximumf %323, %325 : vector<10x311xf32>
    %327 = vector.broadcast %229 : f32 to vector<10x311xf32>
    %328 = arith.mulf %327, %287 : vector<10x311xf32>
    %329 = vector.broadcast %230 : f32 to vector<10x311xf32>
    %330 = arith.mulf %329, %292 : vector<10x311xf32>
    %331 = arith.addf %328, %330 : vector<10x311xf32>
    %332 = vector.broadcast %231 : f32 to vector<10x311xf32>
    %333 = arith.mulf %332, %326 : vector<10x311xf32>
    %334 = arith.addf %331, %333 : vector<10x311xf32>
    %335 = arith.addf %222, %334 : vector<10x311xf32>
    %336 = arith.addf %223, %297 : vector<10x311xf32>
    %c3_195 = arith.constant 3 : index
    %c0_196 = arith.constant 0 : index
    %337 = memref.load %arg1[%c3_195, %c0_196] : memref<7x5xf32, #tpu.memory_space<smem>>
    %c3_197 = arith.constant 3 : index
    %c1_198 = arith.constant 1 : index
    %338 = memref.load %arg1[%c3_197, %c1_198] : memref<7x5xf32, #tpu.memory_space<smem>>
    %c3_199 = arith.constant 3 : index
    %c2_200 = arith.constant 2 : index
    %339 = memref.load %arg1[%c3_199, %c2_200] : memref<7x5xf32, #tpu.memory_space<smem>>
    %c3_201 = arith.constant 3 : index
    %c3_202 = arith.constant 3 : index
    %340 = memref.load %arg1[%c3_201, %c3_202] : memref<7x5xf32, #tpu.memory_space<smem>>
    %c3_203 = arith.constant 3 : index
    %c4_204 = arith.constant 4 : index
    %341 = memref.load %arg1[%c3_203, %c4_204] : memref<7x5xf32, #tpu.memory_space<smem>>
    %c3_205 = arith.constant 3 : index
    %c0_206 = arith.constant 0 : index
    %342 = memref.load %arg3[%c3_205, %c0_206] : memref<7x5xf32, #tpu.memory_space<smem>>
    %c3_207 = arith.constant 3 : index
    %c1_208 = arith.constant 1 : index
    %343 = memref.load %arg3[%c3_207, %c1_208] : memref<7x5xf32, #tpu.memory_space<smem>>
    %c3_209 = arith.constant 3 : index
    %c2_210 = arith.constant 2 : index
    %344 = memref.load %arg3[%c3_209, %c2_210] : memref<7x5xf32, #tpu.memory_space<smem>>
    %c3_211 = arith.constant 3 : index
    %c3_212 = arith.constant 3 : index
    %345 = memref.load %arg3[%c3_211, %c3_212] : memref<7x5xf32, #tpu.memory_space<smem>>
    %c3_213 = arith.constant 3 : index
    %c4_214 = arith.constant 4 : index
    %346 = memref.load %arg3[%c3_213, %c4_214] : memref<7x5xf32, #tpu.memory_space<smem>>
    %c3_215 = arith.constant 3 : index
    %347 = memref.load %arg2[%c3_215] : memref<7xf32, #tpu.memory_space<smem>>
    %c0_216 = arith.constant 0 : index
    %c0_217 = arith.constant 0 : index
    %c0_218 = arith.constant 0 : index
    %348 = vector.load %arg0[%c0_216, %c0_217, %c0_218] : memref<11x10x311xf32, #tpu.memory_space<vmem>>, vector<1x10x311xf32>
    %349 = vector.shape_cast %348 : vector<1x10x311xf32> to vector<10x311xf32>
    %350 = vector.broadcast %337 : f32 to vector<10x311xf32>
    %351 = arith.mulf %350, %349 : vector<10x311xf32>
    %c1_219 = arith.constant 1 : index
    %c0_220 = arith.constant 0 : index
    %c0_221 = arith.constant 0 : index
    %352 = vector.load %arg0[%c1_219, %c0_220, %c0_221] : memref<11x10x311xf32, #tpu.memory_space<vmem>>, vector<1x10x311xf32>
    %353 = vector.shape_cast %352 : vector<1x10x311xf32> to vector<10x311xf32>
    %354 = vector.broadcast %338 : f32 to vector<10x311xf32>
    %355 = arith.mulf %354, %353 : vector<10x311xf32>
    %356 = arith.addf %351, %355 : vector<10x311xf32>
    %c2_222 = arith.constant 2 : index
    %c0_223 = arith.constant 0 : index
    %c0_224 = arith.constant 0 : index
    %357 = vector.load %arg0[%c2_222, %c0_223, %c0_224] : memref<11x10x311xf32, #tpu.memory_space<vmem>>, vector<1x10x311xf32>
    %358 = vector.shape_cast %357 : vector<1x10x311xf32> to vector<10x311xf32>
    %359 = vector.broadcast %339 : f32 to vector<10x311xf32>
    %360 = arith.mulf %359, %358 : vector<10x311xf32>
    %361 = arith.addf %356, %360 : vector<10x311xf32>
    %c3_225 = arith.constant 3 : index
    %c0_226 = arith.constant 0 : index
    %c0_227 = arith.constant 0 : index
    %362 = vector.load %arg0[%c3_225, %c0_226, %c0_227] : memref<11x10x311xf32, #tpu.memory_space<vmem>>, vector<1x10x311xf32>
    %363 = vector.shape_cast %362 : vector<1x10x311xf32> to vector<10x311xf32>
    %364 = vector.broadcast %340 : f32 to vector<10x311xf32>
    %365 = arith.mulf %364, %363 : vector<10x311xf32>
    %366 = arith.addf %361, %365 : vector<10x311xf32>
    %c4_228 = arith.constant 4 : index
    %c0_229 = arith.constant 0 : index
    %c0_230 = arith.constant 0 : index
    %367 = vector.load %arg0[%c4_228, %c0_229, %c0_230] : memref<11x10x311xf32, #tpu.memory_space<vmem>>, vector<1x10x311xf32>
    %368 = vector.shape_cast %367 : vector<1x10x311xf32> to vector<10x311xf32>
    %369 = vector.broadcast %341 : f32 to vector<10x311xf32>
    %370 = arith.mulf %369, %368 : vector<10x311xf32>
    %371 = arith.addf %366, %370 : vector<10x311xf32>
    %c3_231 = arith.constant 3 : index
    %c0_232 = arith.constant 0 : index
    %c0_233 = arith.constant 0 : index
    %372 = vector.load %arg0[%c3_231, %c0_232, %c0_233] : memref<11x10x311xf32, #tpu.memory_space<vmem>>, vector<1x10x311xf32>
    %373 = vector.shape_cast %372 : vector<1x10x311xf32> to vector<10x311xf32>
    %374 = vector.broadcast %337 : f32 to vector<10x311xf32>
    %375 = arith.mulf %374, %373 : vector<10x311xf32>
    %c4_234 = arith.constant 4 : index
    %c0_235 = arith.constant 0 : index
    %c0_236 = arith.constant 0 : index
    %376 = vector.load %arg0[%c4_234, %c0_235, %c0_236] : memref<11x10x311xf32, #tpu.memory_space<vmem>>, vector<1x10x311xf32>
    %377 = vector.shape_cast %376 : vector<1x10x311xf32> to vector<10x311xf32>
    %378 = vector.broadcast %338 : f32 to vector<10x311xf32>
    %379 = arith.mulf %378, %377 : vector<10x311xf32>
    %380 = arith.addf %375, %379 : vector<10x311xf32>
    %c5_237 = arith.constant 5 : index
    %c0_238 = arith.constant 0 : index
    %c0_239 = arith.constant 0 : index
    %381 = vector.load %arg0[%c5_237, %c0_238, %c0_239] : memref<11x10x311xf32, #tpu.memory_space<vmem>>, vector<1x10x311xf32>
    %382 = vector.shape_cast %381 : vector<1x10x311xf32> to vector<10x311xf32>
    %383 = vector.broadcast %339 : f32 to vector<10x311xf32>
    %384 = arith.mulf %383, %382 : vector<10x311xf32>
    %385 = arith.addf %380, %384 : vector<10x311xf32>
    %c6_240 = arith.constant 6 : index
    %c0_241 = arith.constant 0 : index
    %c0_242 = arith.constant 0 : index
    %386 = vector.load %arg0[%c6_240, %c0_241, %c0_242] : memref<11x10x311xf32, #tpu.memory_space<vmem>>, vector<1x10x311xf32>
    %387 = vector.shape_cast %386 : vector<1x10x311xf32> to vector<10x311xf32>
    %388 = vector.broadcast %340 : f32 to vector<10x311xf32>
    %389 = arith.mulf %388, %387 : vector<10x311xf32>
    %390 = arith.addf %385, %389 : vector<10x311xf32>
    %c7_243 = arith.constant 7 : index
    %c0_244 = arith.constant 0 : index
    %c0_245 = arith.constant 0 : index
    %391 = vector.load %arg0[%c7_243, %c0_244, %c0_245] : memref<11x10x311xf32, #tpu.memory_space<vmem>>, vector<1x10x311xf32>
    %392 = vector.shape_cast %391 : vector<1x10x311xf32> to vector<10x311xf32>
    %393 = vector.broadcast %341 : f32 to vector<10x311xf32>
    %394 = arith.mulf %393, %392 : vector<10x311xf32>
    %395 = arith.addf %390, %394 : vector<10x311xf32>
    %396 = vector.broadcast %347 : f32 to vector<10x311xf32>
    %397 = arith.addf %371, %396 : vector<10x311xf32>
    %cst_246 = arith.constant 1.000000e-01 : f32
    %398 = vector.broadcast %cst_246 : f32 to vector<10x311xf32>
    %399 = arith.mulf %398, %397 : vector<10x311xf32>
    %400 = arith.maximumf %397, %399 : vector<10x311xf32>
    %401 = vector.broadcast %347 : f32 to vector<10x311xf32>
    %402 = arith.addf %395, %401 : vector<10x311xf32>
    %cst_247 = arith.constant 1.000000e-01 : f32
    %403 = vector.broadcast %cst_247 : f32 to vector<10x311xf32>
    %404 = arith.mulf %403, %402 : vector<10x311xf32>
    %405 = arith.maximumf %402, %404 : vector<10x311xf32>
    %406 = vector.broadcast %345 : f32 to vector<10x311xf32>
    %407 = arith.mulf %406, %400 : vector<10x311xf32>
    %408 = vector.broadcast %346 : f32 to vector<10x311xf32>
    %409 = arith.mulf %408, %405 : vector<10x311xf32>
    %410 = arith.addf %407, %409 : vector<10x311xf32>
    %c6_248 = arith.constant 6 : index
    %c0_249 = arith.constant 0 : index
    %c0_250 = arith.constant 0 : index
    %411 = vector.load %arg0[%c6_248, %c0_249, %c0_250] : memref<11x10x311xf32, #tpu.memory_space<vmem>>, vector<1x10x311xf32>
    %412 = vector.shape_cast %411 : vector<1x10x311xf32> to vector<10x311xf32>
    %413 = vector.broadcast %337 : f32 to vector<10x311xf32>
    %414 = arith.mulf %413, %412 : vector<10x311xf32>
    %c7_251 = arith.constant 7 : index
    %c0_252 = arith.constant 0 : index
    %c0_253 = arith.constant 0 : index
    %415 = vector.load %arg0[%c7_251, %c0_252, %c0_253] : memref<11x10x311xf32, #tpu.memory_space<vmem>>, vector<1x10x311xf32>
    %416 = vector.shape_cast %415 : vector<1x10x311xf32> to vector<10x311xf32>
    %417 = vector.broadcast %338 : f32 to vector<10x311xf32>
    %418 = arith.mulf %417, %416 : vector<10x311xf32>
    %419 = arith.addf %414, %418 : vector<10x311xf32>
    %c8_254 = arith.constant 8 : index
    %c0_255 = arith.constant 0 : index
    %c0_256 = arith.constant 0 : index
    %420 = vector.load %arg0[%c8_254, %c0_255, %c0_256] : memref<11x10x311xf32, #tpu.memory_space<vmem>>, vector<1x10x311xf32>
    %421 = vector.shape_cast %420 : vector<1x10x311xf32> to vector<10x311xf32>
    %422 = vector.broadcast %339 : f32 to vector<10x311xf32>
    %423 = arith.mulf %422, %421 : vector<10x311xf32>
    %424 = arith.addf %419, %423 : vector<10x311xf32>
    %c9_257 = arith.constant 9 : index
    %c0_258 = arith.constant 0 : index
    %c0_259 = arith.constant 0 : index
    %425 = vector.load %arg0[%c9_257, %c0_258, %c0_259] : memref<11x10x311xf32, #tpu.memory_space<vmem>>, vector<1x10x311xf32>
    %426 = vector.shape_cast %425 : vector<1x10x311xf32> to vector<10x311xf32>
    %427 = vector.broadcast %340 : f32 to vector<10x311xf32>
    %428 = arith.mulf %427, %426 : vector<10x311xf32>
    %429 = arith.addf %424, %428 : vector<10x311xf32>
    %c10_260 = arith.constant 10 : index
    %c0_261 = arith.constant 0 : index
    %c0_262 = arith.constant 0 : index
    %430 = vector.load %arg0[%c10_260, %c0_261, %c0_262] : memref<11x10x311xf32, #tpu.memory_space<vmem>>, vector<1x10x311xf32>
    %431 = vector.shape_cast %430 : vector<1x10x311xf32> to vector<10x311xf32>
    %432 = vector.broadcast %341 : f32 to vector<10x311xf32>
    %433 = arith.mulf %432, %431 : vector<10x311xf32>
    %434 = arith.addf %429, %433 : vector<10x311xf32>
    %435 = vector.broadcast %347 : f32 to vector<10x311xf32>
    %436 = arith.addf %434, %435 : vector<10x311xf32>
    %cst_263 = arith.constant 1.000000e-01 : f32
    %437 = vector.broadcast %cst_263 : f32 to vector<10x311xf32>
    %438 = arith.mulf %437, %436 : vector<10x311xf32>
    %439 = arith.maximumf %436, %438 : vector<10x311xf32>
    %440 = vector.broadcast %342 : f32 to vector<10x311xf32>
    %441 = arith.mulf %440, %400 : vector<10x311xf32>
    %442 = vector.broadcast %343 : f32 to vector<10x311xf32>
    %443 = arith.mulf %442, %405 : vector<10x311xf32>
    %444 = arith.addf %441, %443 : vector<10x311xf32>
    %445 = vector.broadcast %344 : f32 to vector<10x311xf32>
    %446 = arith.mulf %445, %439 : vector<10x311xf32>
    %447 = arith.addf %444, %446 : vector<10x311xf32>
    %448 = arith.addf %335, %447 : vector<10x311xf32>
    %449 = arith.addf %336, %410 : vector<10x311xf32>
    %c4_264 = arith.constant 4 : index
    %c0_265 = arith.constant 0 : index
    %450 = memref.load %arg1[%c4_264, %c0_265] : memref<7x5xf32, #tpu.memory_space<smem>>
    %c4_266 = arith.constant 4 : index
    %c1_267 = arith.constant 1 : index
    %451 = memref.load %arg1[%c4_266, %c1_267] : memref<7x5xf32, #tpu.memory_space<smem>>
    %c4_268 = arith.constant 4 : index
    %c2_269 = arith.constant 2 : index
    %452 = memref.load %arg1[%c4_268, %c2_269] : memref<7x5xf32, #tpu.memory_space<smem>>
    %c4_270 = arith.constant 4 : index
    %c3_271 = arith.constant 3 : index
    %453 = memref.load %arg1[%c4_270, %c3_271] : memref<7x5xf32, #tpu.memory_space<smem>>
    %c4_272 = arith.constant 4 : index
    %c4_273 = arith.constant 4 : index
    %454 = memref.load %arg1[%c4_272, %c4_273] : memref<7x5xf32, #tpu.memory_space<smem>>
    %c4_274 = arith.constant 4 : index
    %c0_275 = arith.constant 0 : index
    %455 = memref.load %arg3[%c4_274, %c0_275] : memref<7x5xf32, #tpu.memory_space<smem>>
    %c4_276 = arith.constant 4 : index
    %c1_277 = arith.constant 1 : index
    %456 = memref.load %arg3[%c4_276, %c1_277] : memref<7x5xf32, #tpu.memory_space<smem>>
    %c4_278 = arith.constant 4 : index
    %c2_279 = arith.constant 2 : index
    %457 = memref.load %arg3[%c4_278, %c2_279] : memref<7x5xf32, #tpu.memory_space<smem>>
    %c4_280 = arith.constant 4 : index
    %c3_281 = arith.constant 3 : index
    %458 = memref.load %arg3[%c4_280, %c3_281] : memref<7x5xf32, #tpu.memory_space<smem>>
    %c4_282 = arith.constant 4 : index
    %c4_283 = arith.constant 4 : index
    %459 = memref.load %arg3[%c4_282, %c4_283] : memref<7x5xf32, #tpu.memory_space<smem>>
    %c4_284 = arith.constant 4 : index
    %460 = memref.load %arg2[%c4_284] : memref<7xf32, #tpu.memory_space<smem>>
    %c0_285 = arith.constant 0 : index
    %c0_286 = arith.constant 0 : index
    %c0_287 = arith.constant 0 : index
    %461 = vector.load %arg0[%c0_285, %c0_286, %c0_287] : memref<11x10x311xf32, #tpu.memory_space<vmem>>, vector<1x10x311xf32>
    %462 = vector.shape_cast %461 : vector<1x10x311xf32> to vector<10x311xf32>
    %463 = vector.broadcast %450 : f32 to vector<10x311xf32>
    %464 = arith.mulf %463, %462 : vector<10x311xf32>
    %c1_288 = arith.constant 1 : index
    %c0_289 = arith.constant 0 : index
    %c0_290 = arith.constant 0 : index
    %465 = vector.load %arg0[%c1_288, %c0_289, %c0_290] : memref<11x10x311xf32, #tpu.memory_space<vmem>>, vector<1x10x311xf32>
    %466 = vector.shape_cast %465 : vector<1x10x311xf32> to vector<10x311xf32>
    %467 = vector.broadcast %451 : f32 to vector<10x311xf32>
    %468 = arith.mulf %467, %466 : vector<10x311xf32>
    %469 = arith.addf %464, %468 : vector<10x311xf32>
    %c2_291 = arith.constant 2 : index
    %c0_292 = arith.constant 0 : index
    %c0_293 = arith.constant 0 : index
    %470 = vector.load %arg0[%c2_291, %c0_292, %c0_293] : memref<11x10x311xf32, #tpu.memory_space<vmem>>, vector<1x10x311xf32>
    %471 = vector.shape_cast %470 : vector<1x10x311xf32> to vector<10x311xf32>
    %472 = vector.broadcast %452 : f32 to vector<10x311xf32>
    %473 = arith.mulf %472, %471 : vector<10x311xf32>
    %474 = arith.addf %469, %473 : vector<10x311xf32>
    %c3_294 = arith.constant 3 : index
    %c0_295 = arith.constant 0 : index
    %c0_296 = arith.constant 0 : index
    %475 = vector.load %arg0[%c3_294, %c0_295, %c0_296] : memref<11x10x311xf32, #tpu.memory_space<vmem>>, vector<1x10x311xf32>
    %476 = vector.shape_cast %475 : vector<1x10x311xf32> to vector<10x311xf32>
    %477 = vector.broadcast %453 : f32 to vector<10x311xf32>
    %478 = arith.mulf %477, %476 : vector<10x311xf32>
    %479 = arith.addf %474, %478 : vector<10x311xf32>
    %c4_297 = arith.constant 4 : index
    %c0_298 = arith.constant 0 : index
    %c0_299 = arith.constant 0 : index
    %480 = vector.load %arg0[%c4_297, %c0_298, %c0_299] : memref<11x10x311xf32, #tpu.memory_space<vmem>>, vector<1x10x311xf32>
    %481 = vector.shape_cast %480 : vector<1x10x311xf32> to vector<10x311xf32>
    %482 = vector.broadcast %454 : f32 to vector<10x311xf32>
    %483 = arith.mulf %482, %481 : vector<10x311xf32>
    %484 = arith.addf %479, %483 : vector<10x311xf32>
    %c3_300 = arith.constant 3 : index
    %c0_301 = arith.constant 0 : index
    %c0_302 = arith.constant 0 : index
    %485 = vector.load %arg0[%c3_300, %c0_301, %c0_302] : memref<11x10x311xf32, #tpu.memory_space<vmem>>, vector<1x10x311xf32>
    %486 = vector.shape_cast %485 : vector<1x10x311xf32> to vector<10x311xf32>
    %487 = vector.broadcast %450 : f32 to vector<10x311xf32>
    %488 = arith.mulf %487, %486 : vector<10x311xf32>
    %c4_303 = arith.constant 4 : index
    %c0_304 = arith.constant 0 : index
    %c0_305 = arith.constant 0 : index
    %489 = vector.load %arg0[%c4_303, %c0_304, %c0_305] : memref<11x10x311xf32, #tpu.memory_space<vmem>>, vector<1x10x311xf32>
    %490 = vector.shape_cast %489 : vector<1x10x311xf32> to vector<10x311xf32>
    %491 = vector.broadcast %451 : f32 to vector<10x311xf32>
    %492 = arith.mulf %491, %490 : vector<10x311xf32>
    %493 = arith.addf %488, %492 : vector<10x311xf32>
    %c5_306 = arith.constant 5 : index
    %c0_307 = arith.constant 0 : index
    %c0_308 = arith.constant 0 : index
    %494 = vector.load %arg0[%c5_306, %c0_307, %c0_308] : memref<11x10x311xf32, #tpu.memory_space<vmem>>, vector<1x10x311xf32>
    %495 = vector.shape_cast %494 : vector<1x10x311xf32> to vector<10x311xf32>
    %496 = vector.broadcast %452 : f32 to vector<10x311xf32>
    %497 = arith.mulf %496, %495 : vector<10x311xf32>
    %498 = arith.addf %493, %497 : vector<10x311xf32>
    %c6_309 = arith.constant 6 : index
    %c0_310 = arith.constant 0 : index
    %c0_311 = arith.constant 0 : index
    %499 = vector.load %arg0[%c6_309, %c0_310, %c0_311] : memref<11x10x311xf32, #tpu.memory_space<vmem>>, vector<1x10x311xf32>
    %500 = vector.shape_cast %499 : vector<1x10x311xf32> to vector<10x311xf32>
    %501 = vector.broadcast %453 : f32 to vector<10x311xf32>
    %502 = arith.mulf %501, %500 : vector<10x311xf32>
    %503 = arith.addf %498, %502 : vector<10x311xf32>
    %c7_312 = arith.constant 7 : index
    %c0_313 = arith.constant 0 : index
    %c0_314 = arith.constant 0 : index
    %504 = vector.load %arg0[%c7_312, %c0_313, %c0_314] : memref<11x10x311xf32, #tpu.memory_space<vmem>>, vector<1x10x311xf32>
    %505 = vector.shape_cast %504 : vector<1x10x311xf32> to vector<10x311xf32>
    %506 = vector.broadcast %454 : f32 to vector<10x311xf32>
    %507 = arith.mulf %506, %505 : vector<10x311xf32>
    %508 = arith.addf %503, %507 : vector<10x311xf32>
    %509 = vector.broadcast %460 : f32 to vector<10x311xf32>
    %510 = arith.addf %484, %509 : vector<10x311xf32>
    %cst_315 = arith.constant 1.000000e-01 : f32
    %511 = vector.broadcast %cst_315 : f32 to vector<10x311xf32>
    %512 = arith.mulf %511, %510 : vector<10x311xf32>
    %513 = arith.maximumf %510, %512 : vector<10x311xf32>
    %514 = vector.broadcast %460 : f32 to vector<10x311xf32>
    %515 = arith.addf %508, %514 : vector<10x311xf32>
    %cst_316 = arith.constant 1.000000e-01 : f32
    %516 = vector.broadcast %cst_316 : f32 to vector<10x311xf32>
    %517 = arith.mulf %516, %515 : vector<10x311xf32>
    %518 = arith.maximumf %515, %517 : vector<10x311xf32>
    %519 = vector.broadcast %458 : f32 to vector<10x311xf32>
    %520 = arith.mulf %519, %513 : vector<10x311xf32>
    %521 = vector.broadcast %459 : f32 to vector<10x311xf32>
    %522 = arith.mulf %521, %518 : vector<10x311xf32>
    %523 = arith.addf %520, %522 : vector<10x311xf32>
    %c6_317 = arith.constant 6 : index
    %c0_318 = arith.constant 0 : index
    %c0_319 = arith.constant 0 : index
    %524 = vector.load %arg0[%c6_317, %c0_318, %c0_319] : memref<11x10x311xf32, #tpu.memory_space<vmem>>, vector<1x10x311xf32>
    %525 = vector.shape_cast %524 : vector<1x10x311xf32> to vector<10x311xf32>
    %526 = vector.broadcast %450 : f32 to vector<10x311xf32>
    %527 = arith.mulf %526, %525 : vector<10x311xf32>
    %c7_320 = arith.constant 7 : index
    %c0_321 = arith.constant 0 : index
    %c0_322 = arith.constant 0 : index
    %528 = vector.load %arg0[%c7_320, %c0_321, %c0_322] : memref<11x10x311xf32, #tpu.memory_space<vmem>>, vector<1x10x311xf32>
    %529 = vector.shape_cast %528 : vector<1x10x311xf32> to vector<10x311xf32>
    %530 = vector.broadcast %451 : f32 to vector<10x311xf32>
    %531 = arith.mulf %530, %529 : vector<10x311xf32>
    %532 = arith.addf %527, %531 : vector<10x311xf32>
    %c8_323 = arith.constant 8 : index
    %c0_324 = arith.constant 0 : index
    %c0_325 = arith.constant 0 : index
    %533 = vector.load %arg0[%c8_323, %c0_324, %c0_325] : memref<11x10x311xf32, #tpu.memory_space<vmem>>, vector<1x10x311xf32>
    %534 = vector.shape_cast %533 : vector<1x10x311xf32> to vector<10x311xf32>
    %535 = vector.broadcast %452 : f32 to vector<10x311xf32>
    %536 = arith.mulf %535, %534 : vector<10x311xf32>
    %537 = arith.addf %532, %536 : vector<10x311xf32>
    %c9_326 = arith.constant 9 : index
    %c0_327 = arith.constant 0 : index
    %c0_328 = arith.constant 0 : index
    %538 = vector.load %arg0[%c9_326, %c0_327, %c0_328] : memref<11x10x311xf32, #tpu.memory_space<vmem>>, vector<1x10x311xf32>
    %539 = vector.shape_cast %538 : vector<1x10x311xf32> to vector<10x311xf32>
    %540 = vector.broadcast %453 : f32 to vector<10x311xf32>
    %541 = arith.mulf %540, %539 : vector<10x311xf32>
    %542 = arith.addf %537, %541 : vector<10x311xf32>
    %c10_329 = arith.constant 10 : index
    %c0_330 = arith.constant 0 : index
    %c0_331 = arith.constant 0 : index
    %543 = vector.load %arg0[%c10_329, %c0_330, %c0_331] : memref<11x10x311xf32, #tpu.memory_space<vmem>>, vector<1x10x311xf32>
    %544 = vector.shape_cast %543 : vector<1x10x311xf32> to vector<10x311xf32>
    %545 = vector.broadcast %454 : f32 to vector<10x311xf32>
    %546 = arith.mulf %545, %544 : vector<10x311xf32>
    %547 = arith.addf %542, %546 : vector<10x311xf32>
    %548 = vector.broadcast %460 : f32 to vector<10x311xf32>
    %549 = arith.addf %547, %548 : vector<10x311xf32>
    %cst_332 = arith.constant 1.000000e-01 : f32
    %550 = vector.broadcast %cst_332 : f32 to vector<10x311xf32>
    %551 = arith.mulf %550, %549 : vector<10x311xf32>
    %552 = arith.maximumf %549, %551 : vector<10x311xf32>
    %553 = vector.broadcast %455 : f32 to vector<10x311xf32>
    %554 = arith.mulf %553, %513 : vector<10x311xf32>
    %555 = vector.broadcast %456 : f32 to vector<10x311xf32>
    %556 = arith.mulf %555, %518 : vector<10x311xf32>
    %557 = arith.addf %554, %556 : vector<10x311xf32>
    %558 = vector.broadcast %457 : f32 to vector<10x311xf32>
    %559 = arith.mulf %558, %552 : vector<10x311xf32>
    %560 = arith.addf %557, %559 : vector<10x311xf32>
    %561 = arith.addf %448, %560 : vector<10x311xf32>
    %562 = arith.addf %449, %523 : vector<10x311xf32>
    %c5_333 = arith.constant 5 : index
    %c0_334 = arith.constant 0 : index
    %563 = memref.load %arg1[%c5_333, %c0_334] : memref<7x5xf32, #tpu.memory_space<smem>>
    %c5_335 = arith.constant 5 : index
    %c1_336 = arith.constant 1 : index
    %564 = memref.load %arg1[%c5_335, %c1_336] : memref<7x5xf32, #tpu.memory_space<smem>>
    %c5_337 = arith.constant 5 : index
    %c2_338 = arith.constant 2 : index
    %565 = memref.load %arg1[%c5_337, %c2_338] : memref<7x5xf32, #tpu.memory_space<smem>>
    %c5_339 = arith.constant 5 : index
    %c3_340 = arith.constant 3 : index
    %566 = memref.load %arg1[%c5_339, %c3_340] : memref<7x5xf32, #tpu.memory_space<smem>>
    %c5_341 = arith.constant 5 : index
    %c4_342 = arith.constant 4 : index
    %567 = memref.load %arg1[%c5_341, %c4_342] : memref<7x5xf32, #tpu.memory_space<smem>>
    %c5_343 = arith.constant 5 : index
    %c0_344 = arith.constant 0 : index
    %568 = memref.load %arg3[%c5_343, %c0_344] : memref<7x5xf32, #tpu.memory_space<smem>>
    %c5_345 = arith.constant 5 : index
    %c1_346 = arith.constant 1 : index
    %569 = memref.load %arg3[%c5_345, %c1_346] : memref<7x5xf32, #tpu.memory_space<smem>>
    %c5_347 = arith.constant 5 : index
    %c2_348 = arith.constant 2 : index
    %570 = memref.load %arg3[%c5_347, %c2_348] : memref<7x5xf32, #tpu.memory_space<smem>>
    %c5_349 = arith.constant 5 : index
    %c3_350 = arith.constant 3 : index
    %571 = memref.load %arg3[%c5_349, %c3_350] : memref<7x5xf32, #tpu.memory_space<smem>>
    %c5_351 = arith.constant 5 : index
    %c4_352 = arith.constant 4 : index
    %572 = memref.load %arg3[%c5_351, %c4_352] : memref<7x5xf32, #tpu.memory_space<smem>>
    %c5_353 = arith.constant 5 : index
    %573 = memref.load %arg2[%c5_353] : memref<7xf32, #tpu.memory_space<smem>>
    %c0_354 = arith.constant 0 : index
    %c0_355 = arith.constant 0 : index
    %c0_356 = arith.constant 0 : index
    %574 = vector.load %arg0[%c0_354, %c0_355, %c0_356] : memref<11x10x311xf32, #tpu.memory_space<vmem>>, vector<1x10x311xf32>
    %575 = vector.shape_cast %574 : vector<1x10x311xf32> to vector<10x311xf32>
    %576 = vector.broadcast %563 : f32 to vector<10x311xf32>
    %577 = arith.mulf %576, %575 : vector<10x311xf32>
    %c1_357 = arith.constant 1 : index
    %c0_358 = arith.constant 0 : index
    %c0_359 = arith.constant 0 : index
    %578 = vector.load %arg0[%c1_357, %c0_358, %c0_359] : memref<11x10x311xf32, #tpu.memory_space<vmem>>, vector<1x10x311xf32>
    %579 = vector.shape_cast %578 : vector<1x10x311xf32> to vector<10x311xf32>
    %580 = vector.broadcast %564 : f32 to vector<10x311xf32>
    %581 = arith.mulf %580, %579 : vector<10x311xf32>
    %582 = arith.addf %577, %581 : vector<10x311xf32>
    %c2_360 = arith.constant 2 : index
    %c0_361 = arith.constant 0 : index
    %c0_362 = arith.constant 0 : index
    %583 = vector.load %arg0[%c2_360, %c0_361, %c0_362] : memref<11x10x311xf32, #tpu.memory_space<vmem>>, vector<1x10x311xf32>
    %584 = vector.shape_cast %583 : vector<1x10x311xf32> to vector<10x311xf32>
    %585 = vector.broadcast %565 : f32 to vector<10x311xf32>
    %586 = arith.mulf %585, %584 : vector<10x311xf32>
    %587 = arith.addf %582, %586 : vector<10x311xf32>
    %c3_363 = arith.constant 3 : index
    %c0_364 = arith.constant 0 : index
    %c0_365 = arith.constant 0 : index
    %588 = vector.load %arg0[%c3_363, %c0_364, %c0_365] : memref<11x10x311xf32, #tpu.memory_space<vmem>>, vector<1x10x311xf32>
    %589 = vector.shape_cast %588 : vector<1x10x311xf32> to vector<10x311xf32>
    %590 = vector.broadcast %566 : f32 to vector<10x311xf32>
    %591 = arith.mulf %590, %589 : vector<10x311xf32>
    %592 = arith.addf %587, %591 : vector<10x311xf32>
    %c4_366 = arith.constant 4 : index
    %c0_367 = arith.constant 0 : index
    %c0_368 = arith.constant 0 : index
    %593 = vector.load %arg0[%c4_366, %c0_367, %c0_368] : memref<11x10x311xf32, #tpu.memory_space<vmem>>, vector<1x10x311xf32>
    %594 = vector.shape_cast %593 : vector<1x10x311xf32> to vector<10x311xf32>
    %595 = vector.broadcast %567 : f32 to vector<10x311xf32>
    %596 = arith.mulf %595, %594 : vector<10x311xf32>
    %597 = arith.addf %592, %596 : vector<10x311xf32>
    %c3_369 = arith.constant 3 : index
    %c0_370 = arith.constant 0 : index
    %c0_371 = arith.constant 0 : index
    %598 = vector.load %arg0[%c3_369, %c0_370, %c0_371] : memref<11x10x311xf32, #tpu.memory_space<vmem>>, vector<1x10x311xf32>
    %599 = vector.shape_cast %598 : vector<1x10x311xf32> to vector<10x311xf32>
    %600 = vector.broadcast %563 : f32 to vector<10x311xf32>
    %601 = arith.mulf %600, %599 : vector<10x311xf32>
    %c4_372 = arith.constant 4 : index
    %c0_373 = arith.constant 0 : index
    %c0_374 = arith.constant 0 : index
    %602 = vector.load %arg0[%c4_372, %c0_373, %c0_374] : memref<11x10x311xf32, #tpu.memory_space<vmem>>, vector<1x10x311xf32>
    %603 = vector.shape_cast %602 : vector<1x10x311xf32> to vector<10x311xf32>
    %604 = vector.broadcast %564 : f32 to vector<10x311xf32>
    %605 = arith.mulf %604, %603 : vector<10x311xf32>
    %606 = arith.addf %601, %605 : vector<10x311xf32>
    %c5_375 = arith.constant 5 : index
    %c0_376 = arith.constant 0 : index
    %c0_377 = arith.constant 0 : index
    %607 = vector.load %arg0[%c5_375, %c0_376, %c0_377] : memref<11x10x311xf32, #tpu.memory_space<vmem>>, vector<1x10x311xf32>
    %608 = vector.shape_cast %607 : vector<1x10x311xf32> to vector<10x311xf32>
    %609 = vector.broadcast %565 : f32 to vector<10x311xf32>
    %610 = arith.mulf %609, %608 : vector<10x311xf32>
    %611 = arith.addf %606, %610 : vector<10x311xf32>
    %c6_378 = arith.constant 6 : index
    %c0_379 = arith.constant 0 : index
    %c0_380 = arith.constant 0 : index
    %612 = vector.load %arg0[%c6_378, %c0_379, %c0_380] : memref<11x10x311xf32, #tpu.memory_space<vmem>>, vector<1x10x311xf32>
    %613 = vector.shape_cast %612 : vector<1x10x311xf32> to vector<10x311xf32>
    %614 = vector.broadcast %566 : f32 to vector<10x311xf32>
    %615 = arith.mulf %614, %613 : vector<10x311xf32>
    %616 = arith.addf %611, %615 : vector<10x311xf32>
    %c7_381 = arith.constant 7 : index
    %c0_382 = arith.constant 0 : index
    %c0_383 = arith.constant 0 : index
    %617 = vector.load %arg0[%c7_381, %c0_382, %c0_383] : memref<11x10x311xf32, #tpu.memory_space<vmem>>, vector<1x10x311xf32>
    %618 = vector.shape_cast %617 : vector<1x10x311xf32> to vector<10x311xf32>
    %619 = vector.broadcast %567 : f32 to vector<10x311xf32>
    %620 = arith.mulf %619, %618 : vector<10x311xf32>
    %621 = arith.addf %616, %620 : vector<10x311xf32>
    %622 = vector.broadcast %573 : f32 to vector<10x311xf32>
    %623 = arith.addf %597, %622 : vector<10x311xf32>
    %cst_384 = arith.constant 1.000000e-01 : f32
    %624 = vector.broadcast %cst_384 : f32 to vector<10x311xf32>
    %625 = arith.mulf %624, %623 : vector<10x311xf32>
    %626 = arith.maximumf %623, %625 : vector<10x311xf32>
    %627 = vector.broadcast %573 : f32 to vector<10x311xf32>
    %628 = arith.addf %621, %627 : vector<10x311xf32>
    %cst_385 = arith.constant 1.000000e-01 : f32
    %629 = vector.broadcast %cst_385 : f32 to vector<10x311xf32>
    %630 = arith.mulf %629, %628 : vector<10x311xf32>
    %631 = arith.maximumf %628, %630 : vector<10x311xf32>
    %632 = vector.broadcast %571 : f32 to vector<10x311xf32>
    %633 = arith.mulf %632, %626 : vector<10x311xf32>
    %634 = vector.broadcast %572 : f32 to vector<10x311xf32>
    %635 = arith.mulf %634, %631 : vector<10x311xf32>
    %636 = arith.addf %633, %635 : vector<10x311xf32>
    %c6_386 = arith.constant 6 : index
    %c0_387 = arith.constant 0 : index
    %c0_388 = arith.constant 0 : index
    %637 = vector.load %arg0[%c6_386, %c0_387, %c0_388] : memref<11x10x311xf32, #tpu.memory_space<vmem>>, vector<1x10x311xf32>
    %638 = vector.shape_cast %637 : vector<1x10x311xf32> to vector<10x311xf32>
    %639 = vector.broadcast %563 : f32 to vector<10x311xf32>
    %640 = arith.mulf %639, %638 : vector<10x311xf32>
    %c7_389 = arith.constant 7 : index
    %c0_390 = arith.constant 0 : index
    %c0_391 = arith.constant 0 : index
    %641 = vector.load %arg0[%c7_389, %c0_390, %c0_391] : memref<11x10x311xf32, #tpu.memory_space<vmem>>, vector<1x10x311xf32>
    %642 = vector.shape_cast %641 : vector<1x10x311xf32> to vector<10x311xf32>
    %643 = vector.broadcast %564 : f32 to vector<10x311xf32>
    %644 = arith.mulf %643, %642 : vector<10x311xf32>
    %645 = arith.addf %640, %644 : vector<10x311xf32>
    %c8_392 = arith.constant 8 : index
    %c0_393 = arith.constant 0 : index
    %c0_394 = arith.constant 0 : index
    %646 = vector.load %arg0[%c8_392, %c0_393, %c0_394] : memref<11x10x311xf32, #tpu.memory_space<vmem>>, vector<1x10x311xf32>
    %647 = vector.shape_cast %646 : vector<1x10x311xf32> to vector<10x311xf32>
    %648 = vector.broadcast %565 : f32 to vector<10x311xf32>
    %649 = arith.mulf %648, %647 : vector<10x311xf32>
    %650 = arith.addf %645, %649 : vector<10x311xf32>
    %c9_395 = arith.constant 9 : index
    %c0_396 = arith.constant 0 : index
    %c0_397 = arith.constant 0 : index
    %651 = vector.load %arg0[%c9_395, %c0_396, %c0_397] : memref<11x10x311xf32, #tpu.memory_space<vmem>>, vector<1x10x311xf32>
    %652 = vector.shape_cast %651 : vector<1x10x311xf32> to vector<10x311xf32>
    %653 = vector.broadcast %566 : f32 to vector<10x311xf32>
    %654 = arith.mulf %653, %652 : vector<10x311xf32>
    %655 = arith.addf %650, %654 : vector<10x311xf32>
    %c10_398 = arith.constant 10 : index
    %c0_399 = arith.constant 0 : index
    %c0_400 = arith.constant 0 : index
    %656 = vector.load %arg0[%c10_398, %c0_399, %c0_400] : memref<11x10x311xf32, #tpu.memory_space<vmem>>, vector<1x10x311xf32>
    %657 = vector.shape_cast %656 : vector<1x10x311xf32> to vector<10x311xf32>
    %658 = vector.broadcast %567 : f32 to vector<10x311xf32>
    %659 = arith.mulf %658, %657 : vector<10x311xf32>
    %660 = arith.addf %655, %659 : vector<10x311xf32>
    %661 = vector.broadcast %573 : f32 to vector<10x311xf32>
    %662 = arith.addf %660, %661 : vector<10x311xf32>
    %cst_401 = arith.constant 1.000000e-01 : f32
    %663 = vector.broadcast %cst_401 : f32 to vector<10x311xf32>
    %664 = arith.mulf %663, %662 : vector<10x311xf32>
    %665 = arith.maximumf %662, %664 : vector<10x311xf32>
    %666 = vector.broadcast %568 : f32 to vector<10x311xf32>
    %667 = arith.mulf %666, %626 : vector<10x311xf32>
    %668 = vector.broadcast %569 : f32 to vector<10x311xf32>
    %669 = arith.mulf %668, %631 : vector<10x311xf32>
    %670 = arith.addf %667, %669 : vector<10x311xf32>
    %671 = vector.broadcast %570 : f32 to vector<10x311xf32>
    %672 = arith.mulf %671, %665 : vector<10x311xf32>
    %673 = arith.addf %670, %672 : vector<10x311xf32>
    %674 = arith.addf %561, %673 : vector<10x311xf32>
    %675 = arith.addf %562, %636 : vector<10x311xf32>
    %c6_402 = arith.constant 6 : index
    %c0_403 = arith.constant 0 : index
    %676 = memref.load %arg1[%c6_402, %c0_403] : memref<7x5xf32, #tpu.memory_space<smem>>
    %c6_404 = arith.constant 6 : index
    %c1_405 = arith.constant 1 : index
    %677 = memref.load %arg1[%c6_404, %c1_405] : memref<7x5xf32, #tpu.memory_space<smem>>
    %c6_406 = arith.constant 6 : index
    %c2_407 = arith.constant 2 : index
    %678 = memref.load %arg1[%c6_406, %c2_407] : memref<7x5xf32, #tpu.memory_space<smem>>
    %c6_408 = arith.constant 6 : index
    %c3_409 = arith.constant 3 : index
    %679 = memref.load %arg1[%c6_408, %c3_409] : memref<7x5xf32, #tpu.memory_space<smem>>
    %c6_410 = arith.constant 6 : index
    %c4_411 = arith.constant 4 : index
    %680 = memref.load %arg1[%c6_410, %c4_411] : memref<7x5xf32, #tpu.memory_space<smem>>
    %c6_412 = arith.constant 6 : index
    %c0_413 = arith.constant 0 : index
    %681 = memref.load %arg3[%c6_412, %c0_413] : memref<7x5xf32, #tpu.memory_space<smem>>
    %c6_414 = arith.constant 6 : index
    %c1_415 = arith.constant 1 : index
    %682 = memref.load %arg3[%c6_414, %c1_415] : memref<7x5xf32, #tpu.memory_space<smem>>
    %c6_416 = arith.constant 6 : index
    %c2_417 = arith.constant 2 : index
    %683 = memref.load %arg3[%c6_416, %c2_417] : memref<7x5xf32, #tpu.memory_space<smem>>
    %c6_418 = arith.constant 6 : index
    %c3_419 = arith.constant 3 : index
    %684 = memref.load %arg3[%c6_418, %c3_419] : memref<7x5xf32, #tpu.memory_space<smem>>
    %c6_420 = arith.constant 6 : index
    %c4_421 = arith.constant 4 : index
    %685 = memref.load %arg3[%c6_420, %c4_421] : memref<7x5xf32, #tpu.memory_space<smem>>
    %c6_422 = arith.constant 6 : index
    %686 = memref.load %arg2[%c6_422] : memref<7xf32, #tpu.memory_space<smem>>
    %c0_423 = arith.constant 0 : index
    %c0_424 = arith.constant 0 : index
    %c0_425 = arith.constant 0 : index
    %687 = vector.load %arg0[%c0_423, %c0_424, %c0_425] : memref<11x10x311xf32, #tpu.memory_space<vmem>>, vector<1x10x311xf32>
    %688 = vector.shape_cast %687 : vector<1x10x311xf32> to vector<10x311xf32>
    %689 = vector.broadcast %676 : f32 to vector<10x311xf32>
    %690 = arith.mulf %689, %688 : vector<10x311xf32>
    %c1_426 = arith.constant 1 : index
    %c0_427 = arith.constant 0 : index
    %c0_428 = arith.constant 0 : index
    %691 = vector.load %arg0[%c1_426, %c0_427, %c0_428] : memref<11x10x311xf32, #tpu.memory_space<vmem>>, vector<1x10x311xf32>
    %692 = vector.shape_cast %691 : vector<1x10x311xf32> to vector<10x311xf32>
    %693 = vector.broadcast %677 : f32 to vector<10x311xf32>
    %694 = arith.mulf %693, %692 : vector<10x311xf32>
    %695 = arith.addf %690, %694 : vector<10x311xf32>
    %c2_429 = arith.constant 2 : index
    %c0_430 = arith.constant 0 : index
    %c0_431 = arith.constant 0 : index
    %696 = vector.load %arg0[%c2_429, %c0_430, %c0_431] : memref<11x10x311xf32, #tpu.memory_space<vmem>>, vector<1x10x311xf32>
    %697 = vector.shape_cast %696 : vector<1x10x311xf32> to vector<10x311xf32>
    %698 = vector.broadcast %678 : f32 to vector<10x311xf32>
    %699 = arith.mulf %698, %697 : vector<10x311xf32>
    %700 = arith.addf %695, %699 : vector<10x311xf32>
    %c3_432 = arith.constant 3 : index
    %c0_433 = arith.constant 0 : index
    %c0_434 = arith.constant 0 : index
    %701 = vector.load %arg0[%c3_432, %c0_433, %c0_434] : memref<11x10x311xf32, #tpu.memory_space<vmem>>, vector<1x10x311xf32>
    %702 = vector.shape_cast %701 : vector<1x10x311xf32> to vector<10x311xf32>
    %703 = vector.broadcast %679 : f32 to vector<10x311xf32>
    %704 = arith.mulf %703, %702 : vector<10x311xf32>
    %705 = arith.addf %700, %704 : vector<10x311xf32>
    %c4_435 = arith.constant 4 : index
    %c0_436 = arith.constant 0 : index
    %c0_437 = arith.constant 0 : index
    %706 = vector.load %arg0[%c4_435, %c0_436, %c0_437] : memref<11x10x311xf32, #tpu.memory_space<vmem>>, vector<1x10x311xf32>
    %707 = vector.shape_cast %706 : vector<1x10x311xf32> to vector<10x311xf32>
    %708 = vector.broadcast %680 : f32 to vector<10x311xf32>
    %709 = arith.mulf %708, %707 : vector<10x311xf32>
    %710 = arith.addf %705, %709 : vector<10x311xf32>
    %c3_438 = arith.constant 3 : index
    %c0_439 = arith.constant 0 : index
    %c0_440 = arith.constant 0 : index
    %711 = vector.load %arg0[%c3_438, %c0_439, %c0_440] : memref<11x10x311xf32, #tpu.memory_space<vmem>>, vector<1x10x311xf32>
    %712 = vector.shape_cast %711 : vector<1x10x311xf32> to vector<10x311xf32>
    %713 = vector.broadcast %676 : f32 to vector<10x311xf32>
    %714 = arith.mulf %713, %712 : vector<10x311xf32>
    %c4_441 = arith.constant 4 : index
    %c0_442 = arith.constant 0 : index
    %c0_443 = arith.constant 0 : index
    %715 = vector.load %arg0[%c4_441, %c0_442, %c0_443] : memref<11x10x311xf32, #tpu.memory_space<vmem>>, vector<1x10x311xf32>
    %716 = vector.shape_cast %715 : vector<1x10x311xf32> to vector<10x311xf32>
    %717 = vector.broadcast %677 : f32 to vector<10x311xf32>
    %718 = arith.mulf %717, %716 : vector<10x311xf32>
    %719 = arith.addf %714, %718 : vector<10x311xf32>
    %c5_444 = arith.constant 5 : index
    %c0_445 = arith.constant 0 : index
    %c0_446 = arith.constant 0 : index
    %720 = vector.load %arg0[%c5_444, %c0_445, %c0_446] : memref<11x10x311xf32, #tpu.memory_space<vmem>>, vector<1x10x311xf32>
    %721 = vector.shape_cast %720 : vector<1x10x311xf32> to vector<10x311xf32>
    %722 = vector.broadcast %678 : f32 to vector<10x311xf32>
    %723 = arith.mulf %722, %721 : vector<10x311xf32>
    %724 = arith.addf %719, %723 : vector<10x311xf32>
    %c6_447 = arith.constant 6 : index
    %c0_448 = arith.constant 0 : index
    %c0_449 = arith.constant 0 : index
    %725 = vector.load %arg0[%c6_447, %c0_448, %c0_449] : memref<11x10x311xf32, #tpu.memory_space<vmem>>, vector<1x10x311xf32>
    %726 = vector.shape_cast %725 : vector<1x10x311xf32> to vector<10x311xf32>
    %727 = vector.broadcast %679 : f32 to vector<10x311xf32>
    %728 = arith.mulf %727, %726 : vector<10x311xf32>
    %729 = arith.addf %724, %728 : vector<10x311xf32>
    %c7_450 = arith.constant 7 : index
    %c0_451 = arith.constant 0 : index
    %c0_452 = arith.constant 0 : index
    %730 = vector.load %arg0[%c7_450, %c0_451, %c0_452] : memref<11x10x311xf32, #tpu.memory_space<vmem>>, vector<1x10x311xf32>
    %731 = vector.shape_cast %730 : vector<1x10x311xf32> to vector<10x311xf32>
    %732 = vector.broadcast %680 : f32 to vector<10x311xf32>
    %733 = arith.mulf %732, %731 : vector<10x311xf32>
    %734 = arith.addf %729, %733 : vector<10x311xf32>
    %735 = vector.broadcast %686 : f32 to vector<10x311xf32>
    %736 = arith.addf %710, %735 : vector<10x311xf32>
    %cst_453 = arith.constant 1.000000e-01 : f32
    %737 = vector.broadcast %cst_453 : f32 to vector<10x311xf32>
    %738 = arith.mulf %737, %736 : vector<10x311xf32>
    %739 = arith.maximumf %736, %738 : vector<10x311xf32>
    %740 = vector.broadcast %686 : f32 to vector<10x311xf32>
    %741 = arith.addf %734, %740 : vector<10x311xf32>
    %cst_454 = arith.constant 1.000000e-01 : f32
    %742 = vector.broadcast %cst_454 : f32 to vector<10x311xf32>
    %743 = arith.mulf %742, %741 : vector<10x311xf32>
    %744 = arith.maximumf %741, %743 : vector<10x311xf32>
    %745 = vector.broadcast %684 : f32 to vector<10x311xf32>
    %746 = arith.mulf %745, %739 : vector<10x311xf32>
    %747 = vector.broadcast %685 : f32 to vector<10x311xf32>
    %748 = arith.mulf %747, %744 : vector<10x311xf32>
    %749 = arith.addf %746, %748 : vector<10x311xf32>
    %c6_455 = arith.constant 6 : index
    %c0_456 = arith.constant 0 : index
    %c0_457 = arith.constant 0 : index
    %750 = vector.load %arg0[%c6_455, %c0_456, %c0_457] : memref<11x10x311xf32, #tpu.memory_space<vmem>>, vector<1x10x311xf32>
    %751 = vector.shape_cast %750 : vector<1x10x311xf32> to vector<10x311xf32>
    %752 = vector.broadcast %676 : f32 to vector<10x311xf32>
    %753 = arith.mulf %752, %751 : vector<10x311xf32>
    %c7_458 = arith.constant 7 : index
    %c0_459 = arith.constant 0 : index
    %c0_460 = arith.constant 0 : index
    %754 = vector.load %arg0[%c7_458, %c0_459, %c0_460] : memref<11x10x311xf32, #tpu.memory_space<vmem>>, vector<1x10x311xf32>
    %755 = vector.shape_cast %754 : vector<1x10x311xf32> to vector<10x311xf32>
    %756 = vector.broadcast %677 : f32 to vector<10x311xf32>
    %757 = arith.mulf %756, %755 : vector<10x311xf32>
    %758 = arith.addf %753, %757 : vector<10x311xf32>
    %c8_461 = arith.constant 8 : index
    %c0_462 = arith.constant 0 : index
    %c0_463 = arith.constant 0 : index
    %759 = vector.load %arg0[%c8_461, %c0_462, %c0_463] : memref<11x10x311xf32, #tpu.memory_space<vmem>>, vector<1x10x311xf32>
    %760 = vector.shape_cast %759 : vector<1x10x311xf32> to vector<10x311xf32>
    %761 = vector.broadcast %678 : f32 to vector<10x311xf32>
    %762 = arith.mulf %761, %760 : vector<10x311xf32>
    %763 = arith.addf %758, %762 : vector<10x311xf32>
    %c9_464 = arith.constant 9 : index
    %c0_465 = arith.constant 0 : index
    %c0_466 = arith.constant 0 : index
    %764 = vector.load %arg0[%c9_464, %c0_465, %c0_466] : memref<11x10x311xf32, #tpu.memory_space<vmem>>, vector<1x10x311xf32>
    %765 = vector.shape_cast %764 : vector<1x10x311xf32> to vector<10x311xf32>
    %766 = vector.broadcast %679 : f32 to vector<10x311xf32>
    %767 = arith.mulf %766, %765 : vector<10x311xf32>
    %768 = arith.addf %763, %767 : vector<10x311xf32>
    %c10_467 = arith.constant 10 : index
    %c0_468 = arith.constant 0 : index
    %c0_469 = arith.constant 0 : index
    %769 = vector.load %arg0[%c10_467, %c0_468, %c0_469] : memref<11x10x311xf32, #tpu.memory_space<vmem>>, vector<1x10x311xf32>
    %770 = vector.shape_cast %769 : vector<1x10x311xf32> to vector<10x311xf32>
    %771 = vector.broadcast %680 : f32 to vector<10x311xf32>
    %772 = arith.mulf %771, %770 : vector<10x311xf32>
    %773 = arith.addf %768, %772 : vector<10x311xf32>
    %774 = vector.broadcast %686 : f32 to vector<10x311xf32>
    %775 = arith.addf %773, %774 : vector<10x311xf32>
    %cst_470 = arith.constant 1.000000e-01 : f32
    %776 = vector.broadcast %cst_470 : f32 to vector<10x311xf32>
    %777 = arith.mulf %776, %775 : vector<10x311xf32>
    %778 = arith.maximumf %775, %777 : vector<10x311xf32>
    %779 = vector.broadcast %681 : f32 to vector<10x311xf32>
    %780 = arith.mulf %779, %739 : vector<10x311xf32>
    %781 = vector.broadcast %682 : f32 to vector<10x311xf32>
    %782 = arith.mulf %781, %744 : vector<10x311xf32>
    %783 = arith.addf %780, %782 : vector<10x311xf32>
    %784 = vector.broadcast %683 : f32 to vector<10x311xf32>
    %785 = arith.mulf %784, %778 : vector<10x311xf32>
    %786 = arith.addf %783, %785 : vector<10x311xf32>
    %787 = arith.addf %674, %786 : vector<10x311xf32>
    %788 = arith.addf %675, %749 : vector<10x311xf32>
    %789 = vector.extract_strided_slice %787 {offsets = [0, 0], sizes = [10, 310], strides = [1, 1]} : vector<10x311xf32> to vector<10x310xf32>
    %790 = vector.extract_strided_slice %788 {offsets = [0, 1], sizes = [10, 310], strides = [1, 1]} : vector<10x311xf32> to vector<10x310xf32>
    %791 = arith.addf %789, %790 : vector<10x310xf32>
    %c0_471 = arith.constant 0 : index
    %792 = memref.load %arg4[%c0_471] : memref<1xf32, #tpu.memory_space<smem>>
    %793 = vector.broadcast %792 : f32 to vector<10x310xf32>
    %794 = arith.addf %791, %793 : vector<10x310xf32>
    %cst_472 = arith.constant 1.000000e-01 : f32
    %795 = vector.broadcast %cst_472 : f32 to vector<10x310xf32>
    %796 = arith.mulf %795, %794 : vector<10x310xf32>
    %797 = arith.maximumf %794, %796 : vector<10x310xf32>
    %c0_473 = arith.constant 0 : index
    %c0_474 = arith.constant 0 : index
    %798 = vector.load %arg5[%c0_473, %c0_474] : memref<1x310xf32, #tpu.memory_space<vmem>>, vector<1x310xf32>
    %799 = vector.broadcast %798 : vector<1x310xf32> to vector<10x310xf32>
    %800 = arith.mulf %797, %799 : vector<10x310xf32>
    %cst_475 = arith.constant dense<0.000000e+00> : vector<10xf32>
    %801 = vector.multi_reduction <add>, %800, %cst_475 [1] : vector<10x310xf32> to vector<10xf32>
    %802 = vector.shape_cast %801 : vector<10xf32> to vector<10x1xf32>
    %c0_476 = arith.constant 0 : index
    %803 = memref.load %arg6[%c0_476] : memref<1xf32, #tpu.memory_space<smem>>
    %804 = vector.broadcast %803 : f32 to vector<10x1xf32>
    %805 = arith.addf %802, %804 : vector<10x1xf32>
    %c0_477 = arith.constant 0 : index
    %c0_478 = arith.constant 0 : index
    %806 = vector.load %arg7[%c0_477, %c0_478] : memref<10x1xf32, #tpu.memory_space<vmem>>, vector<10x1xf32>
    tpu.vector_store %arg7[%c0_477, %c0_478], %805 {strides = array<i32>} : memref<10x1xf32, #tpu.memory_space<vmem>>, vector<10x1xf32>,
    return
  }
}

</mosaic_0001>

<bundles_post_ra>
// kernel: _discriminator_forward.1
= control target key start
LH: loop header
LB: loop body
LE: loop exit
PB: predicated region body
PF: predicated region fallthrough
CT: control target
= control target key end

     0   :  { %14 = vsyncpa [#allocation5], 0  ;;  %s5339_s0 = inlined_call_operand.vmem [shape: f32[11,10,311], index: 0, kind: input, shape index: {}]   ;;  %s5340_s1 = inlined_call_operand.vmem [shape: f32[7,5], index: 1, kind: input, shape index: {}]   ;;  %s5341_s2 = inlined_call_operand.vmem [shape: f32[7], index: 2, kind: input, shape index: {}]   ;;  %s5342_s3 = inlined_call_operand.vmem [shape: f32[7,5], index: 3, kind: input, shape index: {}]   ;;  %s5343_s4 = inlined_call_operand.<no memory space> [shape: f32[1], index: 4, kind: input, shape index: {}]   ;;  %s5344_s5 = inlined_call_operand.vmem [shape: f32[1,310], index: 5, kind: input, shape index: {}]   ;;  %s5345_s6 = inlined_call_operand.<no memory space> [shape: f32[1], index: 6, kind: input, shape index: {}]   ;;  %s5346_s7 = inlined_call_operand.vmem [shape: f32[10,1], index: 7, kind: output, shape index: {}]  }
   0x1   :  { %15 = vsyncpa [#allocation7], 0  ;;  %s32_s26 = sshll.u32 %s5341_s2, 4  ;;  %s23_s29 = sshll.u32 %s5340_s1, 4  ;;  %s33_s26 = int_to_ptr.vmem [resolvable:$true] %s32_s26  ;;  %s24_s29 = int_to_ptr.vmem [resolvable:$true] %s23_s29 }
   0x2   :  { %s2502_s30 = smov [#allocation6]   ;;  %s2503_s8 = smov [#allocation4]  }
   0x3   :  { %35 = dma.vmem_to_smem %s33_s26, 16, %s2502_s30, [#allocation7]  }
   0x4   :  { %26 = dma.vmem_to_smem %s24_s29, 128, %s2503_s8, [#allocation5]  }
   0x5   :  { %s41_s11 = sshll.u32 %s5342_s3, 4  ;;  %s2504_s12 = smov [#allocation8]   ;;  %s42_s11 = int_to_ptr.vmem [resolvable:$true] %s41_s11 }
   0x6   :  { %44 = dma.vmem_to_smem %s42_s11, 128, %s2504_s12, [#allocation7]  }
   0x7   :  { %2498 = dma.done.wait [#allocation5], 128  }
   0x8   :  { %2499 = vsyncadd [#allocation5], 4294967168 }
   0x9   :  { %2500 = dma.done.wait [#allocation7], 144  }
   0xa   :  { %2501 = vsyncadd [#allocation7], 4294967152 }
   0xb   :  { %63 = sfence }
   0xc   :  { %s64_s2 = sld [smem:[#allocation4]]  ;;  %v2558_v0 = vld [vmem:[%s5339_s0 + $0x28] sm:$0x3]  ;;  %v2563_v1 = vld [vmem:[%s5339_s0 + $0xb8] sm:$0x3]  ;;  %vm2232_vm0 = vcmask 1039360  }
   0xd   :  { %s2312_s13 = sld [smem:[#allocation4 + $0x1]]  ;;  %v2570_v2 = vld [vmem:[%s5339_s0 + $0x58] sm:$0x3]  ;;  %v2575_v3 = vld [vmem:[%s5339_s0 + $0xe8] sm:$0x3]  ;;  %vm2284_vm1 = vcmask 441344  }
   0xe   :  { %s2313_s1 = sld [smem:[#allocation4 + $0x2]]  ;;  %v2584_v5 = vld [vmem:[%s5339_s0 + $0x88] sm:$0x3]  ;;  %v2589_v6 = vld [vmem:[%s5339_s0 + $0x118] sm:$0x3]  ;;  %vm2289_vm2 = vcmask 1041408  }
   0xf   :  { %s2314_s14 = sld [smem:[#allocation4 + $0x3]]  ;;  %v2608_v13 = vld [vmem:[%s5339_s0 + $0x148] sm:$0x3]  ;;  %v2619_v17 = vld [vmem:[%s5339_s0 + $0x178] sm:$0x3]  ;;  %vm2293_vm3 = vcmask 435200  }
  0x10   :  { %s2315_s15 = sld [smem:[#allocation4 + $0x4]]  ;;  %vm2302_vm4 = vcmask 7168   ;;  %vm2304_vm5 = vcmask 1024  }
  0x11   :  { %s2565_s19 = sld [smem:[#allocation8 + $0x3]] }
  0x12   :  { %s2577_s24 = sld [smem:[#allocation8 + $0x4]]  ;;  %v2579_v4 = vstv %s64_s2 }
  0x13   :  { %5661 = vst [vmem:[#allocation11_spill] sm:$0xff] %v2579_v4  ;;  %s2591_s29 = sld [smem:[#allocation6]]  ;;  %v87_v7 = vmul.f32 %v2579_v4, %v2558_v0  ;;  %v2595_v8 = vstv %s2312_s13  ;;  %v173_v9 = vmul.f32 %v2563_v1, %v2579_v4 }
  0x14   :  { %5662 = vst [vmem:[#allocation12_spill] sm:$0xff] %v2595_v8  ;;  %v101_v10 = vmul.f32 %v2570_v2, %v2595_v8  ;;  %v2601_v11 = vstv %s2313_s1  ;;  %v179_v12 = vmul.f32 %v2575_v3, %v2595_v8  ;;  %s2380_s9 = sld [smem:[#allocation4 + $0x80]] }
  0x15   :  { %5663 = vst [vmem:[#allocation13_spill] sm:$0xff] %v2601_v11  ;;  %v121_v14 = vmul.f32 %v2584_v5, %v2601_v11  ;;  %v2612_v15 = vstv %s2314_s14  ;;  %v198_v16 = vmul.f32 %v2589_v6, %v2601_v11  ;;  %s2381_s12 = sld [smem:[#allocation4 + $0x81]] }
  0x16   :  { %5664 = vst [vmem:[#allocation14_spill] sm:$0xff] %v2612_v15  ;;  %v107_v18 = vadd.f32 %v101_v10, %v87_v7  ;;  %v141_v19 = vmul.f32 %v2563_v1, %v2612_v15  ;;  %v2623_v20 = vstv %s2315_s15  ;;  %v185_v21 = vadd.f32 %v179_v12, %v173_v9  ;;  %s2382_s2 = sld [smem:[#allocation4 + $0x82]] }
  0x17   :  { %5665 = vst [vmem:[#allocation15_spill] sm:$0xff] %v2623_v20  ;;  %v217_v22 = vmul.f32 %v2608_v13, %v2612_v15  ;;  %s2383_s13 = sld [smem:[#allocation4 + $0x83]]  ;;  %v161_v24 = vmul.f32 %v2575_v3, %v2623_v20  ;;  %v236_v26 = vmul.f32 %v2619_v17, %v2623_v20  ;;  %v2632_v27 = vstv %s2565_s19 }
  0x18   :  { %v127_v23 = vadd.f32 %v121_v14, %v107_v18  ;;  %v204_v25 = vadd.f32 %v198_v16, %v185_v21  ;;  %s2384_s1 = sld [smem:[#allocation4 + $0x84]]  ;;  %5666 = vst [vmem:[#allocation16_spill] sm:$0xff] %v2632_v27  ;;  %v2635_v30 = vstv %s2577_s24 }
  0x19   :  { %s2388_s14 = sld [smem:[#allocation8 + $0x83]]  ;;  %5667 = vst [vmem:[#allocation17_spill] sm:$0xff] %v2635_v30  ;;  %v2642_v32 = vstv %s2591_s29 }
  0x1a   :  { %v147_v28 = vadd.f32 %v141_v19, %v127_v23  ;;  %v223_v29 = vadd.f32 %v217_v22, %v204_v25  ;;  %s2637_s15 = sld [smem:[#allocation8 + $0x84]]  ;;  %v2639_v31 = vstv %s2380_s9  ;;  %5669 = vst [vmem:[#allocation19_spill] sm:$0xff] %v2642_v32 }
  0x1b   :  { %5668 = vst [vmem:[#allocation18_spill] sm:$0xff] %v2639_v31  ;;  %s2644_s16 = sld [smem:[#allocation6 + $0x1]]  ;;  %v443_v33 = vmul.f32 %v2639_v31, %v2558_v0  ;;  %v2648_v34 = vstv %s2381_s12  ;;  %v501_v35 = vmul.f32 %v2563_v1, %v2639_v31 }
  0x1c   :  { %5670 = vst [vmem:[#allocation20_spill] sm:$0xff] %v2648_v34  ;;  %v167_v36 = vadd.f32 %v161_v24, %v147_v28  ;;  %v242_v37 = vadd.f32 %v236_v26, %v223_v29  ;;  %v450_v38 = vmul.f32 %v2570_v2, %v2648_v34  ;;  %v2654_v39 = vstv %s2382_s2  ;;  %s2391_s17 = sld [smem:[#allocation4 + $0x100]] }
  0x1d   :  { %5671 = vst [vmem:[#allocation21_spill] sm:$0xff] %v2654_v39  ;;  %v463_v40 = vmul.f32 %v2584_v5, %v2654_v39  ;;  %v2658_v41 = vstv %s2383_s13  ;;  %v507_v42 = vmul.f32 %v2575_v3, %v2648_v34  ;;  %v519_v43 = vmul.f32 %v2589_v6, %v2654_v39  ;;  %s2392_s18 = sld [smem:[#allocation4 + $0x101]] }
  0x1e   :  { %5672 = vst [vmem:[#allocation22_spill] sm:$0xff] %v2658_v41  ;;  %v249_v44 = vadd.f32 %v2642_v32, %v167_v36  ;;  %v267_v45 = vadd.f32 %v2642_v32, %v242_v37  ;;  %v456_v46 = vadd.f32 %v450_v38, %v443_v33  ;;  %v476_v47 = vmul.f32 %v2563_v1, %v2658_v41  ;;  %s2668_s3 = sld [smem:[#allocation4 + $0x102]] }
  0x1f   :  { %v2670_v48 = vstv %s2384_s1  ;;  %v513_v49 = vadd.f32 %v507_v42, %v501_v35  ;;  %v531_v50 = vmul.f32 %v2608_v13, %v2658_v41  ;;  %v2674_v51 = vstv %s2388_s14  ;;  %s2394_s19 = sld [smem:[#allocation4 + $0x103]] }
  0x20   :  { %5673 = vst [vmem:[#allocation23_spill] sm:$0xff] %v2670_v48  ;;  %v255_v52 = vmul.f32 0.1, %v249_v44  ;;  %v273_v53 = vmul.f32 0.1, %v267_v45  ;;  %v469_v54 = vadd.f32 %v463_v40, %v456_v46  ;;  %v489_v55 = vmul.f32 %v2575_v3, %v2670_v48  ;;  %s2678_s20 = sld [smem:[#allocation4 + $0x104]] }
  0x21   :  { %5674 = vst [vmem:[#allocation24_spill] sm:$0xff] %v2674_v51  ;;  %v525_v56 = vadd.f32 %v519_v43, %v513_v49  ;;  %v543_v57 = vmul.f32 %v2619_v17, %v2670_v48  ;;  %v2683_v58 = vstv %s2644_s16  ;;  %v2686_v59 = vstv %s2637_s15  ;;  %s2688_s21 = sld [smem:[#allocation8 + $0x103]] }
  0x22   :  { %5675 = vst [vmem:[#allocation25_spill] sm:$0xff] %v2683_v58  ;;  %v2690_v60 = vmax.f32 %v249_v44, %v255_v52  ;;  %v2692_v61 = vmax.f32 %v267_v45, %v273_v53  ;;  %v482_v62 = vadd.f32 %v476_v47, %v469_v54  ;;  %s2694_s22 = sld [smem:[#allocation8 + $0x104]]  ;;  %v2696_v63 = vstv %s2391_s17 }
  0x23   :  { %5676 = vst [vmem:[#allocation26_spill] sm:$0xff] %v2686_v59  ;;  %v537_v7 = vadd.f32 %v531_v50, %v525_v56  ;;  %s2698_s23 = sld [smem:[#allocation6 + $0x2]]  ;;  %v741_v9 = vmul.f32 %v2696_v63, %v2558_v0  ;;  %v2702_v10 = vstv %s2392_s18  ;;  %v799_v12 = vmul.f32 %v2563_v1, %v2696_v63 }
  0x24   :  { %5677 = vst [vmem:[#allocation27_spill] sm:$0xff] %v2690_v60  ;;  %v286_v14 = vmul.f32 %v2632_v27, %v2690_v60  ;;  %v293_v16 = vmul.f32 %v2635_v30, %v2692_v61  ;;  %v495_v18 = vadd.f32 %v489_v55, %v482_v62  ;;  %v748_v19 = vmul.f32 %v2570_v2, %v2702_v10  ;;  %s2712_s24 = sld [smem:[#allocation4 + $0x180]] }
  0x25   :  { %5678 = vst [vmem:[#allocation28_spill] sm:$0xff] %v2692_v61  ;;  %v549_v21 = vadd.f32 %v543_v57, %v537_v7  ;;  %v2715_v22 = vstv %s2668_s3  ;;  %v2717_v23 = vstv %s2394_s19  ;;  %v805_v24 = vmul.f32 %v2575_v3, %v2702_v10  ;;  %s2721_s25 = sld [smem:[#allocation4 + $0x181]] }
  0x26   :  { %5679 = vst [vmem:[#allocation29_spill] sm:$0xff] %v2702_v10  ;;  %v299_v25 = vadd.f32 %v293_v16, %v286_v14  ;;  %v556_v26 = vadd.f32 %v2683_v58, %v495_v18  ;;  %v754_v28 = vadd.f32 %v748_v19, %v741_v9  ;;  %v761_v29 = vmul.f32 %v2584_v5, %v2715_v22  ;;  %s2726_s26 = sld [smem:[#allocation4 + $0x182]] }
  0x27   :  { %5680 = vst [vmem:[#allocation30_spill] sm:$0xff] %v2715_v22  ;;  %v574_v33 = vadd.f32 %v2683_v58, %v549_v21  ;;  %v774_v35 = vmul.f32 %v2563_v1, %v2717_v23  ;;  %v2732_v36 = vstv %s2678_s20  ;;  %v811_v37 = vadd.f32 %v805_v24, %v799_v12  ;;  %s2405_s27 = sld [smem:[#allocation4 + $0x183]] }
  0x28   :  { %5681 = vst [vmem:[#allocation31_spill] sm:$0xff] %v2717_v23  ;;  %v562_v38 = vmul.f32 0.1, %v556_v26  ;;  %v767_v40 = vadd.f32 %v761_v29, %v754_v28  ;;  %v787_v42 = vmul.f32 %v2575_v3, %v2732_v36  ;;  %v817_v43 = vmul.f32 %v2589_v6, %v2715_v22  ;;  %s2738_s28 = sld [smem:[#allocation4 + $0x184]] }
  0x29   :  { %5682 = vst [vmem:[#allocation32_spill] sm:$0xff] %v2732_v36  ;;  %v580_v44 = vmul.f32 0.1, %v574_v33  ;;  %v829_v45 = vmul.f32 %v2608_v13, %v2717_v23  ;;  %v841_v46 = vmul.f32 %v2619_v17, %v2732_v36  ;;  %v2745_v47 = vstv %s2698_s23  ;;  %s2747_s29 = sld [smem:[#allocation8 + $0x183]] }
  0x2a   :  { %v2749_v49 = vmax.f32 %v556_v26, %v562_v38  ;;  %v780_v50 = vadd.f32 %v774_v35, %v767_v40  ;;  %v823_v52 = vadd.f32 %v817_v43, %v811_v37  ;;  %v2752_v53 = vstv %s2688_s21  ;;  %s2754_s30 = sld [smem:[#allocation8 + $0x184]] }
  0x2b   :  { %5684 = vst [vmem:[#allocation34_spill] sm:$0xff] %v2752_v53  ;;  %v2756_v54 = vmax.f32 %v574_v33, %v580_v44  ;;  %v2759_v55 = vstv %s2694_s22  ;;  %s2761_s8 = sld [smem:[#allocation6 + $0x3]]  ;;  %v2764_v56 = vstv %s2712_s24  ;;  %v2767_v57 = vstv %s2721_s25 }
  0x2c   :  { %5683 = vst [vmem:[#allocation33_spill] sm:$0xff] %v2749_v49  ;;  %v593_v62 = vmul.f32 %v2674_v51, %v2749_v49  ;;  %v793_v7 = vadd.f32 %v787_v42, %v780_v50  ;;  %v835_v9 = vadd.f32 %v829_v45, %v823_v52  ;;  %v1039_v12 = vmul.f32 %v2764_v56, %v2558_v0  ;;  %s2773_s9 = sld [smem:[#allocation4 + $0x200]] }
  0x2d   :  { %5685 = vst [vmem:[#allocation35_spill] sm:$0xff] %v2756_v54  ;;  %v600_v14 = vmul.f32 %v2686_v59, %v2756_v54  ;;  %v1046_v16 = vmul.f32 %v2570_v2, %v2767_v57  ;;  %v2780_v18 = vstv %s2726_s26  ;;  %v2782_v19 = vstv %s2405_s27  ;;  %s2784_s10 = sld [smem:[#allocation4 + $0x201]] }
  0x2e   :  { %5686 = vst [vmem:[#allocation36_spill] sm:$0xff] %v2759_v55  ;;  %v847_v21 = vadd.f32 %v841_v46, %v835_v9  ;;  %v854_v24 = vadd.f32 %v2745_v47, %v793_v7  ;;  %v1059_v26 = vmul.f32 %v2584_v5, %v2780_v18  ;;  %v1072_v28 = vmul.f32 %v2563_v1, %v2782_v19  ;;  %s2791_s11 = sld [smem:[#allocation4 + $0x202]] }
  0x2f   :  { %5687 = vst [vmem:[#allocation37_spill] sm:$0xff] %v2764_v56  ;;  %v606_v29 = vadd.f32 %v600_v14, %v593_v62  ;;  %v1052_v33 = vadd.f32 %v1046_v16, %v1039_v12  ;;  %v2794_v35 = vstv %s2738_s28  ;;  %v1097_v37 = vmul.f32 %v2563_v1, %v2764_v56  ;;  %s2798_s12 = sld [smem:[#allocation4 + $0x203]] }
  0x30   :  { %5688 = vst [vmem:[#allocation38_spill] sm:$0xff] %v2767_v57  ;;  %v860_v38 = vmul.f32 0.1, %v854_v24  ;;  %v872_v40 = vadd.f32 %v2745_v47, %v847_v21  ;;  %v1085_v42 = vmul.f32 %v2575_v3, %v2794_v35  ;;  %v1103_v43 = vmul.f32 %v2575_v3, %v2767_v57  ;;  %s2805_s2 = sld [smem:[#allocation4 + $0x204]] }
  0x31   :  { %5689 = vst [vmem:[#allocation39_spill] sm:$0xff] %v2780_v18  ;;  %v723_v44 = vadd.f32 %v606_v29, %v299_v25  ;;  %v1065_v45 = vadd.f32 %v1059_v26, %v1052_v33  ;;  %v1115_v46 = vmul.f32 %v2589_v6, %v2780_v18  ;;  %v1127_v50 = vmul.f32 %v2608_v13, %v2782_v19  ;;  %s2811_s13 = sld [smem:[#allocation8 + $0x203]] }
  0x32   :  { %5690 = vst [vmem:[#allocation40_spill] sm:$0xff] %v2782_v19  ;;  %v2813_v52 = vmax.f32 %v854_v24, %v860_v38  ;;  %v878_v62 = vmul.f32 0.1, %v872_v40  ;;  %v1109_v7 = vadd.f32 %v1103_v43, %v1097_v37  ;;  %v1139_v9 = vmul.f32 %v2619_v17, %v2794_v35  ;;  %s2817_s1 = sld [smem:[#allocation8 + $0x204]] }
  0x33   :  { %5691 = vst [vmem:[#allocation41_spill] sm:$0xff] %v2794_v35  ;;  %v1078_v25 = vadd.f32 %v1072_v28, %v1065_v45  ;;  %v2820_v12 = vstv %s2761_s8  ;;  %v2823_v14 = vstv %s2747_s29  ;;  %v2826_v16 = vstv %s2754_s30  ;;  %s2828_s14 = sld [smem:[#allocation6 + $0x4]] }
  0x34   :  { %5692 = vst [vmem:[#allocation42_spill] sm:$0xff] %v2813_v52  ;;  %v2830_v21 = vmax.f32 %v872_v40, %v878_v62  ;;  %v891_v24 = vmul.f32 %v2752_v53, %v2813_v52  ;;  %v1121_v26 = vadd.f32 %v1115_v46, %v1109_v7  ;;  %v2835_v29 = vstv %s2773_s9  ;;  %s2837_s15 = sld [smem:[#allocation4 + $0x280]] }
  0x35   :  { %5693 = vst [vmem:[#allocation43_spill] sm:$0xff] %v2820_v12  ;;  %v1091_v28 = vadd.f32 %v1085_v42, %v1078_v25  ;;  %v1337_v33 = vmul.f32 %v2835_v29, %v2558_v0  ;;  %v2842_v37 = vstv %s2784_s10  ;;  %v2845_v38 = vstv %s2791_s11  ;;  %s2847_s16 = sld [smem:[#allocation4 + $0x281]] }
  0x36   :  { %5694 = vst [vmem:[#allocation44_spill] sm:$0xff] %v2823_v14  ;;  %v898_v40 = vmul.f32 %v2759_v55, %v2830_v21  ;;  %v1133_v43 = vadd.f32 %v1127_v50, %v1121_v26  ;;  %v1344_v45 = vmul.f32 %v2570_v2, %v2842_v37  ;;  %v1357_v46 = vmul.f32 %v2584_v5, %v2845_v38  ;;  %s2855_s17 = sld [smem:[#allocation4 + $0x282]] }
  0x37   :  { %5695 = vst [vmem:[#allocation45_spill] sm:$0xff] %v2826_v16  ;;  %v1152_v42 = vadd.f32 %v2820_v12, %v1091_v28  ;;  %v2859_v62 = vstv %s2798_s12  ;;  %v2862_v7 = vstv %s2805_s2  ;;  %v1395_v25 = vmul.f32 %v2563_v1, %v2835_v29  ;;  %s2866_s18 = sld [smem:[#allocation4 + $0x283]] }
  0x38   :  { %5696 = vst [vmem:[#allocation46_spill] sm:$0xff] %v2830_v21  ;;  %v904_v50 = vadd.f32 %v898_v40, %v891_v24  ;;  %v1145_v26 = vadd.f32 %v1139_v9, %v1133_v43  ;;  %v1350_v21 = vadd.f32 %v1344_v45, %v1337_v33  ;;  %v1370_v52 = vmul.f32 %v2563_v1, %v2859_v62  ;;  %s2870_s3 = sld [smem:[#allocation4 + $0x284]] }
  0x39   :  { %5697 = vst [vmem:[#allocation47_spill] sm:$0xff] %v2835_v29  ;;  %v1158_v54 = vmul.f32 0.1, %v1152_v42  ;;  %v1383_v28 = vmul.f32 %v2575_v3, %v2862_v7  ;;  %v1401_v49 = vmul.f32 %v2575_v3, %v2842_v37  ;;  %v1413_v24 = vmul.f32 %v2589_v6, %v2845_v38  ;;  %s2881_s19 = sld [smem:[#allocation8 + $0x283]] }
  0x3a   :  { %5698 = vst [vmem:[#allocation48_spill] sm:$0xff] %v2842_v37  ;;  %v1021_v9 = vadd.f32 %v904_v50, %v723_v44  ;;  %v1170_v33 = vadd.f32 %v2820_v12, %v1145_v26  ;;  %v1363_v40 = vadd.f32 %v1357_v46, %v1350_v21  ;;  %v1425_v43 = vmul.f32 %v2608_v13, %v2859_v62  ;;  %s2890_s20 = sld [smem:[#allocation8 + $0x284]] }
  0x3b   :  { %5699 = vst [vmem:[#allocation49_spill] sm:$0xff] %v2845_v38  ;;  %v2883_v45 = vmax.f32 %v1152_v42, %v1158_v54  ;;  %v1407_v61 = vadd.f32 %v1401_v49, %v1395_v25  ;;  %v1437_v60 = vmul.f32 %v2619_v17, %v2862_v7  ;;  %v2888_v55 = vstv %s2828_s14  ;;  %s2898_s21 = sld [smem:[#allocation6 + $0x5]] }
  0x3c   :  { %5700 = vst [vmem:[#allocation50_spill] sm:$0xff] %v2859_v62  ;;  %v1176_v44 = vmul.f32 0.1, %v1170_v33  ;;  %v1376_v50 = vadd.f32 %v1370_v52, %v1363_v40  ;;  %v2893_v21 = vstv %s2811_s13  ;;  %v2896_v46 = vstv %s2817_s1  ;;  %s2908_s22 = sld [smem:[#allocation4 + $0x300]] }
  0x3d   :  { %5701 = vst [vmem:[#allocation51_spill] sm:$0xff] %v2862_v7  ;;  %v1189_v49 = vmul.f32 %v2823_v14, %v2883_v45  ;;  %v1419_v54 = vadd.f32 %v1413_v24, %v1407_v61  ;;  %v2903_v42 = vstv %s2837_s15  ;;  %v2906_v25 = vstv %s2847_s16  ;;  %s2916_s23 = sld [smem:[#allocation4 + $0x301]] }
  0x3e   :  { %5702 = vst [vmem:[#allocation52_spill] sm:$0xff] %v2883_v45  ;;  %v2910_v26 = vmax.f32 %v1170_v33, %v1176_v44  ;;  %v1389_v52 = vadd.f32 %v1383_v28, %v1376_v50  ;;  %v1635_v40 = vmul.f32 %v2903_v42, %v2558_v0  ;;  %v1642_v12 = vmul.f32 %v2570_v2, %v2906_v25  ;;  %s2927_s24 = sld [smem:[#allocation4 + $0x302]] }
  0x3f   :  { %5703 = vst [vmem:[#allocation53_spill] sm:$0xff] %v2888_v55  ;;  %v1431_v7 = vadd.f32 %v1425_v43, %v1419_v54  ;;  %v2919_v45 = vstv %s2855_s17  ;;  %v2922_v61 = vstv %s2866_s18  ;;  %v2925_v24 = vstv %s2870_s3  ;;  %s2934_s25 = sld [smem:[#allocation4 + $0x303]] }
  0x40   :  { %5704 = vst [vmem:[#allocation54_spill] sm:$0xff] %v2893_v21  ;;  %v1196_v28 = vmul.f32 %v2826_v16, %v2910_v26  ;;  %v1450_v33 = vadd.f32 %v2888_v55, %v1389_v52  ;;  %v1648_v44 = vadd.f32 %v1642_v12, %v1635_v40  ;;  %v1655_v50 = vmul.f32 %v2584_v5, %v2919_v45  ;;  %s2942_s26 = sld [smem:[#allocation4 + $0x304]] }
  0x41   :  { %5705 = vst [vmem:[#allocation55_spill] sm:$0xff] %v2896_v46  ;;  %v1443_v43 = vadd.f32 %v1437_v60, %v1431_v7  ;;  %v1668_v54 = vmul.f32 %v2563_v1, %v2922_v61  ;;  %v1681_v14 = vmul.f32 %v2575_v3, %v2925_v24  ;;  %v1693_v53 = vmul.f32 %v2563_v1, %v2903_v42  ;;  %s2964_s27 = sld [smem:[#allocation6 + $0x6]] }
  0x42   :  { %5706 = vst [vmem:[#allocation56_spill] sm:$0xff] %v2903_v42  ;;  %v1202_v12 = vadd.f32 %v1196_v28, %v1189_v49  ;;  %v1456_v52 = vmul.f32 0.1, %v1450_v33  ;;  %v1661_v40 = vadd.f32 %v1655_v50, %v1648_v44  ;;  %v1699_v60 = vmul.f32 %v2575_v3, %v2906_v25  ;;  %s2968_s28 = sld [smem:[#allocation8 + $0x303]] }
  0x43   :  { %5707 = vst [vmem:[#allocation57_spill] sm:$0xff] %v2906_v25  ;;  %v1468_v7 = vadd.f32 %v2888_v55, %v1443_v43  ;;  %v1723_v16 = vmul.f32 %v2608_v13, %v2922_v61  ;;  %v1735_v42 = vmul.f32 %v2619_v17, %v2925_v24  ;;  %v2956_v50 = vstv %s2898_s21  ;;  %s2975_s29 = sld [smem:[#allocation8 + $0x304]] }
  0x44   :  { %5708 = vst [vmem:[#allocation58_spill] sm:$0xff] %v2910_v26  ;;  %v1711_v26 = vmul.f32 %v2589_v6, %v2919_v45  ;;  %v1319_v62 = vadd.f32 %v1202_v12, %v1021_v9  ;;  %v2953_v38 = vmax.f32 %v1450_v33, %v1456_v52  ;;  %v1674_v49 = vadd.f32 %v1668_v54, %v1661_v40  ;;  %s4326_s1 = sld [smem:[#allocation8]] }
  0x45   :  { %5709 = vst [vmem:[#allocation59_spill] sm:$0xff] %v2919_v45  ;;  %v1705_v28 = vadd.f32 %v1699_v60, %v1693_v53  ;;  %v1474_v44 = vmul.f32 0.1, %v1468_v7  ;;  %v2959_v43 = vstv %s2881_s19  ;;  %v2962_v55 = vstv %s2890_s20  ;;  %s2505_s20 = smov 127   ;;  %s4339_s16 = sld [smem:[#allocation8 + $0x1]] }
  0x46   :  { %5710 = vst [vmem:[#allocation60_spill] sm:$0xff] %v2922_v61  ;;  %v1687_v9 = vadd.f32 %v1681_v14, %v1674_v49  ;;  %v2971_v54 = vstv %s2908_s22  ;;  %v2980_v52 = vstv %s2916_s23  ;;  %v2983_v40 = vstv %s2927_s24  ;;  %s4353_s17 = sld [smem:[#allocation8 + $0x2]] }
  0x47   :  { %5711 = vst [vmem:[#allocation61_spill] sm:$0xff] %v2925_v24  ;;  %v1487_v24 = vmul.f32 %v2893_v21, %v2953_v38  ;;  %v1717_v33 = vadd.f32 %v1711_v26, %v1705_v28  ;;  %v2973_v53 = vmax.f32 %v1468_v7, %v1474_v44  ;;  %v1933_v12 = vmul.f32 %v2971_v54, %v2558_v0  ;;  %s4411_s9 = sld [smem:[#allocation8 + $0x80]] }
  0x48   :  { %5712 = vst [vmem:[#allocation62_spill] sm:$0xff] %v2953_v38  ;;  %v1748_v38 = vadd.f32 %v2956_v50, %v1687_v9  ;;  %v1940_v14 = vmul.f32 %v2570_v2, %v2980_v52  ;;  %v1953_v26 = vmul.f32 %v2584_v5, %v2983_v40  ;;  %v2993_v49 = vstv %s2934_s25  ;;  %s4421_s10 = sld [smem:[#allocation8 + $0x81]] }
  0x49   :  { %5713 = vst [vmem:[#allocation63_spill] sm:$0xff] %v2956_v50  ;;  %v1729_v60 = vadd.f32 %v1723_v16, %v1717_v33  ;;  %v1494_v7 = vmul.f32 %v2896_v46, %v2973_v53  ;;  %v2996_v28 = vstv %s2942_s26  ;;  %v1991_v0 = vmul.f32 %v2563_v1, %v2971_v54  ;;  %s4454_s2 = sld [smem:[#allocation8 + $0x82]] }
  0x4a   :  { %5714 = vst [vmem:[#allocation64_spill] sm:$0xff] %v2959_v43  ;;  %v1754_v16 = vmul.f32 0.1, %v1748_v38  ;;  %v1946_v9 = vadd.f32 %v1940_v14, %v1933_v12  ;;  %v1966_v2 = vmul.f32 %v2563_v1, %v2993_v49  ;;  %v1979_v5 = vmul.f32 %v2575_v3, %v2996_v28  ;;  %s4487_s13 = sld [smem:[#allocation8 + $0x101]] }
  0x4b   :  { %5715 = vst [vmem:[#allocation65_spill] sm:$0xff] %v2962_v55  ;;  %v1741_v44 = vadd.f32 %v1735_v42, %v1729_v60  ;;  %v1500_v33 = vadd.f32 %v1494_v7, %v1487_v24  ;;  %v2009_v46 = vmul.f32 %v2589_v6, %v2983_v40  ;;  %v2021_v1 = vmul.f32 %v2608_v13, %v2993_v49  ;;  %v3016_v24 = vld [vmem:[%s5339_s0 + $0x18] sm:$0x3]  ;;  %s4560_s14 = sld [smem:[#allocation8 + $0x180]] }
  0x4c   :  { %5716 = vst [vmem:[#allocation66_spill] sm:$0xff] %v2971_v54  ;;  %v3008_v21 = vmax.f32 %v1748_v38, %v1754_v16  ;;  %v1959_v12 = vadd.f32 %v1953_v26, %v1946_v9  ;;  %v2033_v60 = vmul.f32 %v2619_v17, %v2996_v28  ;;  %v3026_v14 = vstv %s2964_s27  ;;  %v3031_v13 = vld [vmem:[%s5339_s0 + $0x78] sm:$0x3]  ;;  %s4562_s15 = sld [smem:[#allocation8 + $0x181]] }
  0x4d   :  { %5717 = vst [vmem:[#allocation67_spill] sm:$0xff] %v2973_v53  ;;  %v1997_v53 = vmul.f32 %v2575_v3, %v2980_v52  ;;  %v1766_v42 = vadd.f32 %v2956_v50, %v1741_v44  ;;  %v3021_v3 = vld [vmem:[%s5339_s0 + $0x48] sm:$0x3]  ;;  %v1617_v6 = vadd.f32 %v1500_v33, %v1319_v62  ;;  %v3036_v16 = vstv %s2968_s28  ;;  %s4634_s19 = sld [smem:[#allocation8 + $0x201]] }
  0x4e   :  { %5718 = vst [vmem:[#allocation68_spill] sm:$0xff] %v2980_v52  ;;  %v1785_v7 = vmul.f32 %v2959_v43, %v3008_v21  ;;  %v1972_v44 = vadd.f32 %v1966_v2, %v1959_v12  ;;  %v3041_v62 = vld [vmem:[%s5339_s0 + $0xa8] sm:$0x3]  ;;  %v99_v9 = vmul.f32 %v3021_v3, %v2595_v8  ;;  %v3053_v2 = vld [vmem:[%s5339_s0 + $0xd8] sm:$0x3]  ;;  %s4649_s23 = sld [smem:[#allocation8 + $0x202]] }
  0x4f   :  { %5719 = vst [vmem:[#allocation69_spill] sm:$0xff] %v2983_v40  ;;  %v2003_v38 = vadd.f32 %v1997_v53, %v1991_v0  ;;  %v1772_v26 = vmul.f32 0.1, %v1766_v42  ;;  %v3044_v53 = vstv %s2975_s29  ;;  %v85_v0 = vmul.f32 %v2579_v4, %v3016_v24  ;;  %v3058_v33 = vld [vmem:[%s5339_s0 + $0x108] sm:$0x3]  ;;  %s4704_s24 = sld [smem:[#allocation8 + $0x280]] }
  0x50   :  { %5720 = vst [vmem:[#allocation70_spill] sm:$0xff] %v2993_v49  ;;  %v3069_v43 = vld [vmem:[%s5339_s0 + $0x138] sm:$0x3]  ;;  %v177_v40 = vmul.f32 %v3053_v2, %v2595_v8  ;;  %v196_v52 = vmul.f32 %v3058_v33, %v2601_v11  ;;  %s4710_s25 = sld [smem:[#allocation8 + $0x281]] }
  0x51   :  { %5721 = vst [vmem:[#allocation71_spill] sm:$0xff] %v2996_v28  ;;  %v2015_v17 = vadd.f32 %v2009_v46, %v2003_v38  ;;  %v3060_v12 = vmax.f32 %v1766_v42, %v1772_v26  ;;  %v1985_v46 = vadd.f32 %v1979_v5, %v1972_v44  ;;  %v119_v38 = vmul.f32 %v3031_v13, %v2601_v11  ;;  %v3074_v28 = vld [vmem:[%s5339_s0 + $0x168] sm:$0x3]  ;;  %s4725_s26 = sld [smem:[#allocation8 + $0x282]] }
  0x52   :  { %5722 = vst [vmem:[#allocation72_spill] sm:$0xff] %v3008_v21  ;;  %v139_v21 = vmul.f32 %v3041_v62, %v2612_v15  ;;  %v105_v42 = vadd.f32 %v99_v9, %v85_v0  ;;  %v159_v5 = vmul.f32 %v3053_v2, %v2623_v20  ;;  %v171_v26 = vmul.f32 %v3041_v62, %v2579_v4  ;;  %s4770_s27 = sld [smem:[#allocation8 + $0x300]] }
  0x53   :  { %5723 = vst [vmem:[#allocation73_spill] sm:$0xff] %v3026_v14  ;;  %v2027_v50 = vadd.f32 %v2021_v1, %v2015_v17  ;;  %v1792_v44 = vmul.f32 %v2962_v55, %v3060_v12  ;;  %v2046_v49 = vadd.f32 %v3026_v14, %v1985_v46  ;;  %v215_v17 = vmul.f32 %v3069_v43, %v2612_v15  ;;  %s4780_s30 = sld [smem:[#allocation8 + $0x301]] }
  0x54   :  { %5724 = vst [vmem:[#allocation74_spill] sm:$0xff] %v3036_v16  ;;  %v125_v1 = vadd.f32 %v119_v38, %v105_v42  ;;  %v234_v0 = vmul.f32 %v3074_v28, %v2623_v20  ;;  %v183_v61 = vadd.f32 %v177_v40, %v171_v26  ;;  %v441_v46 = vmul.f32 %v2639_v31, %v3016_v24 }
  0x55   :  { %5725 = vst [vmem:[#allocation75_spill] sm:$0xff] %v3044_v53  ;;  %v2039_v54 = vadd.f32 %v2033_v60, %v2027_v50  ;;  %v1798_v9 = vadd.f32 %v1792_v44, %v1785_v7  ;;  %v2052_v4 = vmul.f32 0.1, %v2046_v49  ;;  %v448_v11 = vmul.f32 %v3021_v3, %v2648_v34 }
  0x56   :  { %5726 = vst [vmem:[#allocation76_spill] sm:$0xff] %v3060_v12  ;;  %v145_v55 = vadd.f32 %v139_v21, %v125_v1  ;;  %v461_v50 = vmul.f32 %v3031_v13, %v2654_v39  ;;  %v202_v42 = vadd.f32 %v196_v52, %v183_v61  ;;  %v474_v7 = vmul.f32 %v3041_v62, %v2658_v41 }
  0x57   :  { %v2064_v12 = vadd.f32 %v3026_v14, %v2039_v54  ;;  %v1915_v60 = vadd.f32 %v1798_v9, %v1617_v6  ;;  %v3098_v38 = vmax.f32 %v2046_v49, %v2052_v4  ;;  %v454_v44 = vadd.f32 %v448_v11, %v441_v46 }
  0x58   :  { %v165_v26 = vadd.f32 %v159_v5, %v145_v55  ;;  %v487_v54 = vmul.f32 %v3053_v2, %v2670_v48  ;;  %v221_v1 = vadd.f32 %v215_v17, %v202_v42  ;;  %v499_v14 = vmul.f32 %v3041_v62, %v2639_v31 }
  0x59   :  { %5727 = vst [vmem:[#allocation77_spill] sm:$0xff] %v3098_v38  ;;  %v2070_v40 = vmul.f32 0.1, %v2064_v12  ;;  %v2083_v21 = vmul.f32 %v3036_v16, %v3098_v38  ;;  %v505_v4 = vmul.f32 %v3053_v2, %v2648_v34  ;;  %v467_v49 = vadd.f32 %v461_v50, %v454_v44 }
  0x5a   :  { %v247_v52 = vadd.f32 %v2642_v32, %v165_v26  ;;  %v517_v11 = vmul.f32 %v3058_v33, %v2654_v39  ;;  %v240_v55 = vadd.f32 %v234_v0, %v221_v1  ;;  %v529_v5 = vmul.f32 %v3069_v43, %v2658_v41 }
  0x5b   :  { %v3110_v61 = vmax.f32 %v2064_v12, %v2070_v40  ;;  %v511_v6 = vadd.f32 %v505_v4, %v499_v14  ;;  %v541_v17 = vmul.f32 %v3074_v28, %v2670_v48  ;;  %v480_v12 = vadd.f32 %v474_v7, %v467_v49 }
  0x5c   :  { %v253_v46 = vmul.f32 0.1, %v247_v52  ;;  %v739_v42 = vmul.f32 %v2696_v63, %v3016_v24  ;;  %v265_v50 = vadd.f32 %v2642_v32, %v240_v55  ;;  %v746_v14 = vmul.f32 %v3021_v3, %v2702_v10 }
  0x5d   :  { %5728 = vst [vmem:[#allocation78_spill] sm:$0xff] %v3110_v61  ;;  %v2090_v9 = vmul.f32 %v3044_v53, %v3110_v61  ;;  %v523_v40 = vadd.f32 %v517_v11, %v511_v6  ;;  %v759_v0 = vmul.f32 %v3031_v13, %v2715_v22  ;;  %v493_v1 = vadd.f32 %v487_v54, %v480_v12 }
  0x5e   :  { %v3128_v44 = vmax.f32 %v247_v52, %v253_v46  ;;  %v772_v4 = vmul.f32 %v3041_v62, %v2717_v23  ;;  %v271_v7 = vmul.f32 0.1, %v265_v50  ;;  %v752_v61 = vadd.f32 %v746_v14, %v739_v42 }
  0x5f   :  { %v2096_v26 = vadd.f32 %v2090_v9, %v2083_v21  ;;  %v535_v49 = vadd.f32 %v529_v5, %v523_v40  ;;  %v785_v55 = vmul.f32 %v3053_v2, %v2732_v36  ;;  %v554_v38 = vadd.f32 %v2683_v58, %v493_v1 }
  0x60   :  { %5729 = vst [vmem:[#allocation79_spill] sm:$0xff] %v3128_v44  ;;  %v284_v6 = vmul.f32 %v2632_v27, %v3128_v44  ;;  %v797_v21 = vmul.f32 %v3041_v62, %v2696_v63  ;;  %v3139_v52 = vmax.f32 %v265_v50, %v271_v7  ;;  %v765_v9 = vadd.f32 %v759_v0, %v752_v61 }
  0x61   :  { %v2213_v11 = vadd.f32 %v2096_v26, %v1915_v60  ;;  %v547_v54 = vadd.f32 %v541_v17, %v535_v49  ;;  %v803_v5 = vmul.f32 %v3053_v2, %v2702_v10  ;;  %v560_v46 = vmul.f32 0.1, %v554_v38 }
  0x62   :  { %5730 = vst [vmem:[#allocation80_spill] sm:$0xff] %v3139_v52  ;;  %v815_v60 = vmul.f32 %v3058_v33, %v2715_v22  ;;  %v827_v12 = vmul.f32 %v3069_v43, %v2717_v23  ;;  %v839_v42 = vmul.f32 %v3074_v28, %v2732_v36  ;;  %v291_v17 = vmul.f32 %v2635_v30, %v3139_v52  ;;  %v5734_v52 = vld [vmem:[#allocation49_spill] sm:$0xff] }
  0x63   :  { %2230 = vrot.lane.b32.xlu1 %v2213_v11, %s2505_s20  ;;  %v572_v61 = vadd.f32 %v2683_v58, %v547_v54  ;;  %v778_v50 = vadd.f32 %v772_v4, %v765_v9  ;;  %v809_v40 = vadd.f32 %v803_v5, %v797_v21  ;;  %v3153_v14 = vmax.f32 %v554_v38, %v560_v46 }
  0x64   :  { %v1037_v0 = vmul.f32 %v2764_v56, %v3016_v24  ;;  %v1044_v26 = vmul.f32 %v3021_v3, %v2767_v57  ;;  %v1057_v1 = vmul.f32 %v3031_v13, %v2780_v18  ;;  %v297_v7 = vadd.f32 %v291_v17, %v284_v6 }
  0x65   :  { %5731 = vst [vmem:[#allocation81_spill] sm:$0xff] %v3153_v14  ;;  %v578_v49 = vmul.f32 0.1, %v572_v61  ;;  %v791_v11 = vadd.f32 %v785_v55, %v778_v50  ;;  %v821_v44 = vadd.f32 %v815_v60, %v809_v40  ;;  %v591_v54 = vmul.f32 %v2674_v51, %v3153_v14 }
  0x66   :  { %v1050_v4 = vadd.f32 %v1044_v26, %v1037_v0  ;;  %v1070_v38 = vmul.f32 %v3041_v62, %v2782_v19  ;;  %v1083_v21 = vmul.f32 %v3053_v2, %v2794_v35  ;;  %v1095_v6 = vmul.f32 %v3041_v62, %v2764_v56 }
  0x67   :  { %v3167_v9 = vmax.f32 %v572_v61, %v578_v49  ;;  %v833_v5 = vadd.f32 %v827_v12, %v821_v44  ;;  %v852_v46 = vadd.f32 %v2745_v47, %v791_v11  ;;  %v1101_v60 = vmul.f32 %v3053_v2, %v2767_v57 }
  0x68   :  { %v1063_v55 = vadd.f32 %v1057_v1, %v1050_v4  ;;  %v1113_v17 = vmul.f32 %v3058_v33, %v2780_v18  ;;  %v1125_v50 = vmul.f32 %v3069_v43, %v2782_v19  ;;  %v1137_v12 = vmul.f32 %v3074_v28, %v2794_v35  ;;  %v5735_v35 = vld [vmem:[#allocation50_spill] sm:$0xff]  ;;  %v5737_v19 = vld [vmem:[#allocation51_spill] sm:$0xff] }
  0x69   :  { %5732 = vst [vmem:[#allocation82_spill] sm:$0xff] %v3167_v9  ;;  %v598_v61 = vmul.f32 %v2686_v59, %v3167_v9  ;;  %v845_v40 = vadd.f32 %v839_v42, %v833_v5  ;;  %v858_v44 = vmul.f32 0.1, %v852_v46  ;;  %v1107_v26 = vadd.f32 %v1101_v60, %v1095_v6  ;;  %v5736_v60 = vld [vmem:[#allocation34_spill] sm:$0xff] }
  0x6a   :  { %v1076_v0 = vadd.f32 %v1070_v38, %v1063_v55  ;;  %v1335_v1 = vmul.f32 %v2835_v29, %v3016_v24  ;;  %v1342_v49 = vmul.f32 %v3021_v3, %v2842_v37  ;;  %v1355_v42 = vmul.f32 %v3031_v13, %v5734_v52 }
  0x6b   :  { %v604_v11 = vadd.f32 %v598_v61, %v591_v54  ;;  %v3186_v4 = vmax.f32 %v852_v46, %v858_v44  ;;  %v870_v14 = vadd.f32 %v2745_v47, %v845_v40  ;;  %v1119_v9 = vadd.f32 %v1113_v17, %v1107_v26  ;;  %v5738_v61 = vld [vmem:[#allocation43_spill] sm:$0xff] }
  0x6c   :  { %v1089_v5 = vadd.f32 %v1083_v21, %v1076_v0  ;;  %v1348_v59 = vadd.f32 %v1342_v49, %v1335_v1  ;;  %v1368_v38 = vmul.f32 %v3041_v62, %v5735_v35  ;;  %v1381_v54 = vmul.f32 %v3053_v2, %v5737_v19 }
  0x6d   :  { %5733 = vst [vmem:[#allocation83_spill] sm:$0xff] %v3186_v4  ;;  %v721_v6 = vadd.f32 %v604_v11, %v297_v7  ;;  %v876_v55 = vmul.f32 0.1, %v870_v14  ;;  %v889_v51 = vmul.f32 %v5736_v60, %v3186_v4  ;;  %v1131_v46 = vadd.f32 %v1125_v50, %v1119_v9  ;;  %v5740_v50 = vld [vmem:[#allocation36_spill] sm:$0xff] }
  0x6e   :  { %v1150_v40 = vadd.f32 %v5738_v61, %v1089_v5  ;;  %v1361_v44 = vadd.f32 %v1355_v42, %v1348_v59  ;;  %v1393_v21 = vmul.f32 %v3041_v62, %v2835_v29  ;;  %v1399_v0 = vmul.f32 %v3053_v2, %v2842_v37  ;;  %v5741_v42 = vld [vmem:[#allocation56_spill] sm:$0xff] }
  0x6f   :  { %v3200_v17 = vmax.f32 %v870_v14, %v876_v55  ;;  %v1411_v7 = vmul.f32 %v3058_v33, %v5734_v52  ;;  %v1423_v26 = vmul.f32 %v3069_v43, %v5735_v35  ;;  %v1143_v1 = vadd.f32 %v1137_v12, %v1131_v46  ;;  %v5743_v35 = vld [vmem:[#allocation60_spill] sm:$0xff]  ;;  %v5745_v52 = vld [vmem:[#allocation53_spill] sm:$0xff] }
  0x70   :  { %v1156_v49 = vmul.f32 0.1, %v1150_v40  ;;  %v1374_v9 = vadd.f32 %v1368_v38, %v1361_v44  ;;  %v1435_v59 = vmul.f32 %v3074_v28, %v5737_v19  ;;  %v1405_v14 = vadd.f32 %v1399_v0, %v1393_v21 }
  0x71   :  { %5739 = vst [vmem:[#allocation84_spill] sm:$0xff] %v3200_v17  ;;  %v896_v11 = vmul.f32 %v5740_v50, %v3200_v17  ;;  %v1633_v5 = vmul.f32 %v5741_v42, %v3016_v24  ;;  %v1640_v55 = vmul.f32 %v3021_v3, %v2906_v25  ;;  %v1168_v60 = vadd.f32 %v5738_v61, %v1143_v1  ;;  %v5744_v17 = vld [vmem:[#allocation44_spill] sm:$0xff] }
  0x72   :  { %v3216_v4 = vmax.f32 %v1150_v40, %v1156_v49  ;;  %v1387_v12 = vadd.f32 %v1381_v54, %v1374_v9  ;;  %v1653_v38 = vmul.f32 %v3031_v13, %v2919_v45  ;;  %v1417_v44 = vadd.f32 %v1411_v7, %v1405_v14  ;;  %v5746_v40 = vld [vmem:[#allocation61_spill] sm:$0xff] }
  0x73   :  { %v902_v46 = vadd.f32 %v896_v11, %v889_v51  ;;  %v1646_v19 = vadd.f32 %v1640_v55, %v1633_v5  ;;  %v1666_v21 = vmul.f32 %v3041_v62, %v5743_v35  ;;  %v1174_v0 = vmul.f32 0.1, %v1168_v60 }
  0x74   :  { %5742 = vst [vmem:[#allocation85_spill] sm:$0xff] %v3216_v4  ;;  %v1187_v50 = vmul.f32 %v5744_v17, %v3216_v4  ;;  %v1448_v37 = vadd.f32 %v5745_v52, %v1387_v12  ;;  %v1679_v49 = vmul.f32 %v3053_v2, %v5746_v40  ;;  %v1429_v54 = vadd.f32 %v1423_v26, %v1417_v44 }
  0x75   :  { %v1019_v1 = vadd.f32 %v902_v46, %v721_v6  ;;  %v1659_v9 = vadd.f32 %v1653_v38, %v1646_v19  ;;  %v1691_v51 = vmul.f32 %v3041_v62, %v5741_v42  ;;  %v3230_v7 = vmax.f32 %v1168_v60, %v1174_v0  ;;  %v5748_v6 = vld [vmem:[#allocation45_spill] sm:$0xff]  ;;  %v5750_v46 = vld [vmem:[#allocation66_spill] sm:$0xff] }
  0x76   :  { %v1454_v11 = vmul.f32 0.1, %v1448_v37  ;;  %v1697_v14 = vmul.f32 %v3053_v2, %v2906_v25  ;;  %v1709_v5 = vmul.f32 %v3058_v33, %v2919_v45  ;;  %v1441_v55 = vadd.f32 %v1435_v59, %v1429_v54  ;;  %v5751_v59 = vld [vmem:[#allocation68_spill] sm:$0xff]  ;;  %v5752_v54 = vld [vmem:[#allocation69_spill] sm:$0xff] }
  0x77   :  { %5747 = vst [vmem:[#allocation86_spill] sm:$0xff] %v3230_v7  ;;  %v1672_v12 = vadd.f32 %v1666_v21, %v1659_v9  ;;  %v1721_v4 = vmul.f32 %v3069_v43, %v5743_v35  ;;  %v1733_v19 = vmul.f32 %v3074_v28, %v5746_v40  ;;  %v1194_v26 = vmul.f32 %v5748_v6, %v3230_v7  ;;  %v5753_v40 = vld [vmem:[#allocation54_spill] sm:$0xff] }
  0x78   :  { %v3242_v60 = vmax.f32 %v1448_v37, %v1454_v11  ;;  %v1703_v38 = vadd.f32 %v1697_v14, %v1691_v51  ;;  %v1931_v44 = vmul.f32 %v5750_v46, %v3016_v24  ;;  %v1466_v0 = vadd.f32 %v5745_v52, %v1441_v55  ;;  %v5754_v37 = vld [vmem:[#allocation70_spill] sm:$0xff]  ;;  %v5755_v14 = vld [vmem:[#allocation63_spill] sm:$0xff] }
  0x79   :  { %v1685_v17 = vadd.f32 %v1679_v49, %v1672_v12  ;;  %v1938_v21 = vmul.f32 %v3021_v3, %v5751_v59  ;;  %v1951_v9 = vmul.f32 %v3031_v13, %v5752_v54  ;;  %v1200_v35 = vadd.f32 %v1194_v26, %v1187_v50  ;;  %v5756_v55 = vld [vmem:[#allocation71_spill] sm:$0xff] }
  0x7a   :  { %5749 = vst [vmem:[#allocation87_spill] sm:$0xff] %v3242_v60  ;;  %v1485_v45 = vmul.f32 %v5753_v40, %v3242_v60  ;;  %v1715_v7 = vadd.f32 %v1709_v5, %v1703_v38  ;;  %v1964_v51 = vmul.f32 %v3041_v62, %v5754_v37  ;;  %v1472_v11 = vmul.f32 0.1, %v1466_v0  ;;  %v3265_v5 = vld [vmem:[%s5339_s0 + $0x20] sm:$0x3] }
  0x7b   :  { %v1746_v24 = vadd.f32 %v5755_v14, %v1685_v17  ;;  %v1944_v6 = vadd.f32 %v1938_v21, %v1931_v44  ;;  %v1977_v49 = vmul.f32 %v3053_v2, %v5756_v55  ;;  %v1317_v12 = vadd.f32 %v1200_v35, %v1019_v1  ;;  %v3274_v35 = vld [vmem:[%s5339_s0 + $0x50] sm:$0x3] }
  0x7c   :  { %v1727_v3 = vadd.f32 %v1721_v4, %v1715_v7  ;;  %v1989_v13 = vmul.f32 %v3041_v62, %v5750_v46  ;;  %v1995_v50 = vmul.f32 %v3053_v2, %v5751_v59  ;;  %v3267_v26 = vmax.f32 %v1466_v0, %v1472_v11  ;;  %v3279_v62 = vld [vmem:[%s5339_s0 + $0x80] sm:$0x3] }
  0x7d   :  { %v1752_v17 = vmul.f32 0.1, %v1746_v24  ;;  %v1957_v38 = vadd.f32 %v1951_v9, %v1944_v6  ;;  %v2007_v44 = vmul.f32 %v3058_v33, %v5752_v54  ;;  %v2019_v1 = vmul.f32 %v3069_v43, %v5754_v37  ;;  %v5758_v33 = vld [vmem:[#allocation55_spill] sm:$0xff] }
  0x7e   :  { %5757 = vst [vmem:[#allocation88_spill] sm:$0xff] %v3267_v26  ;;  %v1739_v2 = vadd.f32 %v1733_v19, %v1727_v3  ;;  %v2001_v4 = vadd.f32 %v1995_v50, %v1989_v13  ;;  %v2031_v7 = vmul.f32 %v3074_v28, %v5756_v55  ;;  %v1492_v6 = vmul.f32 %v5758_v33, %v3267_v26  ;;  %v5760_v9 = vld [vmem:[#allocation11_spill] sm:$0xff]  ;;  %v5761_v3 = vld [vmem:[#allocation13_spill] sm:$0xff]  ;;  %v5762_v13 = vld [vmem:[#allocation64_spill] sm:$0xff] }
  0x7f   :  { %v3287_v0 = vmax.f32 %v1746_v24, %v1752_v17  ;;  %v1970_v21 = vadd.f32 %v1964_v51, %v1957_v38  ;;  %v86_v11 = vmul.f32 %v5760_v9, %v3265_v5  ;;  %v100_v19 = vmul.f32 %v3274_v35, %v2595_v8  ;;  %v3299_v28 = vld [vmem:[%s5339_s0 + $0xb0] sm:$0x3]  ;;  %v3304_v51 = vld [vmem:[%s5339_s0 + $0xe0] sm:$0x3] }
  0x80   :  { %v1764_v60 = vadd.f32 %v5755_v14, %v1739_v2  ;;  %v2013_v40 = vadd.f32 %v2007_v44, %v2001_v4  ;;  %v120_v43 = vmul.f32 %v3279_v62, %v5761_v3  ;;  %v1498_v24 = vadd.f32 %v1492_v6, %v1485_v45  ;;  %v3313_v44 = vld [vmem:[%s5339_s0 + $0x110] sm:$0x3]  ;;  %v3320_v45 = vld [vmem:[%s5339_s0 + $0x140] sm:$0x3] }
  0x81   :  { %5759 = vst [vmem:[#allocation89_spill] sm:$0xff] %v3287_v0  ;;  %v1783_v50 = vmul.f32 %v5762_v13, %v3287_v0  ;;  %v1983_v17 = vadd.f32 %v1977_v49, %v1970_v21  ;;  %v140_v38 = vmul.f32 %v3299_v28, %v2612_v15  ;;  %v106_v26 = vadd.f32 %v100_v19, %v86_v11  ;;  %v3325_v49 = vld [vmem:[%s5339_s0 + $0x170] sm:$0x3] }
  0x82   :  { %v1770_v2 = vmul.f32 0.1, %v1764_v60  ;;  %v2025_v4 = vadd.f32 %v2019_v1, %v2013_v40  ;;  %v160_v33 = vmul.f32 %v3304_v51, %v2623_v20  ;;  %v1615_v6 = vadd.f32 %v1498_v24, %v1317_v12  ;;  %v5763_v21 = vld [vmem:[#allocation73_spill] sm:$0xff] }
  0x83   :  { %v2044_v0 = vadd.f32 %v5763_v21, %v1983_v17  ;;  %v172_v40 = vmul.f32 %v3299_v28, %v5760_v9  ;;  %v178_v1 = vmul.f32 %v3304_v51, %v2595_v8  ;;  %v126_v13 = vadd.f32 %v120_v43, %v106_v26  ;;  %v5765_v17 = vld [vmem:[#allocation65_spill] sm:$0xff] }
  0x84   :  { %v3332_v11 = vmax.f32 %v1764_v60, %v1770_v2  ;;  %v2037_v19 = vadd.f32 %v2031_v7, %v2025_v4  ;;  %v197_v14 = vmul.f32 %v3313_v44, %v5761_v3  ;;  %v216_v12 = vmul.f32 %v3320_v45, %v2612_v15 }
  0x85   :  { %v2050_v55 = vmul.f32 0.1, %v2044_v0  ;;  %v184_v37 = vadd.f32 %v178_v1, %v172_v40  ;;  %v235_v24 = vmul.f32 %v3325_v49, %v2623_v20  ;;  %v146_v60 = vadd.f32 %v140_v38, %v126_v13 }
  0x86   :  { %5764 = vst [vmem:[#allocation90_spill] sm:$0xff] %v3332_v11  ;;  %v1790_v9 = vmul.f32 %v5765_v17, %v3332_v11  ;;  %v2062_v8 = vadd.f32 %v5763_v21, %v2037_v19  ;;  %v442_v26 = vmul.f32 %v2639_v31, %v3265_v5  ;;  %v449_v2 = vmul.f32 %v3274_v35, %v2648_v34 }
  0x87   :  { %v3345_v7 = vmax.f32 %v2044_v0, %v2050_v55  ;;  %v203_v43 = vadd.f32 %v197_v14, %v184_v37  ;;  %v462_v4 = vmul.f32 %v3279_v62, %v2654_v39  ;;  %v166_v20 = vadd.f32 %v160_v33, %v146_v60 }
  0x88   :  { %v1796_v40 = vadd.f32 %v1790_v9, %v1783_v50  ;;  %v2068_v1 = vmul.f32 0.1, %v2062_v8  ;;  %v475_v11 = vmul.f32 %v3299_v28, %v2658_v41  ;;  %v455_v19 = vadd.f32 %v449_v2, %v442_v26 }
  0x89   :  { %5766 = vst [vmem:[#allocation91_spill] sm:$0xff] %v3345_v7  ;;  %v2081_v13 = vmul.f32 %v3036_v16, %v3345_v7  ;;  %v222_v38 = vadd.f32 %v216_v12, %v203_v43  ;;  %v488_v37 = vmul.f32 %v3304_v51, %v2670_v48  ;;  %v248_v0 = vadd.f32 %v2642_v32, %v166_v20 }
  0x8a   :  { %v1913_v14 = vadd.f32 %v1796_v40, %v1615_v6  ;;  %v3357_v55 = vmax.f32 %v2062_v8, %v2068_v1  ;;  %v500_v9 = vmul.f32 %v3299_v28, %v2639_v31  ;;  %v468_v50 = vadd.f32 %v462_v4, %v455_v19 }
  0x8b   :  { %v241_v33 = vadd.f32 %v235_v24, %v222_v38  ;;  %v506_v60 = vmul.f32 %v3304_v51, %v2648_v34  ;;  %v518_v12 = vmul.f32 %v3313_v44, %v2654_v39  ;;  %v254_v43 = vmul.f32 0.1, %v248_v0 }
  0x8c   :  { %5767 = vst [vmem:[#allocation92_spill] sm:$0xff] %v3357_v55  ;;  %v2088_v26 = vmul.f32 %v3044_v53, %v3357_v55  ;;  %v530_v8 = vmul.f32 %v3320_v45, %v2658_v41  ;;  %v542_v20 = vmul.f32 %v3325_v49, %v2670_v48  ;;  %v481_v24 = vadd.f32 %v475_v11, %v468_v50 }
  0x8d   :  { %v266_v6 = vadd.f32 %v2642_v32, %v241_v33  ;;  %v512_v2 = vadd.f32 %v506_v60, %v500_v9  ;;  %v740_v4 = vmul.f32 %v2696_v63, %v3265_v5  ;;  %v3375_v1 = vmax.f32 %v248_v0, %v254_v43 }
  0x8e   :  { %v2094_v40 = vadd.f32 %v2088_v26, %v2081_v13  ;;  %v747_v38 = vmul.f32 %v3274_v35, %v2702_v10  ;;  %v760_v19 = vmul.f32 %v3279_v62, %v2715_v22  ;;  %v494_v7 = vadd.f32 %v488_v37, %v481_v24 }
  0x8f   :  { %5768 = vst [vmem:[#allocation93_spill] sm:$0xff] %v3375_v1  ;;  %v272_v55 = vmul.f32 0.1, %v266_v6  ;;  %v524_v53 = vadd.f32 %v518_v12, %v512_v2  ;;  %v773_v33 = vmul.f32 %v3299_v28, %v2717_v23  ;;  %v285_v9 = vmul.f32 %v2632_v27, %v3375_v1  ;;  %v5771_v1 = vld [vmem:[#allocation40_spill] sm:$0xff] }
  0x90   :  { %v2211_v11 = vadd.f32 %v2094_v40, %v1913_v14  ;;  %v753_v50 = vadd.f32 %v747_v38, %v740_v4  ;;  %v786_v13 = vmul.f32 %v3304_v51, %v2732_v36  ;;  %v555_v26 = vadd.f32 %v2683_v58, %v494_v7 }
  0x91   :  { %v3387_v0 = vmax.f32 %v266_v6, %v272_v55  ;;  %v536_v60 = vadd.f32 %v530_v8, %v524_v53  ;;  %v798_v37 = vmul.f32 %v3299_v28, %v2696_v63  ;;  %v804_v14 = vmul.f32 %v3304_v51, %v2702_v10 }
  0x92   :  { %2226 = vrot.lane.b32.xlu0 %v2211_v11, %s2505_s20  ;;  %v766_v12 = vadd.f32 %v760_v19, %v753_v50  ;;  %v816_v43 = vmul.f32 %v3313_v44, %v2715_v22  ;;  %v828_v24 = vmul.f32 %v3320_v45, %v2717_v23  ;;  %v561_v7 = vmul.f32 0.1, %v555_v26 }
  0x93   :  { %5769 = vst [vmem:[#allocation94_spill] sm:$0xff] %v3387_v0  ;;  %v292_v53 = vmul.f32 %v2635_v30, %v3387_v0  ;;  %v548_v55 = vadd.f32 %v542_v20, %v536_v60  ;;  %v840_v8 = vmul.f32 %v3325_v49, %v2732_v36  ;;  %v810_v2 = vadd.f32 %v804_v14, %v798_v37  ;;  %v5773_v30 = vld [vmem:[#allocation41_spill] sm:$0xff] }
  0x94   :  { %v779_v6 = vadd.f32 %v773_v33, %v766_v12  ;;  %v1038_v4 = vmul.f32 %v2764_v56, %v3265_v5  ;;  %v1045_v40 = vmul.f32 %v3274_v35, %v2767_v57  ;;  %v3407_v19 = vmax.f32 %v555_v26, %v561_v7  ;;  %v5772_v12 = vld [vmem:[#allocation24_spill] sm:$0xff] }
  0x95   :  { %v298_v38 = vadd.f32 %v292_v53, %v285_v9  ;;  %v573_v11 = vadd.f32 %v2683_v58, %v548_v55  ;;  %v1058_v20 = vmul.f32 %v3279_v62, %v2780_v18  ;;  %v822_v60 = vadd.f32 %v816_v43, %v810_v2 }
  0x96   :  { %5770 = vst [vmem:[#allocation95_spill] sm:$0xff] %v3407_v19  ;;  %v792_v50 = vadd.f32 %v786_v13, %v779_v6  ;;  %v1051_v0 = vadd.f32 %v1045_v40, %v1038_v4  ;;  %v1071_v33 = vmul.f32 %v3299_v28, %v5771_v1  ;;  %v592_v14 = vmul.f32 %v5772_v12, %v3407_v19  ;;  %v5777_v12 = vld [vmem:[#allocation49_spill] sm:$0xff] }
  0x97   :  { %v579_v37 = vmul.f32 0.1, %v573_v11  ;;  %v1084_v9 = vmul.f32 %v3304_v51, %v5773_v30  ;;  %v1096_v26 = vmul.f32 %v3299_v28, %v2764_v56  ;;  %v834_v53 = vadd.f32 %v828_v24, %v822_v60  ;;  %v5781_v56 = vld [vmem:[#allocation34_spill] sm:$0xff] }
  0x98   :  { %v853_v55 = vadd.f32 %v2745_v47, %v792_v50  ;;  %v1064_v7 = vadd.f32 %v1058_v20, %v1051_v0  ;;  %v1102_v13 = vmul.f32 %v3304_v51, %v2767_v57  ;;  %v1114_v6 = vmul.f32 %v3313_v44, %v2780_v18  ;;  %v5775_v0 = vld [vmem:[#allocation26_spill] sm:$0xff]  ;;  %v5776_v50 = vld [vmem:[#allocation48_spill] sm:$0xff] }
  0x99   :  { %v3423_v43 = vmax.f32 %v573_v11, %v579_v37  ;;  %v1126_v2 = vmul.f32 %v3320_v45, %v5771_v1  ;;  %v1138_v4 = vmul.f32 %v3325_v49, %v5773_v30  ;;  %v846_v40 = vadd.f32 %v840_v8, %v834_v53 }
  0x9a   :  { %v859_v19 = vmul.f32 0.1, %v853_v55  ;;  %v1077_v24 = vadd.f32 %v1071_v33, %v1064_v7  ;;  %v1108_v60 = vadd.f32 %v1102_v13, %v1096_v26  ;;  %v1336_v11 = vmul.f32 %v2835_v29, %v3265_v5  ;;  %v5779_v7 = vld [vmem:[#allocation50_spill] sm:$0xff] }
  0x9b   :  { %5774 = vst [vmem:[#allocation96_spill] sm:$0xff] %v3423_v43  ;;  %v599_v20 = vmul.f32 %v5775_v0, %v3423_v43  ;;  %v1343_v37 = vmul.f32 %v3274_v35, %v5776_v50  ;;  %v1356_v18 = vmul.f32 %v3279_v62, %v5777_v12  ;;  %v871_v30 = vadd.f32 %v2745_v47, %v846_v40  ;;  %v5780_v43 = vld [vmem:[#allocation51_spill] sm:$0xff] }
  0x9c   :  { %v3439_v1 = vmax.f32 %v853_v55, %v859_v19  ;;  %v1090_v8 = vadd.f32 %v1084_v9, %v1077_v24  ;;  %v1120_v53 = vadd.f32 %v1114_v6, %v1108_v60  ;;  %v1369_v13 = vmul.f32 %v3299_v28, %v5779_v7 }
  0x9d   :  { %v605_v33 = vadd.f32 %v599_v20, %v592_v14  ;;  %v1349_v26 = vadd.f32 %v1343_v37, %v1336_v11  ;;  %v1382_v0 = vmul.f32 %v3304_v51, %v5780_v43  ;;  %v877_v57 = vmul.f32 0.1, %v871_v30 }
  0x9e   :  { %5778 = vst [vmem:[#allocation49_spill] sm:$0xff] %v3439_v1  ;;  %v890_v36 = vmul.f32 %v5781_v56, %v3439_v1  ;;  %v1132_v58 = vadd.f32 %v1126_v2, %v1120_v53  ;;  %v1151_v19 = vadd.f32 %v5738_v61, %v1090_v8  ;;  %v1394_v9 = vmul.f32 %v3299_v28, %v2835_v29  ;;  %v5785_v53 = vld [vmem:[#allocation59_spill] sm:$0xff] }
  0x9f   :  { %v722_v55 = vadd.f32 %v605_v33, %v298_v38  ;;  %v1362_v23 = vadd.f32 %v1356_v18, %v1349_v26  ;;  %v1400_v14 = vmul.f32 %v3304_v51, %v5776_v50  ;;  %v3453_v6 = vmax.f32 %v871_v30, %v877_v57  ;;  %v5783_v38 = vld [vmem:[#allocation36_spill] sm:$0xff] }
  0xa0   :  { %v1144_v40 = vadd.f32 %v1138_v4, %v1132_v58  ;;  %v1157_v24 = vmul.f32 0.1, %v1151_v19  ;;  %v1412_v60 = vmul.f32 %v3313_v44, %v5777_v12  ;;  %v1424_v2 = vmul.f32 %v3320_v45, %v5779_v7 }
  0xa1   :  { %5782 = vst [vmem:[#allocation97_spill] sm:$0xff] %v3453_v6  ;;  %v1375_v20 = vadd.f32 %v1369_v13, %v1362_v23  ;;  %v1406_v11 = vadd.f32 %v1400_v14, %v1394_v9  ;;  %v1436_v18 = vmul.f32 %v3325_v49, %v5780_v43  ;;  %v897_v37 = vmul.f32 %v5783_v38, %v3453_v6  ;;  %v5786_v9 = vld [vmem:[#allocation44_spill] sm:$0xff] }
  0xa2   :  { %v3463_v8 = vmax.f32 %v1151_v19, %v1157_v24  ;;  %v1169_v30 = vadd.f32 %v5738_v61, %v1144_v40  ;;  %v1634_v58 = vmul.f32 %v5741_v42, %v3265_v5  ;;  %v1641_v23 = vmul.f32 %v3274_v35, %v2906_v25  ;;  %v5787_v19 = vld [vmem:[#allocation60_spill] sm:$0xff] }
  0xa3   :  { %v1388_v57 = vadd.f32 %v1382_v0, %v1375_v20  ;;  %v1418_v4 = vadd.f32 %v1412_v60, %v1406_v11  ;;  %v1654_v33 = vmul.f32 %v3279_v62, %v5785_v53  ;;  %v903_v26 = vadd.f32 %v897_v37, %v890_v36  ;;  %v5788_v0 = vld [vmem:[#allocation61_spill] sm:$0xff] }
  0xa4   :  { %5784 = vst [vmem:[#allocation98_spill] sm:$0xff] %v3463_v8  ;;  %v1175_v13 = vmul.f32 0.1, %v1169_v30  ;;  %v1188_v14 = vmul.f32 %v5786_v9, %v3463_v8  ;;  %v1667_v24 = vmul.f32 %v3299_v28, %v5787_v19  ;;  %v1647_v1 = vadd.f32 %v1641_v23, %v1634_v58  ;;  %v5790_v58 = vld [vmem:[#allocation45_spill] sm:$0xff] }
  0xa5   :  { %v1430_v40 = vadd.f32 %v1424_v2, %v1418_v4  ;;  %v1449_v6 = vadd.f32 %v5745_v52, %v1388_v57  ;;  %v1680_v60 = vmul.f32 %v3304_v51, %v5788_v0  ;;  %v1020_v20 = vadd.f32 %v903_v26, %v722_v55 }
  0xa6   :  { %v3479_v11 = vmax.f32 %v1169_v30, %v1175_v13  ;;  %v1692_v36 = vmul.f32 %v3299_v28, %v5741_v42  ;;  %v1698_v37 = vmul.f32 %v3304_v51, %v2906_v25  ;;  %v1660_v38 = vadd.f32 %v1654_v33, %v1647_v1 }
  0xa7   :  { %v1442_v8 = vadd.f32 %v1436_v18, %v1430_v40  ;;  %v1455_v9 = vmul.f32 0.1, %v1449_v6  ;;  %v1710_v2 = vmul.f32 %v3313_v44, %v5785_v53  ;;  %v1722_v55 = vmul.f32 %v3320_v45, %v5787_v19 }
  0xa8   :  { %5789 = vst [vmem:[#allocation99_spill] sm:$0xff] %v3479_v11  ;;  %v1195_v57 = vmul.f32 %v5790_v58, %v3479_v11  ;;  %v1704_v4 = vadd.f32 %v1698_v37, %v1692_v36  ;;  %v1734_v30 = vmul.f32 %v3325_v49, %v5788_v0  ;;  %v1673_v18 = vadd.f32 %v1667_v24, %v1660_v38  ;;  %v5792_v11 = vld [vmem:[#allocation54_spill] sm:$0xff] }
  0xa9   :  { %v3493_v23 = vmax.f32 %v1449_v6, %v1455_v9  ;;  %v1467_v26 = vadd.f32 %v5745_v52, %v1442_v8  ;;  %v1932_v1 = vmul.f32 %v5750_v46, %v3265_v5  ;;  %v1939_v40 = vmul.f32 %v3274_v35, %v5751_v59  ;;  %v5793_v9 = vld [vmem:[#allocation70_spill] sm:$0xff]  ;;  %v5794_v5 = vld [vmem:[#allocation71_spill] sm:$0xff] }
  0xaa   :  { %v1201_v33 = vadd.f32 %v1195_v57, %v1188_v14  ;;  %v1716_v13 = vadd.f32 %v1710_v2, %v1704_v4  ;;  %v1952_v36 = vmul.f32 %v3279_v62, %v5752_v54  ;;  %v1686_v6 = vadd.f32 %v1680_v60, %v1673_v18  ;;  %v5796_v35 = vld [vmem:[#allocation63_spill] sm:$0xff] }
  0xab   :  { %5791 = vst [vmem:[#allocation100_spill] sm:$0xff] %v3493_v23  ;;  %v1473_v37 = vmul.f32 0.1, %v1467_v26  ;;  %v1486_v58 = vmul.f32 %v5792_v11, %v3493_v23  ;;  %v1965_v8 = vmul.f32 %v3299_v28, %v5793_v9  ;;  %v1945_v0 = vadd.f32 %v1939_v40, %v1932_v1  ;;  %v3518_v60 = vld [vmem:[%s5339_s0] sm:$0xff] }
  0xac   :  { %v1318_v38 = vadd.f32 %v1201_v33, %v1020_v20  ;;  %v1728_v24 = vadd.f32 %v1722_v55, %v1716_v13  ;;  %v1978_v14 = vmul.f32 %v3304_v51, %v5794_v5  ;;  %v1747_v57 = vadd.f32 %v5796_v35, %v1686_v6  ;;  %v3523_v20 = vld [vmem:[%s5339_s0 + $0x30] sm:$0xff]  ;;  %v5797_v1 = vld [vmem:[#allocation55_spill] sm:$0xff] }
  0xad   :  { %v3508_v2 = vmax.f32 %v1467_v26, %v1473_v37  ;;  %v1990_v62 = vmul.f32 %v3299_v28, %v5750_v46  ;;  %v1996_v4 = vmul.f32 %v3304_v51, %v5751_v59  ;;  %v1958_v26 = vadd.f32 %v1952_v36, %v1945_v0  ;;  %v3532_v51 = vld [vmem:[%s5339_s0 + $0x60] sm:$0xff] }
  0xae   :  { %v1740_v55 = vadd.f32 %v1734_v30, %v1728_v24  ;;  %v2008_v18 = vmul.f32 %v3313_v44, %v5752_v54  ;;  %v2020_v28 = vmul.f32 %v3320_v45, %v5793_v9  ;;  %v1753_v13 = vmul.f32 0.1, %v1747_v57  ;;  %v5798_v44 = vld [vmem:[#allocation11_spill] sm:$0xff]  ;;  %v5799_v45 = vld [vmem:[#allocation12_spill] sm:$0xff] }
  0xaf   :  { %5795 = vst [vmem:[#allocation101_spill] sm:$0xff] %v3508_v2  ;;  %v1493_v33 = vmul.f32 %v5797_v1, %v3508_v2  ;;  %v2002_v40 = vadd.f32 %v1996_v4, %v1990_v62  ;;  %v2032_v30 = vmul.f32 %v3325_v49, %v5794_v5  ;;  %v1971_v36 = vadd.f32 %v1965_v8, %v1958_v26  ;;  %v3550_v49 = vld [vmem:[%s5339_s0 + $0x90] sm:$0xff]  ;;  %v3567_v26 = vld [vmem:[%s5339_s0 + $0x120] sm:$0xff] }
  0xb0   :  { %v1765_v0 = vadd.f32 %v5796_v35, %v1740_v55  ;;  %v82_v37 = vmul.f32 %v5798_v44, %v3518_v60  ;;  %v96_v6 = vmul.f32 %v3523_v20, %v5799_v45  ;;  %v3543_v23 = vmax.f32 %v1747_v57, %v1753_v13  ;;  %v3562_v57 = vld [vmem:[%s5339_s0 + $0xf0] sm:$0xff] }
  0xb1   :  { %v1499_v24 = vadd.f32 %v1493_v33, %v1486_v58  ;;  %v2014_v9 = vadd.f32 %v2008_v18, %v2002_v40  ;;  %v116_v2 = vmul.f32 %v3532_v51, %v5761_v3  ;;  %v1984_v8 = vadd.f32 %v1978_v14, %v1971_v36  ;;  %v3557_v58 = vld [vmem:[%s5339_s0 + $0xc0] sm:$0xff]  ;;  %v5801_v18 = vld [vmem:[#allocation64_spill] sm:$0xff] }
  0xb2   :  { %5800 = vst [vmem:[#allocation102_spill] sm:$0xff] %v3543_v23  ;;  %v1771_v62 = vmul.f32 0.1, %v1765_v0  ;;  %v102_v4 = vadd.f32 %v96_v6, %v82_v37  ;;  %v136_v55 = vmul.f32 %v3550_v49, %v2612_v15  ;;  %v1784_v33 = vmul.f32 %v5801_v18, %v3543_v23  ;;  %v5802_v40 = vld [vmem:[#allocation15_spill] sm:$0xff]  ;;  %v3576_v37 = vld [vmem:[%s5339_s0 + $0x150] sm:$0xff] }
  0xb3   :  { %v1616_v14 = vadd.f32 %v1499_v24, %v1318_v38  ;;  %v2026_v13 = vadd.f32 %v2020_v28, %v2014_v9  ;;  %v156_v36 = vmul.f32 %v3557_v58, %v5802_v40  ;;  %v2045_v1 = vadd.f32 %v5763_v21, %v1984_v8 }
  0xb4   :  { %v3578_v6 = vmax.f32 %v1765_v0, %v1771_v62  ;;  %v122_v5 = vadd.f32 %v116_v2, %v102_v4  ;;  %v168_v38 = vmul.f32 %v3550_v49, %v5798_v44  ;;  %v174_v9 = vmul.f32 %v3557_v58, %v5799_v45 }
  0xb5   :  { %v2038_v24 = vadd.f32 %v2032_v30, %v2026_v13  ;;  %v193_v28 = vmul.f32 %v3562_v57, %v5761_v3  ;;  %v212_v23 = vmul.f32 %v3567_v26, %v2612_v15  ;;  %v2051_v62 = vmul.f32 0.1, %v2045_v1 }
  0xb6   :  { %5803 = vst [vmem:[#allocation103_spill] sm:$0xff] %v3578_v6  ;;  %v1791_v0 = vmul.f32 %v5765_v17, %v3578_v6  ;;  %v142_v18 = vadd.f32 %v136_v55, %v122_v5  ;;  %v231_v2 = vmul.f32 %v3576_v37, %v5802_v40  ;;  %v180_v30 = vadd.f32 %v174_v9, %v168_v38 }
  0xb7   :  { %v2063_v8 = vadd.f32 %v5763_v21, %v2038_v24  ;;  %v438_v4 = vmul.f32 %v2639_v31, %v3518_v60  ;;  %v445_v13 = vmul.f32 %v3523_v20, %v2648_v34  ;;  %v3598_v45 = vmax.f32 %v2045_v1, %v2051_v62 }
  0xb8   :  { %v1797_v3 = vadd.f32 %v1791_v0, %v1784_v33  ;;  %v162_v15 = vadd.f32 %v156_v36, %v142_v18  ;;  %v458_v6 = vmul.f32 %v3532_v51, %v2654_v39  ;;  %v199_v55 = vadd.f32 %v193_v28, %v180_v30 }
  0xb9   :  { %5804 = vst [vmem:[#allocation104_spill] sm:$0xff] %v3598_v45  ;;  %v2069_v5 = vmul.f32 0.1, %v2063_v8  ;;  %v451_v17 = vadd.f32 %v445_v13, %v438_v4  ;;  %v471_v24 = vmul.f32 %v3550_v49, %v2658_v41  ;;  %v2082_v9 = vmul.f32 %v3036_v16, %v3598_v45 }
  0xba   :  { %v1914_v38 = vadd.f32 %v1797_v3, %v1616_v14  ;;  %v244_v40 = vadd.f32 %v2642_v32, %v162_v15  ;;  %v484_v1 = vmul.f32 %v3557_v58, %v2670_v48  ;;  %v218_v18 = vadd.f32 %v212_v23, %v199_v55  ;;  %v5806_v14 = vld [vmem:[#allocation75_spill] sm:$0xff] }
  0xbb   :  { %v3609_v33 = vmax.f32 %v2063_v8, %v2069_v5  ;;  %v464_v36 = vadd.f32 %v458_v6, %v451_v17  ;;  %v496_v28 = vmul.f32 %v3550_v49, %v2639_v31  ;;  %v502_v62 = vmul.f32 %v3557_v58, %v2648_v34 }
  0xbc   :  { %v250_v0 = vmul.f32 0.1, %v244_v40  ;;  %v514_v3 = vmul.f32 %v3562_v57, %v2654_v39  ;;  %v526_v15 = vmul.f32 %v3567_v26, %v2658_v41  ;;  %v237_v8 = vadd.f32 %v231_v2, %v218_v18 }
  0xbd   :  { %5805 = vst [vmem:[#allocation105_spill] sm:$0xff] %v3609_v33  ;;  %v2089_v30 = vmul.f32 %v5806_v14, %v3609_v33  ;;  %v477_v4 = vadd.f32 %v471_v24, %v464_v36  ;;  %v538_v17 = vmul.f32 %v3576_v37, %v2670_v48  ;;  %v508_v6 = vadd.f32 %v502_v62, %v496_v28  ;;  %v5808_v36 = vld [vmem:[#allocation31_spill] sm:$0xff]  ;;  %v5809_v33 = vld [vmem:[#allocation25_spill] sm:$0xff]  ;;  %v5810_v48 = vld [vmem:[#allocation32_spill] sm:$0xff] }
  0xbe   :  { %v3623_v23 = vmax.f32 %v244_v40, %v250_v0  ;;  %v736_v13 = vmul.f32 %v2696_v63, %v3518_v60  ;;  %v743_v5 = vmul.f32 %v3523_v20, %v2702_v10  ;;  %v262_v45 = vadd.f32 %v2642_v32, %v237_v8 }
  0xbf   :  { %v2095_v55 = vadd.f32 %v2089_v30, %v2082_v9  ;;  %v490_v41 = vadd.f32 %v484_v1, %v477_v4  ;;  %v756_v2 = vmul.f32 %v3532_v51, %v2715_v22  ;;  %v520_v18 = vadd.f32 %v514_v3, %v508_v6 }
  0xc0   :  { %5807 = vst [vmem:[#allocation106_spill] sm:$0xff] %v3623_v23  ;;  %v281_v24 = vmul.f32 %v2632_v27, %v3623_v23  ;;  %v749_v40 = vadd.f32 %v743_v5, %v736_v13  ;;  %v769_v28 = vmul.f32 %v3550_v49, %v5808_v36  ;;  %v268_v62 = vmul.f32 0.1, %v262_v45 }
  0xc1   :  { %v2212_v0 = vadd.f32 %v2095_v55, %v1914_v38  ;;  %v551_v14 = vadd.f32 %v5809_v33, %v490_v41  ;;  %v782_v9 = vmul.f32 %v3557_v58, %v5810_v48  ;;  %v532_v30 = vadd.f32 %v526_v15, %v520_v18 }
  0xc2   :  { %v762_v1 = vadd.f32 %v756_v2, %v749_v40  ;;  %v794_v8 = vmul.f32 %v3550_v49, %v2696_v63  ;;  %v800_v4 = vmul.f32 %v3557_v58, %v2702_v10  ;;  %v3644_v3 = vmax.f32 %v262_v45, %v268_v62  ;;  %v5812_v2 = vld [vmem:[#allocation17_spill] sm:$0xff]  ;;  %v5815_v62 = vld [vmem:[#allocation38_spill] sm:$0xff] }
  0xc3   :  { %2228 = vrot.lane.b32.xlu0 %v2212_v0, %s2505_s20  ;;  %v557_v6 = vmul.f32 0.1, %v551_v14  ;;  %v812_v38 = vmul.f32 %v3562_v57, %v2715_v22  ;;  %v824_v41 = vmul.f32 %v3567_v26, %v5808_v36  ;;  %v544_v13 = vadd.f32 %v538_v17, %v532_v30  ;;  %v5814_v45 = vld [vmem:[#allocation37_spill] sm:$0xff] }
  0xc4   :  { %5811 = vst [vmem:[#allocation25_spill] sm:$0xff] %v3644_v3  ;;  %v775_v15 = vadd.f32 %v769_v28, %v762_v1  ;;  %v806_v5 = vadd.f32 %v800_v4, %v794_v8  ;;  %v836_v55 = vmul.f32 %v3576_v37, %v5810_v48  ;;  %v288_v18 = vmul.f32 %v5812_v2, %v3644_v3  ;;  %v5816_v28 = vld [vmem:[#allocation39_spill] sm:$0xff]  ;;  %v5817_v8 = vld [vmem:[#allocation24_spill] sm:$0xff]  ;;  %v5819_v10 = vld [vmem:[#allocation41_spill] sm:$0xff] }
  0xc5   :  { %v3654_v40 = vmax.f32 %v551_v14, %v557_v6  ;;  %v1034_v0 = vmul.f32 %v5814_v45, %v3518_v60  ;;  %v1041_v23 = vmul.f32 %v3523_v20, %v5815_v62  ;;  %v569_v27 = vadd.f32 %v5809_v33, %v544_v13  ;;  %v5818_v14 = vld [vmem:[#allocation40_spill] sm:$0xff] }
  0xc6   :  { %v788_v36 = vadd.f32 %v782_v9, %v775_v15  ;;  %v818_v17 = vadd.f32 %v812_v38, %v806_v5  ;;  %v1054_v30 = vmul.f32 %v3532_v51, %v5816_v28  ;;  %v294_v1 = vadd.f32 %v288_v18, %v281_v24 }
  0xc7   :  { %5813 = vst [vmem:[#allocation107_spill] sm:$0xff] %v3654_v40  ;;  %v588_v4 = vmul.f32 %v5817_v8, %v3654_v40  ;;  %v1047_v3 = vadd.f32 %v1041_v23, %v1034_v0  ;;  %v1067_v6 = vmul.f32 %v3550_v49, %v5818_v14  ;;  %v575_v2 = vmul.f32 0.1, %v569_v27 }
  0xc8   :  { %v830_v48 = vadd.f32 %v824_v41, %v818_v17  ;;  %v849_v22 = vadd.f32 %v2745_v47, %v788_v36  ;;  %v1080_v13 = vmul.f32 %v3557_v58, %v5819_v10  ;;  %v1092_v38 = vmul.f32 %v3550_v49, %v5814_v45 }
  0xc9   :  { %v1060_v9 = vadd.f32 %v1054_v30, %v1047_v3  ;;  %v1098_v24 = vmul.f32 %v3557_v58, %v5815_v62  ;;  %v1110_v23 = vmul.f32 %v3562_v57, %v5816_v28  ;;  %v3676_v15 = vmax.f32 %v569_v27, %v575_v2  ;;  %v5821_v30 = vld [vmem:[#allocation26_spill] sm:$0xff] }
  0xca   :  { %v842_v5 = vadd.f32 %v836_v55, %v830_v48  ;;  %v855_v18 = vmul.f32 0.1, %v849_v22  ;;  %v1122_v36 = vmul.f32 %v3567_v26, %v5818_v14  ;;  %v1134_v3 = vmul.f32 %v3576_v37, %v5819_v10 }
  0xcb   :  { %5820 = vst [vmem:[#allocation108_spill] sm:$0xff] %v3676_v15  ;;  %v1073_v41 = vadd.f32 %v1067_v6, %v1060_v9  ;;  %v1104_v0 = vadd.f32 %v1098_v24, %v1092_v38  ;;  %v1332_v17 = vmul.f32 %v2835_v29, %v3518_v60  ;;  %v595_v40 = vmul.f32 %v5821_v30, %v3676_v15 }
  0xcc   :  { %v3686_v8 = vmax.f32 %v849_v22, %v855_v18  ;;  %v867_v27 = vadd.f32 %v2745_v47, %v842_v5  ;;  %v1339_v48 = vmul.f32 %v3523_v20, %v5776_v50  ;;  %v1352_v6 = vmul.f32 %v3532_v51, %v5777_v12 }
  0xcd   :  { %v1086_v55 = vadd.f32 %v1080_v13, %v1073_v41  ;;  %v1116_v2 = vadd.f32 %v1110_v23, %v1104_v0  ;;  %v1365_v9 = vmul.f32 %v3550_v49, %v5779_v7  ;;  %v601_v38 = vadd.f32 %v595_v40, %v588_v4 }
  0xce   :  { %5822 = vst [vmem:[#allocation109_spill] sm:$0xff] %v3686_v8  ;;  %v873_v24 = vmul.f32 0.1, %v867_v27  ;;  %v886_v15 = vmul.f32 %v5781_v56, %v3686_v8  ;;  %v1345_v22 = vadd.f32 %v1339_v48, %v1332_v17  ;;  %v1378_v30 = vmul.f32 %v3557_v58, %v5780_v43  ;;  %v5824_v48 = vld [vmem:[#allocation36_spill] sm:$0xff] }
  0xcf   :  { %v1128_v18 = vadd.f32 %v1122_v36, %v1116_v2  ;;  %v1147_v5 = vadd.f32 %v5738_v61, %v1086_v55  ;;  %v1390_v13 = vmul.f32 %v3550_v49, %v2835_v29  ;;  %v718_v23 = vadd.f32 %v601_v38, %v294_v1 }
  0xd0   :  { %v3702_v41 = vmax.f32 %v867_v27, %v873_v24  ;;  %v1358_v0 = vadd.f32 %v1352_v6, %v1345_v22  ;;  %v1396_v40 = vmul.f32 %v3557_v58, %v5776_v50  ;;  %v1408_v36 = vmul.f32 %v3562_v57, %v5777_v12 }
  0xd1   :  { %v1140_v4 = vadd.f32 %v1134_v3, %v1128_v18  ;;  %v1153_v10 = vmul.f32 0.1, %v1147_v5  ;;  %v1420_v17 = vmul.f32 %v3567_v26, %v5779_v7  ;;  %v1432_v1 = vmul.f32 %v3576_v37, %v5780_v43  ;;  %v5827_v43 = vld [vmem:[#allocation61_spill] sm:$0xff] }
  0xd2   :  { %5823 = vst [vmem:[#allocation110_spill] sm:$0xff] %v3702_v41  ;;  %v893_v55 = vmul.f32 %v5824_v48, %v3702_v41  ;;  %v1371_v2 = vadd.f32 %v1365_v9, %v1358_v0  ;;  %v1402_v8 = vadd.f32 %v1396_v40, %v1390_v13  ;;  %v1630_v3 = vmul.f32 %v5741_v42, %v3518_v60  ;;  %v5826_v0 = vld [vmem:[#allocation44_spill] sm:$0xff] }
  0xd3   :  { %v3714_v27 = vmax.f32 %v1147_v5, %v1153_v10  ;;  %v1165_v6 = vadd.f32 %v5738_v61, %v1140_v4  ;;  %v1637_v38 = vmul.f32 %v3523_v20, %v2906_v25  ;;  %v1650_v9 = vmul.f32 %v3532_v51, %v5785_v53 }
  0xd4   :  { %v899_v24 = vadd.f32 %v893_v55, %v886_v15  ;;  %v1384_v22 = vadd.f32 %v1378_v30, %v1371_v2  ;;  %v1414_v18 = vadd.f32 %v1408_v36, %v1402_v8  ;;  %v1663_v5 = vmul.f32 %v3550_v49, %v5787_v19 }
  0xd5   :  { %5825 = vst [vmem:[#allocation111_spill] sm:$0xff] %v3714_v27  ;;  %v1171_v13 = vmul.f32 0.1, %v1165_v6  ;;  %v1184_v40 = vmul.f32 %v5826_v0, %v3714_v27  ;;  %v1643_v10 = vadd.f32 %v1637_v38, %v1630_v3  ;;  %v1676_v15 = vmul.f32 %v3557_v58, %v5827_v43  ;;  %v5829_v38 = vld [vmem:[#allocation45_spill] sm:$0xff] }
  0xd6   :  { %v1016_v4 = vadd.f32 %v899_v24, %v718_v23  ;;  %v1426_v41 = vadd.f32 %v1420_v17, %v1414_v18  ;;  %v1445_v48 = vadd.f32 %v5745_v52, %v1384_v22  ;;  %v1688_v36 = vmul.f32 %v3550_v49, %v5741_v42 }
  0xd7   :  { %v3730_v30 = vmax.f32 %v1165_v6, %v1171_v13  ;;  %v1656_v8 = vadd.f32 %v1650_v9, %v1643_v10  ;;  %v1694_v55 = vmul.f32 %v3557_v58, %v2906_v25  ;;  %v1706_v23 = vmul.f32 %v3562_v57, %v5785_v53 }
  0xd8   :  { %v1438_v2 = vadd.f32 %v1432_v1, %v1426_v41  ;;  %v1451_v3 = vmul.f32 0.1, %v1445_v48  ;;  %v1718_v17 = vmul.f32 %v3567_v26, %v5787_v19  ;;  %v1730_v18 = vmul.f32 %v3576_v37, %v5827_v43 }
  0xd9   :  { %5828 = vst [vmem:[#allocation112_spill] sm:$0xff] %v3730_v30  ;;  %v1191_v24 = vmul.f32 %v5829_v38, %v3730_v30  ;;  %v1669_v6 = vadd.f32 %v1663_v5, %v1656_v8  ;;  %v1700_v22 = vadd.f32 %v1694_v55, %v1688_v36  ;;  %v1928_v41 = vmul.f32 %v5750_v46, %v3518_v60  ;;  %v5831_v55 = vld [vmem:[#allocation70_spill] sm:$0xff]  ;;  %v5832_v38 = vld [vmem:[#allocation71_spill] sm:$0xff] }
  0xda   :  { %v3744_v9 = vmax.f32 %v1445_v48, %v1451_v3  ;;  %v1463_v13 = vadd.f32 %v5745_v52, %v1438_v2  ;;  %v1935_v1 = vmul.f32 %v3523_v20, %v5751_v59  ;;  %v1948_v5 = vmul.f32 %v3532_v51, %v5752_v54 }
  0xdb   :  { %v1197_v10 = vadd.f32 %v1191_v24, %v1184_v40  ;;  %v1682_v27 = vadd.f32 %v1676_v15, %v1669_v6  ;;  %v1712_v19 = vadd.f32 %v1706_v23, %v1700_v22  ;;  %v1961_v2 = vmul.f32 %v3550_v49, %v5831_v55  ;;  %v3769_v24 = vld [vmem:[%s5339_s0 + $0x8] sm:$0xff]  ;;  %v5834_v6 = vld [vmem:[#allocation55_spill] sm:$0xff] }
  0xdc   :  { %5830 = vst [vmem:[#allocation113_spill] sm:$0xff] %v3744_v9  ;;  %v1469_v8 = vmul.f32 0.1, %v1463_v13  ;;  %v1482_v36 = vmul.f32 %v5792_v11, %v3744_v9  ;;  %v1941_v48 = vadd.f32 %v1935_v1, %v1928_v41  ;;  %v1974_v20 = vmul.f32 %v3557_v58, %v5832_v38  ;;  %v5836_v1 = vld [vmem:[#allocation12_spill] sm:$0xff]  ;;  %v5837_v9 = vld [vmem:[#allocation13_spill] sm:$0xff] }
  0xdd   :  { %v1314_v3 = vadd.f32 %v1197_v10, %v1016_v4  ;;  %v1724_v30 = vadd.f32 %v1718_v17, %v1712_v19  ;;  %v1743_v60 = vadd.f32 %v5796_v35, %v1682_v27  ;;  %v1986_v51 = vmul.f32 %v3550_v49, %v5750_v46  ;;  %v3774_v19 = vld [vmem:[%s5339_s0 + $0x38] sm:$0xff] }
  0xde   :  { %v3760_v40 = vmax.f32 %v1463_v13, %v1469_v8  ;;  %v1954_v15 = vadd.f32 %v1948_v5, %v1941_v48  ;;  %v1992_v23 = vmul.f32 %v3557_v58, %v5751_v59  ;;  %v2004_v17 = vmul.f32 %v3562_v57, %v5752_v54  ;;  %v3783_v58 = vld [vmem:[%s5339_s0 + $0x68] sm:$0xff] }
  0xdf   :  { %v1736_v27 = vadd.f32 %v1730_v18, %v1724_v30  ;;  %v1749_v4 = vmul.f32 0.1, %v1743_v60  ;;  %v2016_v49 = vmul.f32 %v3567_v26, %v5831_v55  ;;  %v2028_v30 = vmul.f32 %v3576_v37, %v5832_v38  ;;  %v3801_v37 = vld [vmem:[%s5339_s0 + $0x98] sm:$0xff]  ;;  %v5844_v38 = vld [vmem:[#allocation65_spill] sm:$0xff] }
  0xe0   :  { %5833 = vst [vmem:[#allocation114_spill] sm:$0xff] %v3760_v40  ;;  %v1489_v22 = vmul.f32 %v5834_v6, %v3760_v40  ;;  %v1967_v13 = vadd.f32 %v1961_v2, %v1954_v15  ;;  %v1998_v41 = vadd.f32 %v1992_v23, %v1986_v51  ;;  %v83_v26 = vmul.f32 %v5798_v44, %v3769_v24  ;;  %v5838_v51 = vld [vmem:[#allocation64_spill] sm:$0xff]  ;;  %v5841_v40 = vld [vmem:[#allocation15_spill] sm:$0xff] }
  0xe1   :  { %v3789_v18 = vmax.f32 %v1743_v60, %v1749_v4  ;;  %v1761_v57 = vadd.f32 %v5796_v35, %v1736_v27  ;;  %v97_v10 = vmul.f32 %v3774_v19, %v5836_v1  ;;  %v117_v2 = vmul.f32 %v3783_v58, %v5837_v9  ;;  %v3806_v60 = vld [vmem:[%s5339_s0 + $0xc8] sm:$0xff]  ;;  %v3815_v4 = vld [vmem:[%s5339_s0 + $0xf8] sm:$0xff] }
  0xe2   :  { %v1495_v5 = vadd.f32 %v1489_v22, %v1482_v36  ;;  %v1980_v8 = vadd.f32 %v1974_v20, %v1967_v13  ;;  %v2010_v48 = vadd.f32 %v2004_v17, %v1998_v41  ;;  %v5839_v20 = vld [vmem:[#allocation14_spill] sm:$0xff]  ;;  %v3820_v17 = vld [vmem:[%s5339_s0 + $0x128] sm:$0xff]  ;;  %v169_v6 = vmul.f32 %v3801_v37, %v5798_v44 }
  0xe3   :  { %5835 = vst [vmem:[#allocation115_spill] sm:$0xff] %v3789_v18  ;;  %v1767_v15 = vmul.f32 0.1, %v1761_v57  ;;  %v1780_v23 = vmul.f32 %v5838_v51, %v3789_v18  ;;  %v103_v36 = vadd.f32 %v97_v10, %v83_v26  ;;  %v137_v27 = vmul.f32 %v3801_v37, %v5839_v20  ;;  %v3828_v10 = vld [vmem:[%s5339_s0 + $0x158] sm:$0xff] }
  0xe4   :  { %5840 = vst [vmem:[#allocation116_spill] sm:$0xff] %v3820_v17  ;;  %v1612_v22 = vadd.f32 %v1495_v5, %v1314_v3  ;;  %v2022_v13 = vadd.f32 %v2016_v49, %v2010_v48  ;;  %v2041_v41 = vadd.f32 %v5763_v21, %v1980_v8  ;;  %v157_v26 = vmul.f32 %v3806_v60, %v5841_v40 }
  0xe5   :  { %5842 = vst [vmem:[#allocation117_spill] sm:$0xff] %v3828_v10  ;;  %v3830_v18 = vmax.f32 %v1761_v57, %v1767_v15  ;;  %v123_v51 = vadd.f32 %v117_v2, %v103_v36  ;;  %v175_v3 = vmul.f32 %v3806_v60, %v5836_v1  ;;  %v194_v8 = vmul.f32 %v3815_v4, %v5837_v9 }
  0xe6   :  { %v2034_v49 = vadd.f32 %v2028_v30, %v2022_v13  ;;  %v2047_v5 = vmul.f32 0.1, %v2041_v41  ;;  %v213_v48 = vmul.f32 %v3820_v17, %v5839_v20  ;;  %v232_v2 = vmul.f32 %v3828_v10, %v5841_v40  ;;  %v5847_v40 = vld [vmem:[#allocation23_spill] sm:$0xff] }
  0xe7   :  { %5843 = vst [vmem:[#allocation118_spill] sm:$0xff] %v3830_v18  ;;  %v1787_v35 = vmul.f32 %v5844_v38, %v3830_v18  ;;  %v143_v57 = vadd.f32 %v137_v27, %v123_v51  ;;  %v181_v15 = vadd.f32 %v175_v3, %v169_v6  ;;  %v439_v30 = vmul.f32 %v2639_v31, %v3769_v24  ;;  %v5846_v3 = vld [vmem:[#allocation22_spill] sm:$0xff] }
  0xe8   :  { %v3844_v36 = vmax.f32 %v2041_v41, %v2047_v5  ;;  %v2059_v1 = vadd.f32 %v5763_v21, %v2034_v49  ;;  %v446_v13 = vmul.f32 %v3774_v19, %v2648_v34  ;;  %v459_v51 = vmul.f32 %v3783_v58, %v2654_v39 }
  0xe9   :  { %v1793_v9 = vadd.f32 %v1787_v35, %v1780_v23  ;;  %v163_v20 = vadd.f32 %v157_v26, %v143_v57  ;;  %v200_v44 = vadd.f32 %v194_v8, %v181_v15  ;;  %v472_v49 = vmul.f32 %v3801_v37, %v5846_v3 }
  0xea   :  { %5845 = vst [vmem:[#allocation119_spill] sm:$0xff] %v3844_v36  ;;  %v2065_v6 = vmul.f32 0.1, %v2059_v1  ;;  %v2078_v27 = vmul.f32 %v3036_v16, %v3844_v36  ;;  %v452_v41 = vadd.f32 %v446_v13, %v439_v30  ;;  %v485_v35 = vmul.f32 %v3806_v60, %v5847_v40 }
  0xeb   :  { %v1910_v5 = vadd.f32 %v1793_v9, %v1612_v22  ;;  %v219_v18 = vadd.f32 %v213_v48, %v200_v44  ;;  %v245_v38 = vadd.f32 %v2642_v32, %v163_v20  ;;  %v497_v8 = vmul.f32 %v3801_v37, %v2639_v31  ;;  %v5849_v20 = vld [vmem:[#allocation75_spill] sm:$0xff] }
  0xec   :  { %v3860_v23 = vmax.f32 %v2059_v1, %v2065_v6  ;;  %v465_v26 = vadd.f32 %v459_v51, %v452_v41  ;;  %v503_v57 = vmul.f32 %v3806_v60, %v2648_v34  ;;  %v515_v9 = vmul.f32 %v3815_v4, %v2654_v39  ;;  %v5852_v39 = vld [vmem:[#allocation30_spill] sm:$0xff] }
  0xed   :  { %v238_v15 = vadd.f32 %v232_v2, %v219_v18  ;;  %v251_v30 = vmul.f32 0.1, %v245_v38  ;;  %v527_v44 = vmul.f32 %v3820_v17, %v5846_v3  ;;  %v539_v13 = vmul.f32 %v3828_v10, %v5847_v40  ;;  %v5851_v2 = vld [vmem:[#allocation29_spill] sm:$0xff] }
  0xee   :  { %5848 = vst [vmem:[#allocation120_spill] sm:$0xff] %v3860_v23  ;;  %v2085_v22 = vmul.f32 %v5849_v20, %v3860_v23  ;;  %v478_v1 = vadd.f32 %v472_v49, %v465_v26  ;;  %v509_v48 = vadd.f32 %v503_v57, %v497_v8  ;;  %v737_v18 = vmul.f32 %v2696_v63, %v3769_v24  ;;  %v5853_v57 = vld [vmem:[#allocation31_spill] sm:$0xff]  ;;  %v5854_v20 = vld [vmem:[#allocation32_spill] sm:$0xff] }
  0xef   :  { %v3874_v51 = vmax.f32 %v245_v38, %v251_v30  ;;  %v263_v6 = vadd.f32 %v2642_v32, %v238_v15  ;;  %v744_v41 = vmul.f32 %v3774_v19, %v5851_v2  ;;  %v757_v49 = vmul.f32 %v3783_v58, %v5852_v39 }
  0xf0   :  { %v2091_v36 = vadd.f32 %v2085_v22, %v2078_v27  ;;  %v491_v3 = vadd.f32 %v485_v35, %v478_v1  ;;  %v521_v16 = vadd.f32 %v515_v9, %v509_v48  ;;  %v770_v38 = vmul.f32 %v3801_v37, %v5853_v57  ;;  %v5856_v22 = vld [vmem:[#allocation16_spill] sm:$0xff] }
  0xf1   :  { %5850 = vst [vmem:[#allocation121_spill] sm:$0xff] %v3874_v51  ;;  %v269_v26 = vmul.f32 0.1, %v263_v6  ;;  %v750_v8 = vadd.f32 %v744_v41, %v737_v18  ;;  %v783_v40 = vmul.f32 %v3806_v60, %v5854_v20  ;;  %v795_v35 = vmul.f32 %v3801_v37, %v2696_v63 }
  0xf2   :  { %v2208_v30 = vadd.f32 %v2091_v36, %v1910_v5  ;;  %v533_v23 = vadd.f32 %v527_v44, %v521_v16  ;;  %v552_v15 = vadd.f32 %v5809_v33, %v491_v3  ;;  %v801_v9 = vmul.f32 %v3806_v60, %v5851_v2  ;;  %v5857_v44 = vld [vmem:[#allocation17_spill] sm:$0xff] }
  0xf3   :  { %v3888_v32 = vmax.f32 %v263_v6, %v269_v26  ;;  %v763_v27 = vadd.f32 %v757_v49, %v750_v8  ;;  %v282_v36 = vmul.f32 %v5856_v22, %v3874_v51  ;;  %v813_v3 = vmul.f32 %v3815_v4, %v5852_v39  ;;  %v5860_v51 = vld [vmem:[#allocation41_spill] sm:$0xff] }
  0xf4   :  { %2220 = vrot.lane.b32.xlu1 %v2208_v30, %s2505_s20  ;;  %v545_v16 = vadd.f32 %v539_v13, %v533_v23  ;;  %v558_v5 = vmul.f32 0.1, %v552_v15  ;;  %v807_v6 = vadd.f32 %v801_v9, %v795_v35  ;;  %v825_v18 = vmul.f32 %v3820_v17, %v5853_v57 }
  0xf5   :  { %5855 = vst [vmem:[#allocation29_spill] sm:$0xff] %v3888_v32  ;;  %v289_v1 = vmul.f32 %v5857_v44, %v3888_v32  ;;  %v776_v48 = vadd.f32 %v770_v38, %v763_v27  ;;  %v1035_v26 = vmul.f32 %v5814_v45, %v3769_v24  ;;  %v1042_v23 = vmul.f32 %v3774_v19, %v5815_v62 }
  0xf6   :  { %v3903_v41 = vmax.f32 %v552_v15, %v558_v5  ;;  %v570_v49 = vadd.f32 %v5809_v33, %v545_v16  ;;  %v819_v8 = vadd.f32 %v813_v3, %v807_v6  ;;  %v837_v30 = vmul.f32 %v3828_v10, %v5854_v20  ;;  %v5859_v15 = vld [vmem:[#allocation24_spill] sm:$0xff] }
  0xf7   :  { %v789_v13 = vadd.f32 %v783_v40, %v776_v48  ;;  %v1055_v38 = vmul.f32 %v3783_v58, %v5816_v28  ;;  %v1048_v9 = vadd.f32 %v1042_v23, %v1035_v26  ;;  %v1068_v16 = vmul.f32 %v3801_v37, %v5818_v14 }
  0xf8   :  { %5858 = vst [vmem:[#allocation30_spill] sm:$0xff] %v3903_v41  ;;  %v576_v27 = vmul.f32 0.1, %v570_v49  ;;  %v589_v35 = vmul.f32 %v5859_v15, %v3903_v41  ;;  %v831_v5 = vadd.f32 %v825_v18, %v819_v8  ;;  %v1081_v40 = vmul.f32 %v3806_v60, %v5860_v51  ;;  %v5862_v8 = vld [vmem:[#allocation26_spill] sm:$0xff] }
  0xf9   :  { %v850_v32 = vadd.f32 %v2745_v47, %v789_v13  ;;  %v1093_v3 = vmul.f32 %v3801_v37, %v5814_v45  ;;  %v1061_v6 = vadd.f32 %v1055_v38, %v1048_v9  ;;  %v1099_v44 = vmul.f32 %v3806_v60, %v5815_v62 }
  0xfa   :  { %v3923_v48 = vmax.f32 %v570_v49, %v576_v27  ;;  %v1111_v26 = vmul.f32 %v3815_v4, %v5816_v28  ;;  %v295_v23 = vadd.f32 %v289_v1, %v282_v36  ;;  %v843_v41 = vadd.f32 %v837_v30, %v831_v5 }
  0xfb   :  { %v856_v18 = vmul.f32 0.1, %v850_v32  ;;  %v1123_v13 = vmul.f32 %v3820_v17, %v5818_v14  ;;  %v1074_v22 = vadd.f32 %v1068_v16, %v1061_v6  ;;  %v1105_v45 = vadd.f32 %v1099_v44, %v1093_v3 }
  0xfc   :  { %5861 = vst [vmem:[#allocation122_spill] sm:$0xff] %v3923_v48  ;;  %v596_v15 = vmul.f32 %v5862_v8, %v3923_v48  ;;  %v1333_v49 = vmul.f32 %v2835_v29, %v3769_v24  ;;  %v868_v27 = vadd.f32 %v2745_v47, %v843_v41  ;;  %v1340_v36 = vmul.f32 %v3774_v19, %v5776_v50  ;;  %v5864_v48 = vld [vmem:[#allocation51_spill] sm:$0xff] }
  0xfd   :  { %v3935_v38 = vmax.f32 %v850_v32, %v856_v18  ;;  %v1353_v1 = vmul.f32 %v3783_v58, %v5777_v12  ;;  %v1087_v9 = vadd.f32 %v1081_v40, %v1074_v22  ;;  %v1117_v5 = vadd.f32 %v1111_v26, %v1105_v45 }
  0xfe   :  { %v602_v30 = vadd.f32 %v596_v15, %v589_v35  ;;  %v1135_v16 = vmul.f32 %v3828_v10, %v5860_v51  ;;  %v874_v44 = vmul.f32 0.1, %v868_v27  ;;  %v1346_v32 = vadd.f32 %v1340_v36, %v1333_v49 }
  0xff   :  { %5863 = vst [vmem:[#allocation123_spill] sm:$0xff] %v3935_v38  ;;  %v887_v3 = vmul.f32 %v5781_v56, %v3935_v38  ;;  %v1366_v41 = vmul.f32 %v3801_v37, %v5779_v7  ;;  %v1129_v6 = vadd.f32 %v1123_v13, %v1117_v5  ;;  %v1148_v18 = vadd.f32 %v5738_v61, %v1087_v9  ;;  %v5866_v9 = vld [vmem:[#allocation36_spill] sm:$0xff] }
 0x100   :  { %v1379_v8 = vmul.f32 %v3806_v60, %v5864_v48  ;;  %v1391_v45 = vmul.f32 %v3801_v37, %v2835_v29  ;;  %v3953_v22 = vmax.f32 %v868_v27, %v874_v44  ;;  %v1359_v15 = vadd.f32 %v1353_v1, %v1346_v32 }
 0x101   :  { %v1397_v35 = vmul.f32 %v3806_v60, %v5776_v50  ;;  %v1409_v40 = vmul.f32 %v3815_v4, %v5777_v12  ;;  %v719_v26 = vadd.f32 %v602_v30, %v295_v23  ;;  %v1141_v49 = vadd.f32 %v1135_v16, %v1129_v6 }
 0x102   :  { %5865 = vst [vmem:[#allocation124_spill] sm:$0xff] %v3953_v22  ;;  %v1154_v13 = vmul.f32 0.1, %v1148_v18  ;;  %v1421_v36 = vmul.f32 %v3820_v17, %v5779_v7  ;;  %v894_v5 = vmul.f32 %v5866_v9, %v3953_v22  ;;  %v1372_v38 = vadd.f32 %v1366_v41, %v1359_v15 }
 0x103   :  { %v1403_v56 = vadd.f32 %v1397_v35, %v1391_v45  ;;  %v1631_v27 = vmul.f32 %v5741_v42, %v3769_v24  ;;  %v1166_v44 = vadd.f32 %v5738_v61, %v1141_v49  ;;  %v1638_v23 = vmul.f32 %v3774_v19, %v2906_v25  ;;  %v5868_v35 = vld [vmem:[#allocation60_spill] sm:$0xff] }
 0x104   :  { %v3965_v1 = vmax.f32 %v1148_v18, %v1154_v13  ;;  %v1651_v30 = vmul.f32 %v3783_v58, %v5785_v53  ;;  %v900_v16 = vadd.f32 %v894_v5, %v887_v3  ;;  %v1385_v32 = vadd.f32 %v1379_v8, %v1372_v38 }
 0x105   :  { %v1415_v6 = vadd.f32 %v1409_v40, %v1403_v56  ;;  %v1433_v41 = vmul.f32 %v3828_v10, %v5864_v48  ;;  %v1172_v45 = vmul.f32 0.1, %v1166_v44  ;;  %v1644_v18 = vadd.f32 %v1638_v23, %v1631_v27 }
 0x106   :  { %5867 = vst [vmem:[#allocation125_spill] sm:$0xff] %v3965_v1  ;;  %v1185_v15 = vmul.f32 %v5826_v0, %v3965_v1  ;;  %v1664_v49 = vmul.f32 %v3801_v37, %v5868_v35  ;;  %v1446_v22 = vadd.f32 %v5745_v52, %v1385_v32  ;;  %v1677_v9 = vmul.f32 %v3806_v60, %v5827_v43  ;;  %v5870_v32 = vld [vmem:[#allocation45_spill] sm:$0xff] }
 0x107   :  { %v1427_v13 = vadd.f32 %v1421_v36, %v1415_v6  ;;  %v1689_v56 = vmul.f32 %v3801_v37, %v5741_v42  ;;  %v3983_v8 = vmax.f32 %v1166_v44, %v1172_v45  ;;  %v1657_v38 = vadd.f32 %v1651_v30, %v1644_v18 }
 0x108   :  { %v1695_v3 = vmul.f32 %v3806_v60, %v2906_v25  ;;  %v1707_v40 = vmul.f32 %v3815_v4, %v5785_v53  ;;  %v1017_v5 = vadd.f32 %v900_v16, %v719_v26  ;;  %v1452_v36 = vmul.f32 0.1, %v1446_v22 }
 0x109   :  { %5869 = vst [vmem:[#allocation126_spill] sm:$0xff] %v3983_v8  ;;  %v1439_v27 = vadd.f32 %v1433_v41, %v1427_v13  ;;  %v1719_v23 = vmul.f32 %v3820_v17, %v5868_v35  ;;  %v1192_v6 = vmul.f32 %v5870_v32, %v3983_v8  ;;  %v1670_v1 = vadd.f32 %v1664_v49, %v1657_v38 }
 0x10a   :  { %v1701_v0 = vadd.f32 %v1695_v3, %v1689_v56  ;;  %v1929_v44 = vmul.f32 %v5750_v46, %v3769_v24  ;;  %v3995_v30 = vmax.f32 %v1446_v22, %v1452_v36  ;;  %v1936_v26 = vmul.f32 %v3774_v19, %v5751_v59  ;;  %v5873_v36 = vld [vmem:[#allocation71_spill] sm:$0xff] }
 0x10b   :  { %v1464_v45 = vadd.f32 %v5745_v52, %v1439_v27  ;;  %v1949_v16 = vmul.f32 %v3783_v58, %v5752_v54  ;;  %v1198_v41 = vadd.f32 %v1192_v6, %v1185_v15  ;;  %v1683_v18 = vadd.f32 %v1677_v9, %v1670_v1  ;;  %v5872_v27 = vld [vmem:[#allocation63_spill] sm:$0xff]  ;;  %v4016_v9 = vld [vmem:[%s5339_s0 + $0x10] sm:$0xff] }
 0x10c   :  { %5871 = vst [vmem:[#allocation127_spill] sm:$0xff] %v3995_v30  ;;  %v1713_v13 = vadd.f32 %v1707_v40, %v1701_v0  ;;  %v1731_v49 = vmul.f32 %v3828_v10, %v5827_v43  ;;  %v1483_v24 = vmul.f32 %v5792_v11, %v3995_v30  ;;  %v1942_v22 = vadd.f32 %v1936_v26, %v1929_v44  ;;  %v4027_v6 = vld [vmem:[%s5339_s0 + $0x40] sm:$0xff]  ;;  %v5878_v11 = vld [vmem:[#allocation12_spill] sm:$0xff] }
 0x10d   :  { %v1470_v56 = vmul.f32 0.1, %v1464_v45  ;;  %v1962_v38 = vmul.f32 %v3801_v37, %v5831_v55  ;;  %v1744_v19 = vadd.f32 %v5872_v27, %v1683_v18  ;;  %v1975_v58 = vmul.f32 %v3806_v60, %v5873_v36 }
 0x10e   :  { %v1725_v3 = vadd.f32 %v1719_v23, %v1713_v13  ;;  %v1987_v0 = vmul.f32 %v3801_v37, %v5750_v46  ;;  %v1955_v15 = vadd.f32 %v1949_v16, %v1942_v22  ;;  %v1993_v40 = vmul.f32 %v3806_v60, %v5751_v59  ;;  %v4032_v37 = vld [vmem:[%s5339_s0 + $0x70] sm:$0xff]  ;;  %v5875_v60 = vld [vmem:[#allocation55_spill] sm:$0xff] }
 0x10f   :  { %v4018_v1 = vmax.f32 %v1464_v45, %v1470_v56  ;;  %v2005_v23 = vmul.f32 %v3815_v4, %v5752_v54  ;;  %v1315_v44 = vadd.f32 %v1198_v41, %v1017_v5  ;;  %v1750_v26 = vmul.f32 0.1, %v1744_v19  ;;  %v5876_v56 = vld [vmem:[#allocation11_spill] sm:$0xff]  ;;  %v5879_v41 = vld [vmem:[#allocation13_spill] sm:$0xff] }
 0x110   :  { %v1737_v45 = vadd.f32 %v1731_v49, %v1725_v3  ;;  %v2017_v16 = vmul.f32 %v3820_v17, %v5831_v55  ;;  %v1968_v4 = vadd.f32 %v1962_v38, %v1955_v15  ;;  %v1999_v13 = vadd.f32 %v1993_v40, %v1987_v0  ;;  %v4050_v3 = vld [vmem:[%s5339_s0 + $0xa0] sm:$0xff]  ;;  %v4057_v40 = vld [vmem:[%s5339_s0 + $0xd0] sm:$0xff] }
 0x111   :  { %5874 = vst [vmem:[#allocation128_spill] sm:$0xff] %v4018_v1  ;;  %v1490_v18 = vmul.f32 %v5875_v60, %v4018_v1  ;;  %v84_v22 = vmul.f32 %v5876_v56, %v4016_v9  ;;  %v4040_v30 = vmax.f32 %v1744_v19, %v1750_v26  ;;  %v98_v5 = vmul.f32 %v4027_v6, %v5878_v11  ;;  %v5880_v1 = vld [vmem:[#allocation64_spill] sm:$0xff]  ;;  %v5890_v54 = vld [vmem:[#allocation23_spill] sm:$0xff] }
 0x112   :  { %v1762_v8 = vadd.f32 %v5872_v27, %v1737_v45  ;;  %v118_v49 = vmul.f32 %v4032_v37, %v5879_v41  ;;  %v1981_v0 = vadd.f32 %v1975_v58, %v1968_v4  ;;  %v2011_v15 = vadd.f32 %v2005_v23, %v1999_v13  ;;  %v4062_v45 = vld [vmem:[%s5339_s0 + $0x100] sm:$0xff]  ;;  %v5881_v58 = vld [vmem:[#allocation14_spill] sm:$0xff] }
 0x113   :  { %5877 = vst [vmem:[#allocation129_spill] sm:$0xff] %v4040_v30  ;;  %v1496_v38 = vadd.f32 %v1490_v18, %v1483_v24  ;;  %v2029_v19 = vmul.f32 %v3828_v10, %v5873_v36  ;;  %v1781_v17 = vmul.f32 %v5880_v1, %v4040_v30  ;;  %v104_v24 = vadd.f32 %v98_v5, %v84_v22  ;;  %v4071_v18 = vld [vmem:[%s5339_s0 + $0x130] sm:$0xff]  ;;  %v5882_v10 = vld [vmem:[#allocation15_spill] sm:$0xff] }
 0x114   :  { %v1768_v26 = vmul.f32 0.1, %v1762_v8  ;;  %v138_v23 = vmul.f32 %v4050_v3, %v5881_v58  ;;  %v2023_v4 = vadd.f32 %v2017_v16, %v2011_v15  ;;  %v2042_v13 = vadd.f32 %v5763_v21, %v1981_v0  ;;  %v4089_v15 = vld [vmem:[%s5339_s0 + $0x160] sm:$0xff] }
 0x115   :  { %v158_v60 = vmul.f32 %v4057_v40, %v5882_v10  ;;  %v170_v36 = vmul.f32 %v4050_v3, %v5876_v56  ;;  %v124_v22 = vadd.f32 %v118_v49, %v104_v24  ;;  %v176_v5 = vmul.f32 %v4057_v40, %v5878_v11 }
 0x116   :  { %v4078_v27 = vmax.f32 %v1762_v8, %v1768_v26  ;;  %v195_v30 = vmul.f32 %v4062_v45, %v5879_v41  ;;  %v1613_v1 = vadd.f32 %v1496_v38, %v1315_v44  ;;  %v2035_v55 = vadd.f32 %v2029_v19, %v2023_v4  ;;  %v5884_v8 = vld [vmem:[#allocation65_spill] sm:$0xff] }
 0x117   :  { %v2048_v16 = vmul.f32 0.1, %v2042_v13  ;;  %v214_v0 = vmul.f32 %v4071_v18, %v5881_v58  ;;  %v144_v26 = vadd.f32 %v138_v23, %v124_v22  ;;  %v182_v24 = vadd.f32 %v176_v5, %v170_v36  ;;  %v5886_v19 = vld [vmem:[#allocation21_spill] sm:$0xff]  ;;  %v5887_v22 = vld [vmem:[#allocation74_spill] sm:$0xff] }
 0x118   :  { %5883 = vst [vmem:[#allocation130_spill] sm:$0xff] %v4078_v27  ;;  %v1788_v49 = vmul.f32 %v5884_v8, %v4078_v27  ;;  %v440_v11 = vmul.f32 %v2639_v31, %v4016_v9  ;;  %v2060_v44 = vadd.f32 %v5763_v21, %v2035_v55  ;;  %v447_v38 = vmul.f32 %v4027_v6, %v2648_v34  ;;  %v5889_v8 = vld [vmem:[#allocation19_spill] sm:$0xff] }
 0x119   :  { %v4095_v41 = vmax.f32 %v2042_v13, %v2048_v16  ;;  %v460_v4 = vmul.f32 %v4032_v37, %v5886_v19  ;;  %v164_v56 = vadd.f32 %v158_v60, %v144_v26  ;;  %v201_v32 = vadd.f32 %v195_v30, %v182_v24  ;;  %v5888_v16 = vld [vmem:[#allocation22_spill] sm:$0xff] }
 0x11a   :  { %v1794_v58 = vadd.f32 %v1788_v49, %v1781_v17  ;;  %v233_v23 = vmul.f32 %v4089_v15, %v5882_v10  ;;  %v2066_v36 = vmul.f32 0.1, %v2060_v44  ;;  %v453_v13 = vadd.f32 %v447_v38, %v440_v11 }
 0x11b   :  { %5885 = vst [vmem:[#allocation131_spill] sm:$0xff] %v4095_v41  ;;  %v2079_v5 = vmul.f32 %v5887_v22, %v4095_v41  ;;  %v473_v55 = vmul.f32 %v4050_v3, %v5888_v16  ;;  %v220_v27 = vadd.f32 %v214_v0, %v201_v32  ;;  %v246_v21 = vadd.f32 %v5889_v8, %v164_v56  ;;  %v5892_v0 = vld [vmem:[#allocation75_spill] sm:$0xff] }
 0x11c   :  { %v486_v59 = vmul.f32 %v4057_v40, %v5890_v54  ;;  %v498_v17 = vmul.f32 %v4050_v3, %v2639_v31  ;;  %v4113_v30 = vmax.f32 %v2060_v44, %v2066_v36  ;;  %v466_v60 = vadd.f32 %v460_v4, %v453_v13 }
 0x11d   :  { %v504_v49 = vmul.f32 %v4057_v40, %v2648_v34  ;;  %v516_v11 = vmul.f32 %v4062_v45, %v5886_v19  ;;  %v1911_v26 = vadd.f32 %v1794_v58, %v1613_v1  ;;  %v239_v24 = vadd.f32 %v233_v23, %v220_v27 }
 0x11e   :  { %5891 = vst [vmem:[#allocation74_spill] sm:$0xff] %v4113_v30  ;;  %v252_v32 = vmul.f32 0.1, %v246_v21  ;;  %v528_v56 = vmul.f32 %v4071_v18, %v5888_v16  ;;  %v2086_v38 = vmul.f32 %v5892_v0, %v4113_v30  ;;  %v479_v41 = vadd.f32 %v473_v55, %v466_v60 }
 0x11f   :  { %v510_v10 = vadd.f32 %v504_v49, %v498_v17  ;;  %v738_v44 = vmul.f32 %v2696_v63, %v4016_v9  ;;  %v264_v4 = vadd.f32 %v5889_v8, %v239_v24  ;;  %v540_v36 = vmul.f32 %v4089_v15, %v5890_v54 }
 0x120   :  { %v745_v27 = vmul.f32 %v4027_v6, %v5851_v2  ;;  %v758_v1 = vmul.f32 %v4032_v37, %v5852_v39  ;;  %v2092_v58 = vadd.f32 %v2086_v38, %v2079_v5  ;;  %v4132_v23 = vmax.f32 %v246_v21, %v252_v32 }
 0x121   :  { %v492_v13 = vadd.f32 %v486_v59, %v479_v41  ;;  %v522_v55 = vadd.f32 %v516_v11, %v510_v10  ;;  %v270_v17 = vmul.f32 0.1, %v264_v4  ;;  %v771_v49 = vmul.f32 %v4050_v3, %v5853_v57  ;;  %v5893_v41 = vld [vmem:[#allocation16_spill] sm:$0xff] }
 0x122   :  { %v751_v60 = vadd.f32 %v745_v27, %v738_v44  ;;  %v784_v24 = vmul.f32 %v4057_v40, %v5854_v20  ;;  %v2209_v30 = vadd.f32 %v2092_v58, %v1911_v26  ;;  %v796_v16 = vmul.f32 %v4050_v3, %v2696_v63 }
 0x123   :  { %v534_v8 = vadd.f32 %v528_v56, %v522_v55  ;;  %v553_v54 = vadd.f32 %v5809_v33, %v492_v13  ;;  %v4141_v5 = vmax.f32 %v264_v4, %v270_v17  ;;  %v802_v59 = vmul.f32 %v4057_v40, %v5851_v2  ;;  %v5894_v4 = vld [vmem:[#allocation37_spill] sm:$0xff] }
 0x124   :  { %v764_v21 = vadd.f32 %v758_v1, %v751_v60  ;;  %v814_v10 = vmul.f32 %v4062_v45, %v5852_v39  ;;  %2222 = vrot.lane.b32.xlu2 %v2209_v30, %s2505_s20  ;;  %v283_v11 = vmul.f32 %v5893_v41, %v4132_v23  ;;  %v826_v44 = vmul.f32 %v4071_v18, %v5853_v57 }
 0x125   :  { %v546_v26 = vadd.f32 %v540_v36, %v534_v8  ;;  %v559_v32 = vmul.f32 0.1, %v553_v54  ;;  %v808_v38 = vadd.f32 %v802_v59, %v796_v16  ;;  %v1036_v27 = vmul.f32 %v5894_v4, %v4016_v9  ;;  %v5895_v8 = vld [vmem:[#allocation17_spill] sm:$0xff] }
 0x126   :  { %v777_v56 = vadd.f32 %v771_v49, %v764_v21  ;;  %v1043_v30 = vmul.f32 %v4027_v6, %v5815_v62  ;;  %v1056_v13 = vmul.f32 %v4032_v37, %v5816_v28  ;;  %v290_v36 = vmul.f32 %v5895_v8, %v4141_v5 }
 0x127   :  { %v4154_v1 = vmax.f32 %v553_v54, %v559_v32  ;;  %v571_v58 = vadd.f32 %v5809_v33, %v546_v26  ;;  %v820_v55 = vadd.f32 %v814_v10, %v808_v38  ;;  %v838_v17 = vmul.f32 %v4089_v15, %v5854_v20  ;;  %v5896_v54 = vld [vmem:[#allocation24_spill] sm:$0xff] }
 0x128   :  { %v790_v16 = vadd.f32 %v784_v24, %v777_v56  ;;  %v1049_v21 = vadd.f32 %v1043_v30, %v1036_v27  ;;  %v1069_v59 = vmul.f32 %v4050_v3, %v5818_v14  ;;  %v1094_v32 = vmul.f32 %v4050_v3, %v5894_v4 }
 0x129   :  { %v577_v60 = vmul.f32 0.1, %v571_v58  ;;  %v590_v49 = vmul.f32 %v5896_v54, %v4154_v1  ;;  %v832_v41 = vadd.f32 %v826_v44, %v820_v55  ;;  %v1100_v24 = vmul.f32 %v4057_v40, %v5815_v62  ;;  %v5898_v55 = vld [vmem:[#allocation26_spill] sm:$0xff] }
 0x12a   :  { %v851_v26 = vadd.f32 %v2745_v47, %v790_v16  ;;  %v1062_v56 = vadd.f32 %v1056_v13, %v1049_v21  ;;  %v1082_v38 = vmul.f32 %v4057_v40, %v5860_v51  ;;  %v1112_v27 = vmul.f32 %v4062_v45, %v5816_v28 }
 0x12b   :  { %v4174_v10 = vmax.f32 %v571_v58, %v577_v60  ;;  %v844_v30 = vadd.f32 %v838_v17, %v832_v41  ;;  %v1106_v44 = vadd.f32 %v1100_v24, %v1094_v32  ;;  %v1124_v16 = vmul.f32 %v4071_v18, %v5818_v14 }
 0x12c   :  { %v857_v8 = vmul.f32 0.1, %v851_v26  ;;  %v1075_v20 = vadd.f32 %v1069_v59, %v1062_v56  ;;  %v1334_v58 = vmul.f32 %v2835_v29, %v4016_v9  ;;  %v1341_v13 = vmul.f32 %v4027_v6, %v5776_v50 }
 0x12d   :  { %5897 = vst [vmem:[#allocation75_spill] sm:$0xff] %v4174_v10  ;;  %v597_v54 = vmul.f32 %v5898_v55, %v4174_v10  ;;  %v869_v60 = vadd.f32 %v2745_v47, %v844_v30  ;;  %v1118_v21 = vadd.f32 %v1112_v27, %v1106_v44  ;;  %v1136_v17 = vmul.f32 %v4089_v15, %v5860_v51 }
 0x12e   :  { %v1354_v41 = vmul.f32 %v4032_v37, %v5777_v12  ;;  %v4193_v32 = vmax.f32 %v851_v26, %v857_v8  ;;  %v1088_v24 = vadd.f32 %v1082_v38, %v1075_v20  ;;  %v1347_v55 = vadd.f32 %v1341_v13, %v1334_v58  ;;  %v5900_v58 = vld [vmem:[#allocation36_spill] sm:$0xff] }
 0x12f   :  { %v1367_v59 = vmul.f32 %v4050_v3, %v5779_v7  ;;  %v296_v56 = vadd.f32 %v290_v36, %v283_v11  ;;  %v603_v14 = vadd.f32 %v597_v54, %v590_v49  ;;  %v875_v28 = vmul.f32 0.1, %v869_v60  ;;  %v5899_v36 = vld [vmem:[#allocation34_spill] sm:$0xff] }
 0x130   :  { %v1130_v10 = vadd.f32 %v1124_v16, %v1118_v21  ;;  %v1149_v30 = vadd.f32 %v5738_v61, %v1088_v24  ;;  %v1360_v27 = vadd.f32 %v1354_v41, %v1347_v55  ;;  %v1380_v44 = vmul.f32 %v4057_v40, %v5864_v48 }
 0x131   :  { %v1392_v51 = vmul.f32 %v4050_v3, %v2835_v29  ;;  %v4202_v26 = vmax.f32 %v869_v60, %v875_v28  ;;  %v1398_v38 = vmul.f32 %v4057_v40, %v5776_v50  ;;  %v1410_v11 = vmul.f32 %v4062_v45, %v5777_v12 }
 0x132   :  { %v1142_v20 = vadd.f32 %v1136_v17, %v1130_v10  ;;  %v888_v49 = vmul.f32 %v5899_v36, %v4193_v32  ;;  %v1155_v8 = vmul.f32 0.1, %v1149_v30  ;;  %v1373_v16 = vadd.f32 %v1367_v59, %v1360_v27 }
 0x133   :  { %v1422_v54 = vmul.f32 %v4071_v18, %v5779_v7  ;;  %v895_v13 = vmul.f32 %v5900_v58, %v4202_v26  ;;  %v1404_v10 = vadd.f32 %v1398_v38, %v1392_v51  ;;  %v1632_v60 = vmul.f32 %v5741_v42, %v4016_v9 }
 0x134   :  { %v1167_v28 = vadd.f32 %v5738_v61, %v1142_v20  ;;  %v1386_v21 = vadd.f32 %v1380_v44, %v1373_v16  ;;  %v1639_v17 = vmul.f32 %v4027_v6, %v2906_v25  ;;  %v1652_v41 = vmul.f32 %v4032_v37, %v5785_v53 }
 0x135   :  { %v4221_v24 = vmax.f32 %v1149_v30, %v1155_v8  ;;  %v1416_v59 = vadd.f32 %v1410_v11, %v1404_v10  ;;  %v1434_v27 = vmul.f32 %v4089_v15, %v5864_v48  ;;  %v720_v36 = vadd.f32 %v603_v14, %v296_v56  ;;  %v5901_v10 = vld [vmem:[#allocation44_spill] sm:$0xff] }
 0x136   :  { %v1173_v55 = vmul.f32 0.1, %v1167_v28  ;;  %v1447_v51 = vadd.f32 %v5745_v52, %v1386_v21  ;;  %v1645_v20 = vadd.f32 %v1639_v17, %v1632_v60  ;;  %v1665_v44 = vmul.f32 %v4050_v3, %v5868_v35 }
 0x137   :  { %v901_v38 = vadd.f32 %v895_v13, %v888_v49  ;;  %v1428_v16 = vadd.f32 %v1422_v54, %v1416_v59  ;;  %v1678_v58 = vmul.f32 %v4057_v40, %v5827_v43  ;;  %v1690_v30 = vmul.f32 %v4050_v3, %v5741_v42  ;;  %v5902_v59 = vld [vmem:[#allocation68_spill] sm:$0xff] }
 0x138   :  { %v4232_v8 = vmax.f32 %v1167_v28, %v1173_v55  ;;  %v1658_v11 = vadd.f32 %v1652_v41, %v1645_v20  ;;  %v1696_v14 = vmul.f32 %v4057_v40, %v2906_v25  ;;  %v1708_v56 = vmul.f32 %v4062_v45, %v5785_v53  ;;  %v5903_v53 = vld [vmem:[#allocation69_spill] sm:$0xff] }
 0x139   :  { %v1186_v60 = vmul.f32 %v5901_v10, %v4221_v24  ;;  %v1440_v49 = vadd.f32 %v1434_v27, %v1428_v16  ;;  %v1453_v54 = vmul.f32 0.1, %v1447_v51  ;;  %v1720_v17 = vmul.f32 %v4071_v18, %v5868_v35  ;;  %v5904_v27 = vld [vmem:[#allocation45_spill] sm:$0xff] }
 0x13a   :  { %v1671_v13 = vadd.f32 %v1665_v44, %v1658_v11  ;;  %v1702_v21 = vadd.f32 %v1696_v14, %v1690_v30  ;;  %v1930_v28 = vmul.f32 %v5750_v46, %v4016_v9  ;;  %v1018_v41 = vadd.f32 %v901_v38, %v720_v36  ;;  %v5906_v38 = vld [vmem:[#allocation70_spill] sm:$0xff] }
 0x13b   :  { %v1465_v55 = vadd.f32 %v5745_v52, %v1440_v49  ;;  %v1937_v20 = vmul.f32 %v4027_v6, %v5902_v59  ;;  %v1950_v25 = vmul.f32 %v4032_v37, %v5903_v53  ;;  %v1193_v16 = vmul.f32 %v5904_v27, %v4232_v8  ;;  %v5907_v6 = vld [vmem:[#allocation63_spill] sm:$0xff] }
 0x13c   :  { %v1684_v44 = vadd.f32 %v1678_v58, %v1671_v13  ;;  %v1714_v30 = vadd.f32 %v1708_v56, %v1702_v21  ;;  %v1732_v11 = vmul.f32 %v4089_v15, %v5827_v43  ;;  %v4253_v14 = vmax.f32 %v1447_v51, %v1453_v54  ;;  %v5909_v21 = vld [vmem:[#allocation71_spill] sm:$0xff] }
 0x13d   :  { %v1471_v9 = vmul.f32 0.1, %v1465_v55  ;;  %v1943_v36 = vadd.f32 %v1937_v20, %v1930_v28  ;;  %v1963_v10 = vmul.f32 %v4050_v3, %v5906_v38  ;;  %v1988_v37 = vmul.f32 %v4050_v3, %v5750_v46  ;;  %v5910_v3 = vld [vmem:[#allocation54_spill] sm:$0xff]  ;;  %v4376_v46 = vld [vmem:[%s5339_s0 + $0x150] sm:$0xff] }
 0x13e   :  { %5905 = vst [vmem:[#allocation16_spill] sm:$0xff] %v4253_v14  ;;  %v1726_v49 = vadd.f32 %v1720_v17, %v1714_v30  ;;  %v1745_v35 = vadd.f32 %v5907_v6, %v1684_v44  ;;  %v1994_v58 = vmul.f32 %v4057_v40, %v5902_v59  ;;  %v1976_v51 = vmul.f32 %v4057_v40, %v5909_v21 }
 0x13f   :  { %v4262_v56 = vmax.f32 %v1465_v55, %v1471_v9  ;;  %v1956_v13 = vadd.f32 %v1950_v25, %v1943_v36  ;;  %v2006_v54 = vmul.f32 %v4062_v45, %v5903_v53  ;;  %v2018_v27 = vmul.f32 %v4071_v18, %v5906_v38  ;;  %v5911_v55 = vld [vmem:[#allocation55_spill] sm:$0xff] }
 0x140   :  { %v1738_v28 = vadd.f32 %v1732_v11, %v1726_v49  ;;  %v1751_v20 = vmul.f32 0.1, %v1745_v35  ;;  %v2000_v17 = vadd.f32 %v1994_v58, %v1988_v37  ;;  %v1199_v44 = vadd.f32 %v1193_v16, %v1186_v60  ;;  %v5913_v60 = vld [vmem:[#allocation73_spill] sm:$0xff] }
 0x141   :  { %5908 = vst [vmem:[#allocation17_spill] sm:$0xff] %v4262_v56  ;;  %v1484_v30 = vmul.f32 %v5910_v3, %v4253_v14  ;;  %v1969_v59 = vadd.f32 %v1963_v10, %v1956_v13  ;;  %v2030_v25 = vmul.f32 %v4089_v15, %v5909_v21  ;;  %v1491_v40 = vmul.f32 %v5911_v55, %v4262_v56  ;;  %v5915_v10 = vld [vmem:[#allocation64_spill] sm:$0xff]  ;;  %v5930_v56 = vld [vmem:[#allocation29_spill] sm:$0xff] }
 0x142   :  { %v4276_v9 = vmax.f32 %v1745_v35, %v1751_v20  ;;  %v1763_v45 = vadd.f32 %v5907_v6, %v1738_v28  ;;  %v2012_v11 = vadd.f32 %v2006_v54, %v2000_v17  ;;  %v1316_v58 = vadd.f32 %v1199_v44, %v1018_v41  ;;  %v5916_v35 = vld [vmem:[#allocation65_spill] sm:$0xff] }
 0x143   :  { %v1982_v36 = vadd.f32 %v1976_v51, %v1969_v59  ;;  %v1497_v38 = vadd.f32 %v1491_v40, %v1484_v30  ;;  %v5919_v40 = vld [vmem:[#allocation11_spill] sm:$0xff]  ;;  %v4429_v43 = vstv %s4326_s1  ;;  %v4441_v14 = vstv %s4353_s17  ;;  %s4496_s1 = sld [smem:[#allocation8 + $0x102]] }
 0x144   :  { %5912 = vst [vmem:[#allocation24_spill] sm:$0xff] %v4276_v9  ;;  %v1769_v49 = vmul.f32 0.1, %v1763_v45  ;;  %v2024_v37 = vadd.f32 %v2018_v27, %v2012_v11  ;;  %v1782_v13 = vmul.f32 %v5915_v10, %v4276_v9  ;;  %s4623_s17 = sld [smem:[#allocation8 + $0x200]] }
 0x145   :  { %v2043_v16 = vadd.f32 %v5913_v60, %v1982_v36  ;;  %v1614_v59 = vadd.f32 %v1497_v38, %v1316_v58  ;;  %v5922_v38 = vld [vmem:[#allocation117_spill] sm:$0xff] }
 0x146   :  { %v4280_v3 = vmax.f32 %v1763_v45, %v1769_v49  ;;  %v2036_v21 = vadd.f32 %v2030_v25, %v2024_v37  ;;  %v5921_v45 = vld [vmem:[#allocation12_spill] sm:$0xff]  ;;  %v5923_v37 = vld [vmem:[#allocation13_spill] sm:$0xff] }
 0x147   :  { %v2049_v53 = vmul.f32 0.1, %v2043_v16  ;;  %v307_v11 = vmul.f32 %v5922_v38, %v5921_v45 }
 0x148   :  { %5914 = vst [vmem:[#allocation26_spill] sm:$0xff] %v4280_v3  ;;  %v1789_v20 = vmul.f32 %v5916_v35, %v4280_v3  ;;  %v2061_v28 = vadd.f32 %v5913_v60, %v2036_v21  ;;  %v5920_v21 = vld [vmem:[#allocation116_spill] sm:$0xff]  ;;  %v4369_v60 = vld [vmem:[%s5339_s0 + $0x120] sm:$0xff] }
 0x149   :  { %v4287_v54 = vmax.f32 %v2043_v16, %v2049_v53  ;;  %v301_v53 = vmul.f32 %v5920_v21, %v5919_v40  ;;  %v608_v36 = vmul.f32 %v5920_v21, %v2639_v31  ;;  %v906_v35 = vmul.f32 %v5920_v21, %v2696_v63 }
 0x14a   :  { %v1795_v51 = vadd.f32 %v1789_v20, %v1782_v13  ;;  %v2067_v41 = vmul.f32 0.1, %v2061_v28  ;;  %v4316_v13 = vld [vmem:[%s5339_s0 + $0x1b8] sm:$0xff]  ;;  %v912_v20 = vmul.f32 %v5922_v38, %v5851_v2 }
 0x14b   :  { %5917 = vst [vmem:[#allocation34_spill] sm:$0xff] %v4287_v54  ;;  %v2080_v27 = vmul.f32 %v5887_v22, %v4287_v54  ;;  %v614_v22 = vmul.f32 %v5922_v38, %v2648_v34  ;;  %v313_v49 = vadd.f32 %v307_v11, %v301_v53  ;;  %v4337_v53 = vmul.f32 %v5920_v21, %v5894_v4 }
 0x14c   :  { %v4289_v17 = vmax.f32 %v2061_v28, %v2067_v41  ;;  %v1912_v44 = vadd.f32 %v1795_v51, %v1614_v59  ;;  %v5924_v59 = vld [vmem:[#allocation14_spill] sm:$0xff]  ;;  %v609_v21 = vmul.f32 %v4071_v18, %v2639_v31  ;;  %v300_v54 = vmul.f32 %v4369_v60, %v5919_v40 }
 0x14d   :  { %v620_v16 = vadd.f32 %v614_v22, %v608_v36  ;;  %v345_v51 = vmul.f32 %v4316_v13, %v5924_v59  ;;  %v5926_v36 = vld [vmem:[#allocation15_spill] sm:$0xff] }
 0x14e   :  { %5918 = vst [vmem:[#allocation36_spill] sm:$0xff] %v4289_v17  ;;  %v2087_v30 = vmul.f32 %v5892_v0, %v4289_v17  ;;  %v4307_v0 = vld [vmem:[%s5339_s0 + $0x188] sm:$0xff]  ;;  %v4364_v17 = vmul.f32 %v5922_v38, %v5815_v62 }
 0x14f   :  { %v326_v58 = vmul.f32 %v4307_v0, %v5923_v37  ;;  %v626_v10 = vmul.f32 %v4307_v0, %v5886_v19 }
 0x150   :  { %v2093_v25 = vadd.f32 %v2087_v30, %v2080_v27  ;;  %v5925_v27 = vld [vmem:[#allocation22_spill] sm:$0xff]  ;;  %v4331_v30 = vld [vmem:[%s5339_s0 + $0x1e8] sm:$0xff] }
 0x151   :  { %v332_v28 = vadd.f32 %v326_v58, %v313_v49  ;;  %v632_v41 = vadd.f32 %v626_v10, %v620_v16  ;;  %v364_v22 = vmul.f32 %v4331_v30, %v5926_v36  ;;  %v5927_v58 = vld [vmem:[#allocation23_spill] sm:$0xff]  ;;  %v302_v10 = vmul.f32 %v4071_v18, %v5919_v40 }
 0x152   :  { %v2210_v55 = vadd.f32 %v2093_v25, %v1912_v44  ;;  %v638_v44 = vmul.f32 %v4316_v13, %v5925_v27  ;;  %v918_v25 = vadd.f32 %v912_v20, %v906_v35  ;;  %v650_v16 = vmul.f32 %v4331_v30, %v5927_v58 }
 0x153   :  { %v351_v11 = vadd.f32 %v345_v51, %v332_v28  ;;  %v308_v35 = vmul.f32 %v4089_v15, %v5921_v45  ;;  %v615_v20 = vmul.f32 %v4089_v15, %v2648_v34  ;;  %v4358_v28 = vld [vmem:[%s5339_s0 + $0x190] sm:$0xff]  ;;  %v607_v40 = vmul.f32 %v4369_v60, %v2639_v31 }
 0x154   :  { %2224 = vrot.lane.b32.xlu2 %v2210_v55, %s2505_s20  ;;  %v924_v55 = vmul.f32 %v4307_v0, %v5852_v39  ;;  %v644_v49 = vadd.f32 %v638_v44, %v632_v41  ;;  %v327_v38 = vmul.f32 %v4358_v28, %v5923_v37  ;;  %s4482_s20 = sld [smem:[#allocation8 + $0x100]] }
 0x155   :  { %v370_v51 = vadd.f32 %v364_v22, %v351_v11  ;;  %v4385_v11 = vld [vmem:[%s5339_s0 + $0x180] sm:$0xff] }
 0x156   :  { %v656_v41 = vadd.f32 %v650_v16, %v644_v49  ;;  %v4360_v44 = vadd.f32 %v924_v55, %v918_v25  ;;  %v306_v25 = vmul.f32 %v4376_v46, %v5921_v45  ;;  %v314_v55 = vadd.f32 %v308_v35, %v302_v10  ;;  %v4390_v22 = vld [vmem:[%s5339_s0 + $0x1c0] sm:$0xff] }
 0x157   :  { %v5928_v49 = vld [vmem:[#allocation19_spill] sm:$0xff]  ;;  %v613_v10 = vmul.f32 %v4376_v46, %v2648_v34  ;;  %v621_v35 = vadd.f32 %v615_v20, %v609_v21  ;;  %v325_v3 = vmul.f32 %v4385_v11, %v5923_v37  ;;  %v346_v9 = vmul.f32 %v4390_v22, %v5924_v59  ;;  %v4409_v34 = vld [vmem:[%s5339_s0 + $0x1f0] sm:$0xff] }
 0x158   :  { %v376_v16 = vadd.f32 %v370_v51, %v5928_v49  ;;  %v312_v45 = vadd.f32 %v306_v25, %v300_v54  ;;  %v333_v6 = vadd.f32 %v327_v38, %v314_v55  ;;  %v4404_v51 = vld [vmem:[%s5339_s0 + $0x1b0] sm:$0xff]  ;;  %v625_v20 = vmul.f32 %v4385_v11, %v5886_v19 }
 0x159   :  { %v619_v21 = vadd.f32 %v613_v10, %v607_v40  ;;  %v627_v25 = vmul.f32 %v4358_v28, %v5886_v19  ;;  %v344_v38 = vmul.f32 %v4404_v51, %v5924_v59  ;;  %v365_v37 = vmul.f32 %v4409_v34, %v5926_v36  ;;  %v4426_v40 = vld [vmem:[%s5339_s0 + $0x1e0] sm:$0xff]  ;;  %v5929_v59 = vld [vmem:[#allocation121_spill] sm:$0xff] }
 0x15a   :  { %v382_v54 = vmul.f32 0.1, %v376_v16  ;;  %v331_v55 = vadd.f32 %v325_v3, %v312_v45  ;;  %v352_v31 = vadd.f32 %v346_v9, %v333_v6  ;;  %v4432_v19 = vstv %s4339_s16  ;;  %s4579_s16 = sld [smem:[#allocation8 + $0x182]] }
 0x15b   :  { %v631_v3 = vadd.f32 %v625_v20, %v619_v21  ;;  %v363_v6 = vmul.f32 %v4426_v40, %v5926_v36  ;;  %v395_v42 = vmul.f32 %v4429_v43, %v5929_v59  ;;  %v402_v52 = vmul.f32 %v4432_v19, %v5930_v56 }
 0x15c   :  { %v388_v10 = vmax.f32 %v376_v16, %v382_v54  ;;  %v350_v45 = vadd.f32 %v344_v38, %v331_v55  ;;  %v371_v9 = vadd.f32 %v365_v37, %v352_v31  ;;  %v633_v48 = vadd.f32 %v627_v25, %v621_v35 }
 0x15d   :  { %v637_v16 = vmul.f32 %v4404_v51, %v5925_v27  ;;  %v639_v31 = vmul.f32 %v4390_v22, %v5925_v27  ;;  %v408_v37 = vadd.f32 %v402_v52, %v395_v42  ;;  %v649_v56 = vmul.f32 %v4426_v40, %v5927_v58 }
 0x15e   :  { %v369_v54 = vadd.f32 %v363_v6, %v350_v45  ;;  %v377_v21 = vadd.f32 %v371_v9, %v5928_v49  ;;  %v415_v20 = vmul.f32 %v4441_v14, %v388_v10  ;;  %v651_v35 = vmul.f32 %v4409_v34, %v5927_v58 }
 0x15f   :  { %v643_v59 = vadd.f32 %v637_v16, %v631_v3  ;;  %v645_v38 = vadd.f32 %v639_v31, %v633_v48  ;;  %v662_v10 = vadd.f32 %v656_v41, %v5809_v33  ;;  %v4458_v9 = vstv %s4411_s9 }
 0x160   :  { %v375_v25 = vadd.f32 %v369_v54, %v5928_v49  ;;  %v383_v55 = vmul.f32 0.1, %v377_v21  ;;  %v421_v45 = vadd.f32 %v415_v20, %v408_v37  ;;  %v936_v52 = vmul.f32 %v4316_v13, %v5853_v57  ;;  %v5931_v37 = vld [vmem:[#allocation106_spill] sm:$0xff] }
 0x161   :  { %v655_v6 = vadd.f32 %v649_v56, %v643_v59  ;;  %v396_v3 = vmul.f32 %v4429_v43, %v4132_v23  ;;  %v403_v16 = vmul.f32 %v4432_v19, %v4141_v5  ;;  %v4467_v54 = vstv %s4421_s10  ;;  %v5932_v56 = vld [vmem:[#allocation25_spill] sm:$0xff]  ;;  %v5933_v49 = vld [vmem:[#allocation30_spill] sm:$0xff]  ;;  %s4801_s10 = sld [smem:[#allocation8 + $0x302]] }
 0x162   :  { %v381_v42 = vmul.f32 0.1, %v375_v25  ;;  %v389_v58 = vmax.f32 %v377_v21, %v383_v55  ;;  %v657_v48 = vadd.f32 %v651_v35, %v645_v38  ;;  %v668_v20 = vmul.f32 0.1, %v662_v10  ;;  %v5934_v38 = vld [vmem:[#allocation107_spill] sm:$0xff] }
 0x163   :  { %v661_v41 = vadd.f32 %v655_v6, %v5809_v33  ;;  %v394_v59 = vmul.f32 %v4429_v43, %v5931_v37  ;;  %v401_v27 = vmul.f32 %v4432_v19, %v5932_v56  ;;  %v681_v23 = vmul.f32 %v4458_v9, %v5933_v49 }
 0x164   :  { %v387_v31 = vmax.f32 %v375_v25, %v381_v42  ;;  %v409_v36 = vadd.f32 %v403_v16, %v396_v3  ;;  %v663_v5 = vadd.f32 %v657_v48, %v5809_v33  ;;  %v674_v21 = vmax.f32 %v662_v10, %v668_v20  ;;  %v5935_v16 = vld [vmem:[#allocation108_spill] sm:$0xff]  ;;  %v5936_v10 = vld [vmem:[#allocation122_spill] sm:$0xff] }
 0x165   :  { %v667_v7 = vmul.f32 0.1, %v661_v41  ;;  %v407_v35 = vadd.f32 %v401_v27, %v394_v59  ;;  %v680_v25 = vmul.f32 %v4458_v9, %v5934_v38  ;;  %v682_v6 = vmul.f32 %v4458_v9, %v4154_v1 }
 0x166   :  { %v414_v55 = vmul.f32 %v4441_v14, %v387_v31  ;;  %v416_v42 = vmul.f32 %v4441_v14, %v389_v58  ;;  %v669_v49 = vmul.f32 0.1, %v663_v5  ;;  %v687_v48 = vmul.f32 %v4467_v54, %v5935_v16  ;;  %v5937_v31 = vld [vmem:[#allocation75_spill] sm:$0xff] }
 0x167   :  { %v673_v3 = vmax.f32 %v661_v41, %v667_v7  ;;  %v688_v20 = vmul.f32 %v4467_v54, %v5936_v10  ;;  %v689_v37 = vmul.f32 %v4467_v54, %v5937_v31  ;;  %v4494_v59 = vstv %s4454_s2 }
 0x168   :  { %v420_v27 = vadd.f32 %v414_v55, %v407_v35  ;;  %5938 = vst [vmem:[#allocation44_spill] sm:$0xff] %v4494_v59  ;;  %v675_v1 = vmax.f32 %v663_v5, %v669_v49  ;;  %v693_v58 = vadd.f32 %v687_v48, %v680_v25  ;;  %v701_v41 = vmul.f32 %v4494_v59, %v674_v21 }
 0x169   :  { %v700_v7 = vmul.f32 %v4494_v59, %v673_v3  ;;  %v694_v56 = vadd.f32 %v688_v20, %v681_v23  ;;  %v695_v38 = vadd.f32 %v689_v37, %v682_v6  ;;  %v905_v35 = vmul.f32 %v4369_v60, %v2696_v63 }
 0x16a   :  { %v907_v55 = vmul.f32 %v4071_v18, %v2696_v63  ;;  %v702_v16 = vmul.f32 %v4494_v59, %v675_v1  ;;  %v911_v31 = vmul.f32 %v4376_v46, %v5851_v2  ;;  %v913_v5 = vmul.f32 %v4089_v15, %v5851_v2 }
 0x16b   :  { %v706_v10 = vadd.f32 %v700_v7, %v693_v58  ;;  %v4509_v25 = vadd.f32 %v416_v42, %v409_v36  ;;  %v707_v21 = vadd.f32 %v701_v41, %v694_v56  ;;  %v923_v23 = vmul.f32 %v4385_v11, %v5852_v39  ;;  %v5939_v41 = vld [vmem:[#allocation32_spill] sm:$0xff] }
 0x16c   :  { %v925_v6 = vmul.f32 %v4358_v28, %v5852_v39  ;;  %v4515_v49 = vadd.f32 %v702_v16, %v695_v38  ;;  %v917_v3 = vadd.f32 %v911_v31, %v905_v35  ;;  %v919_v48 = vadd.f32 %v913_v5, %v907_v55  ;;  %v5941_v5 = vld [vmem:[#allocation123_spill] sm:$0xff] }
 0x16d   :  { %v935_v20 = vmul.f32 %v4404_v51, %v5853_v57  ;;  %v4519_v37 = vadd.f32 %v706_v10, %v420_v27  ;;  %v4521_v36 = vadd.f32 %v707_v21, %v421_v45  ;;  %v937_v42 = vmul.f32 %v4390_v22, %v5853_v57 }
 0x16e   :  { %v942_v1 = vadd.f32 %v936_v52, %v4360_v44  ;;  %v929_v58 = vadd.f32 %v923_v23, %v917_v3  ;;  %v931_v7 = vadd.f32 %v925_v6, %v919_v48  ;;  %v947_v56 = vmul.f32 %v4426_v40, %v5939_v41  ;;  %v5940_v52 = vld [vmem:[#allocation109_spill] sm:$0xff]  ;;  %v5942_v6 = vld [vmem:[#allocation110_spill] sm:$0xff]  ;;  %v5943_v48 = vld [vmem:[#allocation124_spill] sm:$0xff] }
 0x16f   :  { %v948_v38 = vmul.f32 %v4331_v30, %v5939_v41  ;;  %v949_v35 = vmul.f32 %v4409_v34, %v5939_v41  ;;  %v4533_v27 = vstv %s4482_s20  ;;  %v4536_v45 = vstv %s4487_s13 }
 0x170   :  { %v4539_v55 = vstv %s4496_s1  ;;  %v941_v16 = vadd.f32 %v935_v20, %v929_v58  ;;  %v943_v10 = vadd.f32 %v937_v42, %v931_v7  ;;  %v978_v31 = vmul.f32 %v4533_v27, %v5940_v52 }
 0x171   :  { %v954_v44 = vadd.f32 %v948_v38, %v942_v1  ;;  %v979_v21 = vmul.f32 %v4533_v27, %v5941_v5  ;;  %v980_v23 = vmul.f32 %v4533_v27, %v4193_v32  ;;  %v985_v3 = vmul.f32 %v4536_v45, %v5942_v6 }
 0x172   :  { %v986_v59 = vmul.f32 %v4536_v45, %v5943_v48  ;;  %v953_v41 = vadd.f32 %v947_v56, %v941_v16  ;;  %v955_v57 = vadd.f32 %v949_v35, %v943_v10  ;;  %v987_v42 = vmul.f32 %v4536_v45, %v4202_v26  ;;  %v5944_v16 = vld [vmem:[#allocation39_spill] sm:$0xff] }
 0x173   :  { %v960_v20 = vadd.f32 %v954_v44, %v2745_v47  ;;  %v991_v1 = vadd.f32 %v985_v3, %v978_v31  ;;  %v1203_v7 = vmul.f32 %v4369_v60, %v5894_v4  ;;  %v1205_v32 = vmul.f32 %v4071_v18, %v5894_v4  ;;  %v5945_v3 = vld [vmem:[#allocation40_spill] sm:$0xff] }
 0x174   :  { %v992_v58 = vadd.f32 %v986_v59, %v979_v21  ;;  %v959_v38 = vadd.f32 %v953_v41, %v2745_v47  ;;  %v961_v52 = vadd.f32 %v955_v57, %v2745_v47  ;;  %v993_v56 = vadd.f32 %v987_v42, %v980_v23 }
 0x175   :  { %v966_v5 = vmul.f32 0.1, %v960_v20  ;;  %v1209_v26 = vmul.f32 %v4376_v46, %v5815_v62  ;;  %v1211_v59 = vmul.f32 %v4089_v15, %v5815_v62  ;;  %v1216_v35 = vadd.f32 %v4364_v17, %v4337_v53 }
 0x176   :  { %v1221_v41 = vmul.f32 %v4385_v11, %v5944_v16  ;;  %v965_v10 = vmul.f32 0.1, %v959_v38  ;;  %v967_v57 = vmul.f32 0.1, %v961_v52  ;;  %v1222_v31 = vmul.f32 %v4307_v0, %v5944_v16 }
 0x177   :  { %v972_v44 = vmax.f32 %v960_v20, %v966_v5  ;;  %v1215_v21 = vadd.f32 %v1209_v26, %v1203_v7  ;;  %v1217_v23 = vadd.f32 %v1211_v59, %v1205_v32  ;;  %v1223_v6 = vmul.f32 %v4358_v28, %v5944_v16  ;;  %v5946_v26 = vld [vmem:[#allocation41_spill] sm:$0xff] }
 0x178   :  { %v1233_v48 = vmul.f32 %v4404_v51, %v5945_v3  ;;  %v971_v42 = vmax.f32 %v959_v38, %v965_v10  ;;  %v973_v62 = vmax.f32 %v961_v52, %v967_v57  ;;  %v1228_v53 = vadd.f32 %v1222_v31, %v1216_v35 }
 0x179   :  { %v999_v17 = vmul.f32 %v4539_v55, %v972_v44  ;;  %v1227_v4 = vadd.f32 %v1221_v41, %v1215_v21  ;;  %v1229_v20 = vadd.f32 %v1223_v6, %v1217_v23  ;;  %v1234_v5 = vmul.f32 %v4316_v13, %v5945_v3 }
 0x17a   :  { %v1235_v7 = vmul.f32 %v4390_v22, %v5945_v3  ;;  %v998_v32 = vmul.f32 %v4539_v55, %v971_v42  ;;  %v1000_v38 = vmul.f32 %v4539_v55, %v973_v62  ;;  %v1245_v59 = vmul.f32 %v4426_v40, %v5946_v26 }
 0x17b   :  { %v1005_v52 = vadd.f32 %v999_v17, %v992_v58  ;;  %v1239_v35 = vadd.f32 %v1233_v48, %v1227_v4  ;;  %v1240_v10 = vadd.f32 %v1234_v5, %v1228_v53  ;;  %v1246_v57 = vmul.f32 %v4331_v30, %v5946_v26  ;;  %v5949_v53 = vld [vmem:[#allocation111_spill] sm:$0xff] }
 0x17c   :  { %v1241_v41 = vadd.f32 %v1235_v7, %v1229_v20  ;;  %v714_v44 = vadd.f32 %v4515_v49, %v4509_v25  ;;  %v1004_v31 = vadd.f32 %v998_v32, %v991_v1  ;;  %v1006_v21 = vadd.f32 %v1000_v38, %v993_v56  ;;  %v5950_v56 = vld [vmem:[#allocation125_spill] sm:$0xff]  ;;  %v5951_v32 = vld [vmem:[#allocation112_spill] sm:$0xff] }
 0x17d   :  { %v1247_v23 = vmul.f32 %v4409_v34, %v5946_v26  ;;  %v1251_v6 = vadd.f32 %v1245_v59, %v1239_v35  ;;  %v1252_v62 = vadd.f32 %v1246_v57, %v1240_v10  ;;  %v4596_v58 = vstv %s4560_s14 }
 0x17e   :  { %5947 = vst [vmem:[#allocation45_spill] sm:$0xff] %v4596_v58  ;;  %v4599_v42 = vstv %s4562_s15  ;;  %v1010_v4 = vadd.f32 %v1004_v31, %v4519_v37  ;;  %v1011_v48 = vadd.f32 %v1005_v52, %v4521_v36  ;;  %v1276_v25 = vmul.f32 %v4596_v58, %v5949_v53  ;;  %v5952_v36 = vld [vmem:[#allocation126_spill] sm:$0xff] }
 0x17f   :  { %5948 = vst [vmem:[#allocation54_spill] sm:$0xff] %v4599_v42  ;;  %v1253_v17 = vadd.f32 %v1247_v23, %v1241_v41  ;;  %v1257_v49 = vadd.f32 %v1251_v6, %v5738_v61  ;;  %v1258_v1 = vadd.f32 %v1252_v62, %v5738_v61  ;;  %v1277_v20 = vmul.f32 %v4596_v58, %v5950_v56 }
 0x180   :  { %v1278_v5 = vmul.f32 %v4596_v58, %v4221_v24  ;;  %v1283_v37 = vmul.f32 %v4599_v42, %v5951_v32  ;;  %v1284_v38 = vmul.f32 %v4599_v42, %v5952_v36  ;;  %v1285_v52 = vmul.f32 %v4599_v42, %v4232_v8 }
 0x181   :  { %v1259_v7 = vadd.f32 %v1253_v17, %v5738_v61  ;;  %v1263_v59 = vmul.f32 0.1, %v1257_v49  ;;  %v1264_v35 = vmul.f32 0.1, %v1258_v1  ;;  %v4619_v10 = vstv %s4579_s16  ;;  %v4628_v17 = vld [vmem:[%s5339_s0 + $0x128] sm:$0xff] }
 0x182   :  { %v1501_v41 = vmul.f32 %v4369_v60, %v2835_v29  ;;  %v1289_v24 = vadd.f32 %v1283_v37, %v1276_v25  ;;  %v1290_v31 = vadd.f32 %v1284_v38, %v1277_v20  ;;  %v1291_v23 = vadd.f32 %v1285_v52, %v1278_v5 }
 0x183   :  { %v1265_v57 = vmul.f32 0.1, %v1259_v7  ;;  %v1269_v6 = vmax.f32 %v1257_v49, %v1263_v59  ;;  %v1270_v62 = vmax.f32 %v1258_v1, %v1264_v35  ;;  %v1502_v8 = vmul.f32 %v4628_v17, %v2835_v29  ;;  %v4641_v49 = vld [vmem:[%s5339_s0 + $0x158] sm:$0xff] }
 0x184   :  { %v1503_v53 = vmul.f32 %v4071_v18, %v2835_v29  ;;  %v1507_v25 = vmul.f32 %v4376_v46, %v5776_v50  ;;  %v1508_v1 = vmul.f32 %v4641_v49, %v5776_v50  ;;  %v1509_v20 = vmul.f32 %v4089_v15, %v5776_v50  ;;  %v5953_v50 = vld [vmem:[#allocation50_spill] sm:$0xff] }
 0x185   :  { %v1271_v56 = vmax.f32 %v1259_v7, %v1265_v57  ;;  %v1296_v5 = vmul.f32 %v4619_v10, %v1269_v6  ;;  %v1297_v7 = vmul.f32 %v4619_v10, %v1270_v62  ;;  %v1519_v32 = vmul.f32 %v4385_v11, %v5777_v12 }
 0x186   :  { %v1520_v37 = vmul.f32 %v4307_v0, %v5777_v12  ;;  %v1513_v38 = vadd.f32 %v1507_v25, %v1501_v41  ;;  %v1514_v52 = vadd.f32 %v1508_v1, %v1502_v8  ;;  %v1515_v59 = vadd.f32 %v1509_v20, %v1503_v53 }
 0x187   :  { %v1298_v36 = vmul.f32 %v4619_v10, %v1271_v56  ;;  %v1302_v35 = vadd.f32 %v1296_v5, %v1289_v24  ;;  %v1303_v57 = vadd.f32 %v1297_v7, %v1290_v31  ;;  %v1521_v6 = vmul.f32 %v4358_v28, %v5777_v12  ;;  %v5956_v7 = vld [vmem:[#allocation113_spill] sm:$0xff] }
 0x188   :  { %v1531_v62 = vmul.f32 %v4404_v51, %v5953_v50  ;;  %v4660_v29 = vadd.f32 %v1006_v21, %v714_v44  ;;  %v1525_v42 = vadd.f32 %v1519_v32, %v1513_v38  ;;  %v1526_v61 = vadd.f32 %v1520_v37, %v1514_v52  ;;  %v5954_v44 = vld [vmem:[#allocation51_spill] sm:$0xff] }
 0x189   :  { %v1532_v58 = vmul.f32 %v4316_v13, %v5953_v50  ;;  %v1304_v56 = vadd.f32 %v1298_v36, %v1291_v23  ;;  %v4664_v41 = vadd.f32 %v1302_v35, %v1010_v4  ;;  %v1527_v8 = vadd.f32 %v1521_v6, %v1515_v59  ;;  %v5961_v59 = vld [vmem:[#allocation53_spill] sm:$0xff] }
 0x18a   :  { %v1533_v24 = vmul.f32 %v4390_v22, %v5953_v50  ;;  %v4668_v31 = vadd.f32 %v1303_v57, %v1011_v48  ;;  %v1537_v53 = vadd.f32 %v1531_v62, %v1525_v42  ;;  %v1543_v21 = vmul.f32 %v4426_v40, %v5954_v44  ;;  %v5957_v48 = vld [vmem:[#allocation127_spill] sm:$0xff]  ;;  %v5962_v57 = vld [vmem:[#allocation114_spill] sm:$0xff]  ;;  %v5963_v62 = vld [vmem:[#allocation128_spill] sm:$0xff] }
 0x18b   :  { %v1538_v25 = vadd.f32 %v1532_v58, %v1526_v61  ;;  %v1544_v20 = vmul.f32 %v4331_v30, %v5954_v44  ;;  %v1545_v4 = vmul.f32 %v4409_v34, %v5954_v44  ;;  %v4677_v23 = vstv %s4623_s17  ;;  %v5958_v61 = vld [vmem:[#allocation16_spill] sm:$0xff] }
 0x18c   :  { %v1539_v1 = vadd.f32 %v1533_v24, %v1527_v8  ;;  %5955 = vst [vmem:[#allocation55_spill] sm:$0xff] %v4677_v23  ;;  %v1549_v5 = vadd.f32 %v1543_v21, %v1537_v53  ;;  %v1574_v32 = vmul.f32 %v4677_v23, %v5956_v7  ;;  %v1575_v42 = vmul.f32 %v4677_v23, %v5957_v48  ;;  %v5964_v24 = vld [vmem:[#allocation17_spill] sm:$0xff] }
 0x18d   :  { %v1576_v58 = vmul.f32 %v4677_v23, %v5958_v61  ;;  %v1550_v37 = vadd.f32 %v1544_v20, %v1538_v25  ;;  %v4686_v38 = vstv %s4634_s19  ;;  %v4689_v52 = vstv %s4649_s23 }
 0x18e   :  { %v1551_v36 = vadd.f32 %v1545_v4, %v1539_v1  ;;  %5959 = vst [vmem:[#allocation64_spill] sm:$0xff] %v4686_v38  ;;  %v1555_v35 = vadd.f32 %v1549_v5, %v5961_v59  ;;  %v1581_v6 = vmul.f32 %v4686_v38, %v5962_v57  ;;  %v1582_v8 = vmul.f32 %v4686_v38, %v5963_v62  ;;  %v5965_v1 = vld [vmem:[#allocation56_spill] sm:$0xff] }
 0x18f   :  { %5960 = vst [vmem:[#allocation65_spill] sm:$0xff] %v4689_v52  ;;  %v1583_v53 = vmul.f32 %v4686_v38, %v5964_v24  ;;  %v1556_v21 = vadd.f32 %v1550_v37, %v5961_v59  ;;  %v1799_v20 = vmul.f32 %v4369_v60, %v5965_v1  ;;  %v1800_v4 = vmul.f32 %v4628_v17, %v5965_v1  ;;  %v5966_v37 = vld [vmem:[#allocation57_spill] sm:$0xff] }
 0x190   :  { %v1557_v25 = vadd.f32 %v1551_v36, %v5961_v59  ;;  %v1561_v5 = vmul.f32 0.1, %v1555_v35  ;;  %v1587_v7 = vadd.f32 %v1581_v6, %v1574_v32  ;;  %v1588_v48 = vadd.f32 %v1582_v8, %v1575_v42  ;;  %v5967_v42 = vld [vmem:[#allocation59_spill] sm:$0xff] }
 0x191   :  { %v1589_v61 = vadd.f32 %v1583_v53, %v1576_v58  ;;  %v1562_v57 = vmul.f32 0.1, %v1556_v21  ;;  %v1801_v62 = vmul.f32 %v4071_v18, %v5965_v1  ;;  %v1805_v36 = vmul.f32 %v4376_v46, %v5966_v37 }
 0x192   :  { %v1563_v23 = vmul.f32 0.1, %v1557_v25  ;;  %v1567_v24 = vmax.f32 %v1555_v35, %v1561_v5  ;;  %v1806_v38 = vmul.f32 %v4641_v49, %v5966_v37  ;;  %v1807_v32 = vmul.f32 %v4089_v15, %v5966_v37 }
 0x193   :  { %v1817_v58 = vmul.f32 %v4385_v11, %v5967_v42  ;;  %v1568_v6 = vmax.f32 %v1556_v21, %v1562_v57  ;;  %v1811_v53 = vadd.f32 %v1805_v36, %v1799_v20  ;;  %v1818_v18 = vmul.f32 %v4307_v0, %v5967_v42  ;;  %v5968_v21 = vld [vmem:[#allocation60_spill] sm:$0xff] }
 0x194   :  { %v1569_v8 = vmax.f32 %v1557_v25, %v1563_v23  ;;  %v1594_v1 = vmul.f32 %v4689_v52, %v1567_v24  ;;  %v1812_v35 = vadd.f32 %v1806_v38, %v1800_v4  ;;  %v1813_v5 = vadd.f32 %v1807_v32, %v1801_v62 }
 0x195   :  { %v1819_v59 = vmul.f32 %v4358_v28, %v5967_v42  ;;  %v1595_v44 = vmul.f32 %v4689_v52, %v1568_v6  ;;  %v1823_v37 = vadd.f32 %v1817_v58, %v1811_v53  ;;  %v1829_v23 = vmul.f32 %v4404_v51, %v5968_v21  ;;  %v5969_v6 = vld [vmem:[#allocation61_spill] sm:$0xff] }
 0x196   :  { %v1596_v15 = vmul.f32 %v4689_v52, %v1569_v8  ;;  %v1600_v25 = vadd.f32 %v1594_v1, %v1587_v7  ;;  %v1824_v20 = vadd.f32 %v1818_v18, %v1812_v35  ;;  %v1830_v38 = vmul.f32 %v4316_v13, %v5968_v21  ;;  %v5972_v18 = vld [vmem:[#allocation115_spill] sm:$0xff] }
 0x197   :  { %v1825_v57 = vadd.f32 %v1819_v59, %v1813_v5  ;;  %v4732_v4 = vadd.f32 %v1304_v56, %v4660_v29  ;;  %v1601_v62 = vadd.f32 %v1595_v44, %v1588_v48  ;;  %v1831_v36 = vmul.f32 %v4390_v22, %v5968_v21  ;;  %v5973_v5 = vld [vmem:[#allocation129_spill] sm:$0xff] }
 0x198   :  { %v1835_v24 = vadd.f32 %v1829_v23, %v1823_v37  ;;  %v1602_v32 = vadd.f32 %v1596_v15, %v1589_v61  ;;  %v1836_v58 = vadd.f32 %v1830_v38, %v1824_v20  ;;  %v1841_v1 = vmul.f32 %v4426_v40, %v5969_v6  ;;  %v5974_v15 = vld [vmem:[#allocation24_spill] sm:$0xff]  ;;  %v5975_v23 = vld [vmem:[#allocation63_spill] sm:$0xff] }
 0x199   :  { %v1842_v59 = vmul.f32 %v4331_v30, %v5969_v6  ;;  %v1606_v7 = vadd.f32 %v1600_v25, %v4664_v41  ;;  %v1607_v8 = vadd.f32 %v1601_v62, %v4668_v31  ;;  %v1837_v53 = vadd.f32 %v1831_v36, %v1825_v57  ;;  %v5976_v57 = vld [vmem:[#allocation118_spill] sm:$0xff] }
 0x19a   :  { %v1843_v29 = vmul.f32 %v4409_v34, %v5969_v6  ;;  %v1847_v56 = vadd.f32 %v1841_v1, %v1835_v24  ;;  %v4745_v48 = vstv %s4704_s24  ;;  %v4748_v61 = vstv %s4710_s25  ;;  %v5977_v62 = vld [vmem:[#allocation130_spill] sm:$0xff] }
 0x19b   :  { %v1848_v44 = vadd.f32 %v1842_v59, %v1836_v58  ;;  %5970 = vst [vmem:[#allocation116_spill] sm:$0xff] %v4745_v48  ;;  %v1872_v35 = vmul.f32 %v4745_v48, %v5972_v18  ;;  %v1873_v41 = vmul.f32 %v4745_v48, %v5973_v5  ;;  %v1874_v31 = vmul.f32 %v4745_v48, %v5974_v15  ;;  %v5978_v58 = vld [vmem:[#allocation26_spill] sm:$0xff] }
 0x19c   :  { %5971 = vst [vmem:[#allocation117_spill] sm:$0xff] %v4748_v61  ;;  %v1849_v37 = vadd.f32 %v1843_v29, %v1837_v53  ;;  %v1853_v25 = vadd.f32 %v1847_v56, %v5975_v23  ;;  %v1879_v38 = vmul.f32 %v4748_v61, %v5976_v57  ;;  %v1880_v36 = vmul.f32 %v4748_v61, %v5977_v62  ;;  %v5980_v53 = vld [vmem:[#allocation66_spill] sm:$0xff] }
 0x19d   :  { %v1854_v20 = vadd.f32 %v1848_v44, %v5975_v23  ;;  %v1881_v1 = vmul.f32 %v4748_v61, %v5978_v58  ;;  %v4766_v59 = vstv %s4725_s26  ;;  %v2097_v29 = vmul.f32 %v4369_v60, %v5980_v53  ;;  %v4778_v58 = vpop.permute.xlu1 %2230 }
 0x19e   :  { %v1855_v24 = vadd.f32 %v1849_v37, %v5975_v23  ;;  %5979 = vst [vmem:[#allocation121_spill] sm:$0xff] %v4766_v59  ;;  %v1859_v18 = vmul.f32 0.1, %v1853_v25  ;;  %v1885_v5 = vadd.f32 %v1879_v38, %v1872_v35  ;;  %v1886_v44 = vadd.f32 %v1880_v36, %v1873_v41  ;;  %v2454_v37 = vld [vmem:[%s5339_s0 + $0x130] sm:$0xff]  ;;  %v5982_v35 = vld [vmem:[#allocation68_spill] sm:$0xff]  ;;  %v2223_v38 = vpop.permute.xlu2 %2222  ;;  %v2455_v36 = vld [vmem:[%s5339_s0 + $0x160] sm:$0xff] }
 0x19f   :  { %v1860_v56 = vmul.f32 0.1, %v1854_v20  ;;  %v1887_v48 = vadd.f32 %v1881_v1, %v1874_v31  ;;  %v2098_v57 = vmul.f32 %v4628_v17, %v5980_v53  ;;  %v2099_v62 = vmul.f32 %v2454_v37, %v5980_v53  ;;  %5981 = vst [vmem:[#allocation29_spill] sm:$0xff] %v4778_v58  ;;  %v5983_v37 = vld [vmem:[#allocation69_spill] sm:$0xff]  ;;  %v5984_v53 = vld [vmem:[#allocation70_spill] sm:$0xff] }
 0x1a0   :  { %v1861_v15 = vmul.f32 0.1, %v1855_v24  ;;  %v1865_v60 = vmax.f32 %v1853_v25, %v1859_v18  ;;  %v2103_v41 = vmul.f32 %v4376_v46, %v5982_v35  ;;  %v2104_v31 = vmul.f32 %v4641_v49, %v5982_v35  ;;  %v6005_v23 = vld [vmem:[#allocation93_spill] sm:$0xff] }
 0x1a1   :  { %v1866_v61 = vmax.f32 %v1854_v20, %v1860_v56  ;;  %v2105_v1 = vmul.f32 %v2455_v36, %v5982_v35  ;;  %v2115_v25 = vmul.f32 %v4385_v11, %v5983_v37  ;;  %v2116_v20 = vmul.f32 %v4307_v0, %v5983_v37 }
 0x1a2   :  { %v1867_v17 = vmax.f32 %v1855_v24, %v1861_v15  ;;  %v1892_v18 = vmul.f32 %v4766_v59, %v1865_v60  ;;  %v2109_v56 = vadd.f32 %v2103_v41, %v2097_v29  ;;  %v2110_v49 = vadd.f32 %v2104_v31, %v2098_v57 }
 0x1a3   :  { %v1893_v46 = vmul.f32 %v4766_v59, %v1866_v61  ;;  %v2111_v15 = vadd.f32 %v2105_v1, %v2099_v62  ;;  %v2117_v58 = vmul.f32 %v4358_v28, %v5983_v37  ;;  %v2127_v36 = vmul.f32 %v4404_v51, %v5984_v53 }
 0x1a4   :  { %v1894_v24 = vmul.f32 %v4766_v59, %v1867_v17  ;;  %v1898_v35 = vadd.f32 %v1892_v18, %v1885_v5  ;;  %v2121_v0 = vadd.f32 %v2115_v25, %v2109_v56  ;;  %v2122_v60 = vadd.f32 %v2116_v20, %v2110_v49  ;;  %v5985_v5 = vld [vmem:[#allocation71_spill] sm:$0xff]  ;;  %v5990_v25 = vld [vmem:[#allocation34_spill] sm:$0xff]  ;;  %v5992_v56 = vld [vmem:[#allocation120_spill] sm:$0xff] }
 0x1a5   :  { %v1899_v11 = vadd.f32 %v1893_v46, %v1886_v44  ;;  %v1608_v61 = vadd.f32 %v1602_v32, %v4732_v4  ;;  %v2123_v29 = vadd.f32 %v2117_v58, %v2111_v15  ;;  %v2128_v57 = vmul.f32 %v4316_v13, %v5984_v53  ;;  %v5991_v46 = vld [vmem:[#allocation73_spill] sm:$0xff] }
 0x1a6   :  { %v2129_v28 = vmul.f32 %v4390_v22, %v5984_v53  ;;  %v1900_v62 = vadd.f32 %v1894_v24, %v1887_v48  ;;  %v4808_v41 = vadd.f32 %v1898_v35, %v1606_v7  ;;  %v2133_v51 = vadd.f32 %v2127_v36, %v2121_v0  ;;  %v5988_v48 = vld [vmem:[#allocation119_spill] sm:$0xff]  ;;  %v5993_v24 = vld [vmem:[#allocation74_spill] sm:$0xff] }
 0x1a7   :  { %v2139_v44 = vmul.f32 %v4426_v40, %v5985_v5  ;;  %v4812_v31 = vadd.f32 %v1899_v11, %v1607_v8  ;;  %v2134_v17 = vadd.f32 %v2128_v57, %v2122_v60  ;;  %v2140_v4 = vmul.f32 %v4331_v30, %v5985_v5  ;;  %v5989_v40 = vld [vmem:[#allocation131_spill] sm:$0xff]  ;;  %v2221_v30 = vpop.permute.xlu1 %2220  ;;  %v5994_v60 = vld [vmem:[#allocation36_spill] sm:$0xff] }
 0x1a8   :  { %v2135_v1 = vadd.f32 %v2129_v28, %v2123_v29  ;;  %v2141_v13 = vmul.f32 %v4409_v34, %v5985_v5  ;;  %v4819_v58 = vstv %s4770_s27  ;;  %v4822_v22 = vstv %s4780_s30 }
 0x1a9   :  { %v2145_v32 = vadd.f32 %v2139_v44, %v2133_v51  ;;  %5986 = vst [vmem:[#allocation106_spill] sm:$0xff] %v4819_v58  ;;  %v2146_v7 = vadd.f32 %v2140_v4, %v2134_v17  ;;  %v2170_v35 = vmul.f32 %v4819_v58, %v5988_v48  ;;  %v2171_v8 = vmul.f32 %v4819_v58, %v5989_v40  ;;  %v4847_v17 = vld [vmem:[%s5344_s5] sm:$0x7] }
 0x1aa   :  { %5987 = vst [vmem:[#allocation25_spill] sm:$0xff] %v4822_v22  ;;  %v2172_v20 = vmul.f32 %v4819_v58, %v5990_v25  ;;  %v2147_v18 = vadd.f32 %v2141_v13, %v2135_v1  ;;  %v2177_v49 = vmul.f32 %v4822_v22, %v5992_v56  ;;  %v2178_v15 = vmul.f32 %v4822_v22, %v5993_v24  ;;  %v4916_v25 = vld [vmem:[%s5339_s0 + $0x178] sm:$0x3]  ;;  %v4925_v58 = vld [vmem:[%s5339_s0 + $0x1c8] sm:$0x3] }
 0x1ab   :  { %v2151_v34 = vadd.f32 %v2145_v32, %v5991_v46  ;;  %v1906_v11 = vadd.f32 %v1900_v62, %v1608_v61  ;;  %v2152_v0 = vadd.f32 %v2146_v7, %v5991_v46  ;;  %v2179_v29 = vmul.f32 %v4822_v22, %v5994_v60  ;;  %5996 = vst [vmem:[#allocation107_spill] sm:$0xff] %v4847_v17  ;;  %v4889_v60 = vld [vmem:[%s5339_s0 + $0x148] sm:$0x3]  ;;  %v6000_v22 = vld [vmem:[#allocation13_spill] sm:$0xff] }
 0x1ac   :  { %v2153_v57 = vadd.f32 %v2147_v18, %v5991_v46  ;;  %v2183_v51 = vadd.f32 %v2177_v49, %v2170_v35  ;;  %v4842_v44 = vstv %s4801_s10  ;;  %v2184_v4 = vadd.f32 %v2178_v15, %v2171_v8  ;;  %v4869_v18 = vld [vmem:[%s5339_s0 + $0x138] sm:$0x3]  ;;  %v4876_v49 = vld [vmem:[%s5339_s0 + $0x140] sm:$0x3] }
 0x1ad   :  { %v2157_v28 = vmul.f32 0.1, %v2151_v34  ;;  %5995 = vst [vmem:[#allocation30_spill] sm:$0xff] %v4842_v44  ;;  %v2158_v1 = vmul.f32 0.1, %v2152_v0  ;;  %v2185_v61 = vadd.f32 %v2179_v29, %v2172_v20  ;;  %v2233_v62 = vsel %vm2232_vm0, %v2221_v30, %v2223_v38 }
 0x1ae   :  { %v4835_v36 = vpop.permute.xlu2 %2224  ;;  %v2159_v13 = vmul.f32 0.1, %v2153_v57  ;;  %v4855_v48 = vstv %s5343_s4  ;;  %v4863_v20 = vld [vmem:[%s5339_s0 + $0x198] sm:$0x3]  ;;  %v4883_v15 = vld [vmem:[%s5339_s0 + $0x1a0] sm:$0x3]  ;;  %v398_v6 = vmul.f32 %v4429_v43, %v6005_v23 }
 0x1af   :  { %v2163_v32 = vmax.f32 %v2151_v34, %v2157_v28  ;;  %v2234_v7 = vsel %vm2232_vm0, %v2223_v38, %v4835_v36  ;;  %5997 = vst [vmem:[#allocation108_spill] sm:$0xff] %v4855_v48  ;;  %v2164_v35 = vmax.f32 %v2152_v0, %v2158_v1  ;;  %v5998_v34 = vld [vmem:[#allocation11_spill] sm:$0xff]  ;;  %v5999_v28 = vld [vmem:[#allocation12_spill] sm:$0xff]  ;;  %v328_v46 = vmul.f32 %v4863_v20, %v6000_v22  ;;  %v6009_v23 = vld [vmem:[#allocation94_spill] sm:$0xff] }
 0x1b0   :  { %v2165_v30 = vmax.f32 %v2153_v57, %v2159_v13  ;;  %v303_v56 = vmul.f32 %v4869_v18, %v5998_v34  ;;  %v304_v24 = vmul.f32 %v4876_v49, %v5998_v34  ;;  %v305_v29 = vmul.f32 %v4889_v60, %v5998_v34  ;;  %v4896_v57 = vld [vmem:[%s5339_s0 + $0x168] sm:$0x3]  ;;  %v4903_v13 = vld [vmem:[%s5339_s0 + $0x170] sm:$0x3] }
 0x1b1   :  { %v2190_v38 = vmul.f32 %v4842_v44, %v2163_v32  ;;  %v2191_v0 = vmul.f32 %v4842_v44, %v2164_v35  ;;  %v309_v1 = vmul.f32 %v4896_v57, %v5999_v28  ;;  %v310_v32 = vmul.f32 %v4903_v13, %v5999_v28  ;;  %v4910_v35 = vld [vmem:[%s5339_s0 + $0x1a8] sm:$0x3] }
 0x1b2   :  { %v2192_v34 = vmul.f32 %v4842_v44, %v2165_v30  ;;  %v311_v40 = vmul.f32 %v4916_v25, %v5999_v28  ;;  %v330_v37 = vmul.f32 %v4910_v35, %v6000_v22 }
 0x1b3   :  { %v2196_v8 = vadd.f32 %v2190_v38, %v2183_v51  ;;  %v2197_v59 = vadd.f32 %v2191_v0, %v2184_v4  ;;  %v315_v5 = vadd.f32 %v309_v1, %v303_v56  ;;  %v316_v30 = vadd.f32 %v310_v32, %v304_v24  ;;  %v4932_v38 = vld [vmem:[%s5339_s0 + $0x1d0] sm:$0x3]  ;;  %v4940_v4 = vld [vmem:[%s5339_s0 + $0x1d8] sm:$0x3] }
 0x1b4   :  { %v329_v51 = vmul.f32 %v4883_v15, %v6000_v22  ;;  %v2198_v28 = vadd.f32 %v2192_v34, %v2185_v61  ;;  %v317_v53 = vadd.f32 %v311_v40, %v305_v29  ;;  %v4945_v56 = vld [vmem:[%s5339_s0 + $0x1f8] sm:$0x3]  ;;  %v4953_v22 = vld [vmem:[%s5339_s0 + $0x200] sm:$0x3] }
 0x1b5   :  { %v2202_v44 = vadd.f32 %v2196_v8, %v4808_v41  ;;  %v2203_v24 = vadd.f32 %v2197_v59, %v4812_v31  ;;  %v334_v0 = vadd.f32 %v328_v46, %v315_v5  ;;  %v6001_v1 = vld [vmem:[#allocation14_spill] sm:$0xff]  ;;  %v4960_v59 = vld [vmem:[%s5339_s0 + $0x208] sm:$0x3]  ;;  %v6002_v34 = vld [vmem:[#allocation15_spill] sm:$0xff] }
 0x1b6   :  { %v335_v61 = vadd.f32 %v329_v51, %v316_v30  ;;  %v347_v41 = vmul.f32 %v4925_v58, %v6001_v1  ;;  %v2204_v40 = vadd.f32 %v2198_v28, %v1906_v11  ;;  %v336_v29 = vadd.f32 %v330_v37, %v317_v53 }
 0x1b7   :  { %v2243_v8 = vadd.f32 %v2233_v62, %v2202_v44  ;;  %v348_v32 = vmul.f32 %v4932_v38, %v6001_v1  ;;  %v2244_v5 = vadd.f32 %v2234_v7, %v2203_v24  ;;  %v349_v31 = vmul.f32 %v4940_v4, %v6001_v1 }
 0x1b8   :  { %v353_v46 = vadd.f32 %v347_v41, %v334_v0  ;;  %v366_v30 = vmul.f32 %v4945_v56, %v6002_v34  ;;  %v2245_v11 = vadd.f32 %v4835_v36, %v2204_v40  ;;  %v367_v44 = vmul.f32 %v4953_v22, %v6002_v34  ;;  %v6003_v41 = vld [vmem:[#allocation79_spill] sm:$0xff] }
 0x1b9   :  { %v2251_v53 = vadd.f32 %v4855_v48, %v2243_v8  ;;  %v354_v37 = vadd.f32 %v348_v32, %v335_v61  ;;  %v2252_v62 = vadd.f32 %v4855_v48, %v2244_v5  ;;  %v355_v51 = vadd.f32 %v349_v31, %v336_v29  ;;  %v6004_v61 = vld [vmem:[#allocation19_spill] sm:$0xff] }
 0x1ba   :  { %v368_v7 = vmul.f32 %v4960_v59, %v6002_v34  ;;  %v372_v28 = vadd.f32 %v366_v30, %v353_v46  ;;  %v2253_v24 = vadd.f32 %v4855_v48, %v2245_v11  ;;  %v397_v36 = vmul.f32 %v4429_v43, %v6003_v41  ;;  %v6006_v34 = vld [vmem:[#allocation27_spill] sm:$0xff] }
 0x1bb   :  { %v2257_v0 = vmul.f32 0.1, %v2251_v53  ;;  %v373_v1 = vadd.f32 %v367_v44, %v354_v37  ;;  %v2258_v40 = vmul.f32 0.1, %v2252_v62  ;;  %v399_v46 = vmul.f32 %v4429_v43, %v6006_v34  ;;  %v6007_v44 = vld [vmem:[#allocation80_spill] sm:$0xff] }
 0x1bc   :  { %v374_v8 = vadd.f32 %v368_v7, %v355_v51  ;;  %v378_v32 = vadd.f32 %v372_v28, %v6004_v61  ;;  %v2259_v5 = vmul.f32 0.1, %v2253_v24  ;;  %v404_v41 = vmul.f32 %v4432_v19, %v6007_v44 }
 0x1bd   :  { %v2263_v29 = vmax.f32 %v2251_v53, %v2257_v0  ;;  %v379_v31 = vadd.f32 %v373_v1, %v6004_v61  ;;  %v2264_v30 = vmax.f32 %v2252_v62, %v2258_v40  ;;  %v6008_v7 = vperm.slane %v4847_v17, 0  ;;  %v6011_v62 = vld [vmem:[#allocation28_spill] sm:$0xff] }
 0x1be   :  { %v380_v11 = vadd.f32 %v374_v8, %v6004_v61  ;;  %v384_v37 = vmul.f32 0.1, %v378_v32  ;;  %v2265_v51 = vmax.f32 %v2253_v24, %v2259_v5  ;;  %v405_v53 = vmul.f32 %v4432_v19, %v6009_v23  ;;  %v6013_v23 = vld [vmem:[#allocation18_spill] sm:$0xff] }
 0x1bf   :  { %v2277_v28 = vmul.f32 %v6008_v7, %v2263_v29  ;;  %v385_v48 = vmul.f32 0.1, %v379_v31  ;;  %v6010_v0 = vperm.slane %v4847_v17, 1  ;;  %v406_v40 = vmul.f32 %v4432_v19, %v6011_v62 }
 0x1c0   :  { %v386_v52 = vmul.f32 0.1, %v380_v11  ;;  %v390_v43 = vmax.f32 %v378_v32, %v384_v37  ;;  %v6012_v8 = vperm.slane %v4847_v17, 2  ;;  %v4995_v44 = vadd.f32 %v404_v41, %v397_v36  ;;  %v6015_v41 = vld [vmem:[#allocation21_spill] sm:$0xff] }
 0x1c1   :  { %v2278_v1 = vmul.f32 %v6010_v0, %v2264_v30  ;;  %v391_v34 = vmax.f32 %v379_v31, %v385_v48  ;;  %v4998_v7 = vadd.f32 %v405_v53, %v398_v6  ;;  %v610_v30 = vmul.f32 %v4869_v18, %v6013_v23  ;;  %v6014_v6 = vld [vmem:[#allocation20_spill] sm:$0xff] }
 0x1c2   :  { %v2279_v61 = vmul.f32 %v6012_v8, %v2265_v51  ;;  %v392_v5 = vmax.f32 %v380_v11, %v386_v52  ;;  %v611_v32 = vmul.f32 %v4876_v49, %v6013_v23  ;;  %v5004_v19 = vadd.f32 %v406_v40, %v399_v46  ;;  %v6016_v40 = vld [vmem:[#allocation22_spill] sm:$0xff] }
 0x1c3   :  { %v2283_v24 = vadd.f32 %v2278_v1, %v2277_v28  ;;  %v5007_v51 = vmul.f32 %v4441_v14, %v390_v43  ;;  %v612_v52 = vmul.f32 %v4889_v60, %v6013_v23  ;;  %v5012_v48 = vmul.f32 %v4441_v14, %v391_v34  ;;  %v6017_v34 = vld [vmem:[#allocation23_spill] sm:$0xff] }
 0x1c4   :  { %v2285_v29 = vsel %vm2284_vm1, %v2279_v61, 0.0  ;;  %v616_v36 = vmul.f32 %v4896_v57, %v6014_v6  ;;  %v617_v31 = vmul.f32 %v4903_v13, %v6014_v6  ;;  %v618_v11 = vmul.f32 %v4916_v25, %v6014_v6  ;;  %v6019_v6 = vld [vmem:[#allocation95_spill] sm:$0xff] }
 0x1c5   :  { %v2286_v37 = vadd.f32 %v2285_v29, %v2283_v24  ;;  %v5021_v46 = vmul.f32 %v4441_v14, %v392_v5  ;;  %v628_v28 = vmul.f32 %v4863_v20, %v6015_v41  ;;  %v629_v53 = vmul.f32 %v4883_v15, %v6015_v41 }
 0x1c6   :  { %v630_v0 = vmul.f32 %v4910_v35, %v6015_v41  ;;  %v622_v1 = vadd.f32 %v616_v36, %v610_v30  ;;  %v623_v43 = vadd.f32 %v617_v31, %v611_v32  ;;  %v624_v62 = vadd.f32 %v618_v11, %v612_v52  ;;  %v6020_v31 = vld [vmem:[#allocation33_spill] sm:$0xff]  ;;  %v6021_v41 = vld [vmem:[#allocation82_spill] sm:$0xff] }
 0x1c7   :  { %2287 = vadd.xlane.f32.xlu0 %v2286_v37  ;;  %v640_v8 = vmul.f32 %v4925_v58, %v6016_v40  ;;  %v641_v61 = vmul.f32 %v4932_v38, %v6016_v40  ;;  %v642_v14 = vmul.f32 %v4940_v4, %v6016_v40  ;;  %v652_v24 = vmul.f32 %v4945_v56, %v6017_v34  ;;  %v6018_v37 = vld [vmem:[#allocation81_spill] sm:$0xff] }
 0x1c8   :  { %v653_v5 = vmul.f32 %v4953_v22, %v6017_v34  ;;  %v634_v29 = vadd.f32 %v628_v28, %v622_v1  ;;  %v635_v23 = vadd.f32 %v629_v53, %v623_v43  ;;  %v636_v30 = vadd.f32 %v630_v0, %v624_v62  ;;  %v6022_v53 = vld [vmem:[#allocation96_spill] sm:$0xff]  ;;  %v6023_v1 = vld [vmem:[#allocation35_spill] sm:$0xff] }
 0x1c9   :  { %v654_v32 = vmul.f32 %v4960_v59, %v6017_v34  ;;  %v683_v52 = vmul.f32 %v4458_v9, %v6018_v37  ;;  %v684_v36 = vmul.f32 %v4458_v9, %v6019_v6  ;;  %v685_v11 = vmul.f32 %v4458_v9, %v6020_v31 }
 0x1ca   :  { %v690_v40 = vmul.f32 %v4467_v54, %v6021_v41  ;;  %v646_v17 = vadd.f32 %v640_v8, %v634_v29  ;;  %v647_v21 = vadd.f32 %v641_v61, %v635_v23  ;;  %v648_v28 = vadd.f32 %v642_v14, %v636_v30 }
 0x1cb   :  { %v691_v0 = vmul.f32 %v4467_v54, %v6022_v53  ;;  %v692_v43 = vmul.f32 %v4467_v54, %v6023_v1  ;;  %v908_v34 = vmul.f32 %v4869_v18, %v2696_v63  ;;  %v909_v37 = vmul.f32 %v4876_v49, %v2696_v63  ;;  %v6024_v53 = vld [vmem:[#allocation31_spill] sm:$0xff] }
 0x1cc   :  { %v696_v62 = vadd.f32 %v690_v40, %v683_v52  ;;  %v658_v9 = vadd.f32 %v652_v24, %v646_v17  ;;  %v659_v6 = vadd.f32 %v653_v5, %v647_v21  ;;  %v660_v31 = vadd.f32 %v654_v32, %v648_v28 }
 0x1cd   :  { %v697_v41 = vadd.f32 %v691_v0, %v684_v36  ;;  %v698_v8 = vadd.f32 %v692_v43, %v685_v11  ;;  %v910_v61 = vmul.f32 %v4889_v60, %v2696_v63  ;;  %v914_v14 = vmul.f32 %v4896_v57, %v5851_v2 }
 0x1ce   :  { %v915_v54 = vmul.f32 %v4903_v13, %v5851_v2  ;;  %v664_v29 = vadd.f32 %v658_v9, %v5809_v33  ;;  %v665_v23 = vadd.f32 %v659_v6, %v5809_v33  ;;  %v666_v30 = vadd.f32 %v660_v31, %v5809_v33  ;;  %v6025_v31 = vld [vmem:[#allocation32_spill] sm:$0xff] }
 0x1cf   :  { %v916_v21 = vmul.f32 %v4916_v25, %v5851_v2  ;;  %v920_v17 = vadd.f32 %v914_v14, %v908_v34  ;;  %v926_v63 = vmul.f32 %v4863_v20, %v5852_v39  ;;  %v927_v5 = vmul.f32 %v4883_v15, %v5852_v39 }
 0x1d0   :  { %v921_v24 = vadd.f32 %v915_v54, %v909_v37  ;;  %v670_v32 = vmul.f32 0.1, %v664_v29  ;;  %v671_v52 = vmul.f32 0.1, %v665_v23  ;;  %v672_v36 = vmul.f32 0.1, %v666_v30 }
 0x1d1   :  { %v922_v11 = vadd.f32 %v916_v21, %v910_v61  ;;  %v928_v40 = vmul.f32 %v4910_v35, %v5852_v39  ;;  %v932_v28 = vadd.f32 %v926_v63, %v920_v17  ;;  %v938_v2 = vmul.f32 %v4925_v58, %v6024_v53  ;;  %v6026_v39 = vld [vmem:[#allocation44_spill] sm:$0xff] }
 0x1d2   :  { %v933_v33 = vadd.f32 %v927_v5, %v921_v24  ;;  %v676_v0 = vmax.f32 %v664_v29, %v670_v32  ;;  %v677_v1 = vmax.f32 %v665_v23, %v671_v52  ;;  %v678_v43 = vmax.f32 %v666_v30, %v672_v36 }
 0x1d3   :  { %v939_v34 = vmul.f32 %v4932_v38, %v6024_v53  ;;  %v934_v37 = vadd.f32 %v928_v40, %v922_v11  ;;  %v940_v9 = vmul.f32 %v4940_v4, %v6024_v53  ;;  %v944_v6 = vadd.f32 %v938_v2, %v932_v28 }
 0x1d4   :  { %v950_v61 = vmul.f32 %v4945_v56, %v6025_v31  ;;  %v703_v14 = vmul.f32 %v6026_v39, %v676_v0  ;;  %v704_v54 = vmul.f32 %v6026_v39, %v677_v1  ;;  %v705_v21 = vmul.f32 %v6026_v39, %v678_v43  ;;  %v6027_v1 = vld [vmem:[#allocation83_spill] sm:$0xff]  ;;  %v6033_v39 = vld [vmem:[#allocation38_spill] sm:$0xff] }
 0x1d5   :  { %v945_v29 = vadd.f32 %v939_v34, %v933_v33  ;;  %v946_v23 = vadd.f32 %v940_v9, %v934_v37  ;;  %v951_v30 = vmul.f32 %v4953_v22, %v6025_v31  ;;  %v952_v17 = vmul.f32 %v4960_v59, %v6025_v31  ;;  %v6030_v34 = vld [vmem:[#allocation97_spill] sm:$0xff] }
 0x1d6   :  { %v956_v24 = vadd.f32 %v950_v61, %v944_v6  ;;  %v423_v63 = vadd.f32 %v5007_v51, %v4995_v44  ;;  %v424_v5 = vadd.f32 %v5012_v48, %v4998_v7  ;;  %v425_v11 = vadd.f32 %v5021_v46, %v5004_v19  ;;  %v6028_v51 = vld [vmem:[#allocation49_spill] sm:$0xff]  ;;  %v6029_v48 = vld [vmem:[#allocation84_spill] sm:$0xff]  ;;  %v6032_v6 = vld [vmem:[#allocation42_spill] sm:$0xff] }
 0x1d7   :  { %v957_v32 = vadd.f32 %v951_v30, %v945_v29  ;;  %v958_v52 = vadd.f32 %v952_v17, %v946_v23  ;;  %v709_v40 = vadd.f32 %v703_v14, %v696_v62  ;;  %v710_v28 = vadd.f32 %v704_v54, %v697_v41  ;;  %v6031_v46 = vld [vmem:[#allocation37_spill] sm:$0xff]  ;;  %v6034_v29 = vld [vmem:[#allocation46_spill] sm:$0xff] }
 0x1d8   :  { %v962_v36 = vadd.f32 %v956_v24, %v2745_v47  ;;  %v711_v33 = vadd.f32 %v705_v21, %v698_v8  ;;  %v981_v44 = vmul.f32 %v4533_v27, %v6027_v1  ;;  %v982_v7 = vmul.f32 %v4533_v27, %v6028_v51 }
 0x1d9   :  { %v963_v53 = vadd.f32 %v957_v32, %v2745_v47  ;;  %v964_v2 = vadd.f32 %v958_v52, %v2745_v47  ;;  %v988_v43 = vmul.f32 %v4536_v45, %v6029_v48  ;;  %v989_v19 = vmul.f32 %v4536_v45, %v6030_v34 }
 0x1da   :  { %v968_v0 = vmul.f32 0.1, %v962_v36  ;;  %v1206_v62 = vmul.f32 %v4869_v18, %v6031_v46  ;;  %v1207_v47 = vmul.f32 %v4876_v49, %v6031_v46  ;;  %v5110_v9 = vadd.f32 %v709_v40, %v423_v63 }
 0x1db   :  { %v969_v41 = vmul.f32 0.1, %v963_v53  ;;  %v970_v8 = vmul.f32 0.1, %v964_v2  ;;  %v983_v31 = vmul.f32 %v4533_v27, %v6032_v6  ;;  %v1208_v61 = vmul.f32 %v4889_v60, %v6031_v46 }
 0x1dc   :  { %v974_v37 = vmax.f32 %v962_v36, %v968_v0  ;;  %v1212_v14 = vmul.f32 %v4896_v57, %v6033_v39  ;;  %v990_v23 = vmul.f32 %v4536_v45, %v6034_v29  ;;  %v1213_v30 = vmul.f32 %v4903_v13, %v6033_v39  ;;  %v6039_v29 = vld [vmem:[#allocation43_spill] sm:$0xff] }
 0x1dd   :  { %v975_v54 = vmax.f32 %v963_v53, %v969_v41  ;;  %v976_v21 = vmax.f32 %v964_v2, %v970_v8  ;;  %v1214_v17 = vmul.f32 %v4916_v25, %v6033_v39  ;;  %v1224_v27 = vmul.f32 %v4863_v20, %v5944_v16  ;;  %v6035_v39 = vld [vmem:[#allocation85_spill] sm:$0xff] }
 0x1de   :  { %v1218_v24 = vadd.f32 %v1212_v14, %v1206_v62  ;;  %v1225_v63 = vmul.f32 %v4883_v15, %v5944_v16  ;;  %v994_v32 = vadd.f32 %v988_v43, %v981_v44  ;;  %v995_v52 = vadd.f32 %v989_v19, %v982_v7 }
 0x1df   :  { %v1001_v36 = vmul.f32 %v4539_v55, %v974_v37  ;;  %v1219_v40 = vadd.f32 %v1213_v30, %v1207_v47  ;;  %v1220_v53 = vadd.f32 %v1214_v17, %v1208_v61  ;;  %v1226_v45 = vmul.f32 %v4910_v35, %v5944_v16  ;;  %v6040_v30 = vld [vmem:[#allocation86_spill] sm:$0xff] }
 0x1e0   :  { %v1230_v2 = vadd.f32 %v1224_v27, %v1218_v24  ;;  %v1236_v0 = vmul.f32 %v4925_v58, %v5945_v3  ;;  %v996_v1 = vadd.f32 %v990_v23, %v983_v31  ;;  %v1002_v51 = vmul.f32 %v4539_v55, %v975_v54  ;;  %v6038_v54 = vld [vmem:[#allocation52_spill] sm:$0xff]  ;;  %v6041_v17 = vld [vmem:[#allocation54_spill] sm:$0xff] }
 0x1e1   :  { %v1003_v48 = vmul.f32 %v4539_v55, %v976_v21  ;;  %v1231_v34 = vadd.f32 %v1225_v63, %v1219_v40  ;;  %v1232_v46 = vadd.f32 %v1226_v45, %v1220_v53  ;;  %v1237_v44 = vmul.f32 %v4932_v38, %v5945_v3  ;;  %v6044_v53 = vld [vmem:[#allocation58_spill] sm:$0xff] }
 0x1e2   :  { %v1238_v7 = vmul.f32 %v4940_v4, %v5945_v3  ;;  %v1242_v43 = vadd.f32 %v1236_v0, %v1230_v2  ;;  %v716_v19 = vadd.f32 %v710_v28, %v424_v5  ;;  %v717_v16 = vadd.f32 %v711_v33, %v425_v11  ;;  %v6036_v3 = vld [vmem:[#allocation45_spill] sm:$0xff]  ;;  %v6037_v28 = vld [vmem:[#allocation98_spill] sm:$0xff] }
 0x1e3   :  { %v1248_v62 = vmul.f32 %v4945_v56, %v5946_v26  ;;  %v1249_v41 = vmul.f32 %v4953_v22, %v5946_v26  ;;  %v1007_v8 = vadd.f32 %v1001_v36, %v994_v32  ;;  %v1243_v37 = vadd.f32 %v1237_v44, %v1231_v34  ;;  %v6043_v36 = vld [vmem:[#allocation99_spill] sm:$0xff] }
 0x1e4   :  { %v1244_v55 = vadd.f32 %v1238_v7, %v1232_v46  ;;  %v1250_v47 = vmul.f32 %v4960_v59, %v5946_v26  ;;  %v1008_v6 = vadd.f32 %v1002_v51, %v995_v52  ;;  %v1009_v31 = vadd.f32 %v1003_v48, %v996_v1  ;;  %v6042_v26 = vld [vmem:[#allocation47_spill] sm:$0xff]  ;;  %v6045_v1 = vld [vmem:[#allocation48_spill] sm:$0xff] }
 0x1e5   :  { %v1254_v61 = vadd.f32 %v1248_v62, %v1242_v43  ;;  %v1279_v14 = vmul.f32 %v6036_v3, %v6035_v39  ;;  %v1255_v5 = vadd.f32 %v1249_v41, %v1243_v37  ;;  %v1280_v33 = vmul.f32 %v6036_v3, %v6037_v28 }
 0x1e6   :  { %v1256_v11 = vadd.f32 %v1250_v47, %v1244_v55  ;;  %v1281_v21 = vmul.f32 %v6036_v3, %v6038_v54  ;;  %v1286_v24 = vmul.f32 %v6041_v17, %v6040_v30  ;;  %v1504_v27 = vmul.f32 %v4869_v18, %v6042_v26 }
 0x1e7   :  { %v1260_v23 = vadd.f32 %v1254_v61, %v6039_v29  ;;  %v1505_v63 = vmul.f32 %v4876_v49, %v6042_v26  ;;  %v1261_v32 = vadd.f32 %v1255_v5, %v6039_v29  ;;  %v1287_v40 = vmul.f32 %v6041_v17, %v6043_v36 }
 0x1e8   :  { %v1262_v52 = vadd.f32 %v1256_v11, %v6039_v29  ;;  %v1288_v45 = vmul.f32 %v6041_v17, %v6044_v53  ;;  %v1506_v0 = vmul.f32 %v4889_v60, %v6042_v26  ;;  %v1510_v51 = vmul.f32 %v4896_v57, %v6045_v1 }
 0x1e9   :  { %v1266_v2 = vmul.f32 0.1, %v1260_v23  ;;  %v1511_v48 = vmul.f32 %v4903_v13, %v6045_v1  ;;  %v1267_v34 = vmul.f32 0.1, %v1261_v32  ;;  %v1512_v44 = vmul.f32 %v4916_v25, %v6045_v1  ;;  %v6047_v1 = vld [vmem:[#allocation53_spill] sm:$0xff] }
 0x1ea   :  { %v1268_v46 = vmul.f32 0.1, %v1262_v52  ;;  %v1522_v7 = vmul.f32 %v4863_v20, %v5777_v12  ;;  %v1516_v62 = vadd.f32 %v1510_v51, %v1504_v27  ;;  %v1523_v37 = vmul.f32 %v4883_v15, %v5777_v12 }
 0x1eb   :  { %v1272_v43 = vmax.f32 %v1260_v23, %v1266_v2  ;;  %v1517_v41 = vadd.f32 %v1511_v48, %v1505_v63  ;;  %v1273_v55 = vmax.f32 %v1261_v32, %v1267_v34  ;;  %v1518_v61 = vadd.f32 %v1512_v44, %v1506_v0  ;;  %v6046_v63 = vld [vmem:[#allocation51_spill] sm:$0xff] }
 0x1ec   :  { %v1274_v47 = vmax.f32 %v1262_v52, %v1268_v46  ;;  %v1524_v39 = vmul.f32 %v4910_v35, %v5777_v12  ;;  %v1292_v3 = vadd.f32 %v1286_v24, %v1279_v14  ;;  %v1528_v5 = vadd.f32 %v1522_v7, %v1516_v62  ;;  %v6048_v46 = vld [vmem:[#allocation87_spill] sm:$0xff] }
 0x1ed   :  { %v1529_v11 = vadd.f32 %v1523_v37, %v1517_v41  ;;  %v1534_v28 = vmul.f32 %v4925_v58, %v5953_v50  ;;  %v1293_v54 = vadd.f32 %v1287_v40, %v1280_v33  ;;  %v1294_v29 = vadd.f32 %v1288_v45, %v1281_v21  ;;  %v6049_v44 = vld [vmem:[#allocation55_spill] sm:$0xff]  ;;  %v6050_v41 = vld [vmem:[#allocation100_spill] sm:$0xff] }
 0x1ee   :  { %v1530_v23 = vadd.f32 %v1524_v39, %v1518_v61  ;;  %v1535_v30 = vmul.f32 %v4932_v38, %v5953_v50  ;;  %v1299_v17 = vmul.f32 %v4619_v10, %v1272_v43  ;;  %v1536_v26 = vmul.f32 %v4940_v4, %v5953_v50  ;;  %v6053_v37 = vld [vmem:[#allocation88_spill] sm:$0xff] }
 0x1ef   :  { %v1540_v27 = vadd.f32 %v1534_v28, %v1528_v5  ;;  %v1546_v12 = vmul.f32 %v4945_v56, %v6046_v63  ;;  %v1300_v14 = vmul.f32 %v4619_v10, %v1273_v55  ;;  %v1301_v24 = vmul.f32 %v4619_v10, %v1274_v47  ;;  %v6054_v55 = vld [vmem:[#allocation64_spill] sm:$0xff]  ;;  %v6056_v28 = vld [vmem:[#allocation57_spill] sm:$0xff] }
 0x1f0   :  { %v1541_v32 = vadd.f32 %v1535_v30, %v1529_v11  ;;  %v1547_v33 = vmul.f32 %v4953_v22, %v6046_v63  ;;  %v1542_v21 = vadd.f32 %v1536_v26, %v1530_v23  ;;  %v1548_v52 = vmul.f32 %v4960_v59, %v6046_v63 }
 0x1f1   :  { %v1552_v36 = vadd.f32 %v1546_v12, %v1540_v27  ;;  %v1013_v40 = vadd.f32 %v1007_v8, %v5110_v9  ;;  %v1014_v50 = vadd.f32 %v1008_v6, %v716_v19  ;;  %v1015_v45 = vadd.f32 %v1009_v31, %v717_v16  ;;  %v6051_v19 = vld [vmem:[#allocation56_spill] sm:$0xff]  ;;  %v6052_v6 = vld [vmem:[#allocation62_spill] sm:$0xff] }
 0x1f2   :  { %v1553_v53 = vadd.f32 %v1547_v33, %v1541_v32  ;;  %v1305_v2 = vadd.f32 %v1299_v17, %v1292_v3  ;;  %v1554_v0 = vadd.f32 %v1548_v52, %v1542_v21  ;;  %v1306_v48 = vadd.f32 %v1300_v14, %v1293_v54  ;;  %v6055_v3 = vld [vmem:[#allocation101_spill] sm:$0xff] }
 0x1f3   :  { %v1558_v51 = vadd.f32 %v1552_v36, %v6047_v1  ;;  %v1307_v10 = vadd.f32 %v1301_v24, %v1294_v29  ;;  %v1577_v7 = vmul.f32 %v6049_v44, %v6048_v46  ;;  %v1578_v9 = vmul.f32 %v6049_v44, %v6050_v41  ;;  %v6057_v29 = vld [vmem:[#allocation67_spill] sm:$0xff] }
 0x1f4   :  { %v1559_v34 = vadd.f32 %v1553_v53, %v6047_v1  ;;  %v1560_v43 = vadd.f32 %v1554_v0, %v6047_v1  ;;  %v1802_v16 = vmul.f32 %v4869_v18, %v6051_v19  ;;  %v1579_v31 = vmul.f32 %v6049_v44, %v6052_v6  ;;  %v6058_v0 = vld [vmem:[#allocation60_spill] sm:$0xff] }
 0x1f5   :  { %v1564_v62 = vmul.f32 0.1, %v1558_v51  ;;  %v1584_v47 = vmul.f32 %v6054_v55, %v6053_v37  ;;  %v1803_v61 = vmul.f32 %v4876_v49, %v6051_v19  ;;  %v1585_v5 = vmul.f32 %v6054_v55, %v6055_v3 }
 0x1f6   :  { %v1565_v8 = vmul.f32 0.1, %v1559_v34  ;;  %v1566_v39 = vmul.f32 0.1, %v1560_v43  ;;  %v1804_v11 = vmul.f32 %v4889_v60, %v6051_v19  ;;  %v1808_v54 = vmul.f32 %v4896_v57, %v6056_v28 }
 0x1f7   :  { %v1586_v23 = vmul.f32 %v6054_v55, %v6057_v29  ;;  %v1809_v30 = vmul.f32 %v4903_v13, %v6056_v28  ;;  %v1810_v17 = vmul.f32 %v4916_v25, %v6056_v28  ;;  %v1820_v26 = vmul.f32 %v4863_v20, %v5967_v42  ;;  %v6061_v29 = vld [vmem:[#allocation63_spill] sm:$0xff] }
 0x1f8   :  { %v1570_v27 = vmax.f32 %v1558_v51, %v1564_v62  ;;  %v1571_v63 = vmax.f32 %v1559_v34, %v1565_v8  ;;  %v1814_v12 = vadd.f32 %v1808_v54, %v1802_v16  ;;  %v1821_v14 = vmul.f32 %v4883_v15, %v5967_v42  ;;  %v6059_v62 = vld [vmem:[#allocation65_spill] sm:$0xff] }
 0x1f9   :  { %v1572_v24 = vmax.f32 %v1560_v43, %v1566_v39  ;;  %v1815_v32 = vadd.f32 %v1809_v30, %v1803_v61  ;;  %v1816_v33 = vadd.f32 %v1810_v17, %v1804_v11  ;;  %v1822_v21 = vmul.f32 %v4910_v35, %v5967_v42  ;;  %v6060_v16 = vld [vmem:[#allocation61_spill] sm:$0xff]  ;;  %v6062_v17 = vld [vmem:[#allocation66_spill] sm:$0xff] }
 0x1fa   :  { %v1590_v52 = vadd.f32 %v1584_v47, %v1577_v7  ;;  %v1591_v36 = vadd.f32 %v1585_v5, %v1578_v9  ;;  %v1826_v53 = vadd.f32 %v1820_v26, %v1814_v12  ;;  %v1832_v1 = vmul.f32 %v4925_v58, %v6058_v0  ;;  %v6066_v12 = vld [vmem:[#allocation72_spill] sm:$0xff] }
 0x1fb   :  { %v1592_v46 = vadd.f32 %v1586_v23, %v1579_v31  ;;  %v1827_v44 = vadd.f32 %v1821_v14, %v1815_v32  ;;  %v1828_v51 = vadd.f32 %v1822_v21, %v1816_v33  ;;  %v1833_v34 = vmul.f32 %v4932_v38, %v6058_v0  ;;  %v6067_v32 = vld [vmem:[#allocation68_spill] sm:$0xff] }
 0x1fc   :  { %v1597_v41 = vmul.f32 %v6059_v62, %v1570_v27  ;;  %v1598_v43 = vmul.f32 %v6059_v62, %v1571_v63  ;;  %v1834_v19 = vmul.f32 %v4940_v4, %v6058_v0  ;;  %v1838_v42 = vadd.f32 %v1832_v1, %v1826_v53  ;;  %v6065_v27 = vld [vmem:[#allocation102_spill] sm:$0xff]  ;;  %v6070_v1 = vld [vmem:[#allocation117_spill] sm:$0xff] }
 0x1fd   :  { %v1599_v7 = vmul.f32 %v6059_v62, %v1572_v24  ;;  %v1839_v9 = vadd.f32 %v1833_v34, %v1827_v44  ;;  %v1844_v8 = vmul.f32 %v4945_v56, %v6060_v16  ;;  %v1845_v6 = vmul.f32 %v4953_v22, %v6060_v16  ;;  %v6069_v0 = vld [vmem:[#allocation90_spill] sm:$0xff] }
 0x1fe   :  { %v1840_v31 = vadd.f32 %v1834_v19, %v1828_v51  ;;  %v1846_v37 = vmul.f32 %v4960_v59, %v6060_v16  ;;  %v1311_v55 = vadd.f32 %v1305_v2, %v1013_v40  ;;  %v5242_v47 = vadd.f32 %v1306_v48, %v1014_v50  ;;  %v6063_v50 = vld [vmem:[#allocation89_spill] sm:$0xff]  ;;  %v6064_v2 = vld [vmem:[#allocation116_spill] sm:$0xff]  ;;  %v6071_v51 = vld [vmem:[#allocation103_spill] sm:$0xff] }
 0x1ff   :  { %v1850_v61 = vadd.f32 %v1844_v8, %v1838_v42  ;;  %v1851_v39 = vadd.f32 %v1845_v6, %v1839_v9  ;;  %v5244_v3 = vadd.f32 %v1307_v10, %v1015_v45  ;;  %v1603_v5 = vadd.f32 %v1597_v41, %v1590_v52  ;;  %v6072_v41 = vld [vmem:[#allocation76_spill] sm:$0xff]  ;;  %v6073_v19 = vld [vmem:[#allocation70_spill] sm:$0xff] }
 0x200   :  { %v1604_v11 = vadd.f32 %v1598_v43, %v1591_v36  ;;  %v1852_v28 = vadd.f32 %v1846_v37, %v1840_v31  ;;  %v5246_v54 = vadd.f32 %v1599_v7, %v1592_v46  ;;  %v2100_v26 = vmul.f32 %v4869_v18, %v6062_v17  ;;  %v6068_v36 = vld [vmem:[#allocation69_spill] sm:$0xff]  ;;  %v2227_v37 = vpop.permute.xlu0 %2226 }
 0x201   :  { %v1856_v23 = vadd.f32 %v1850_v61, %v6061_v29  ;;  %v1857_v30 = vadd.f32 %v1851_v39, %v6061_v29  ;;  %v1875_v48 = vmul.f32 %v6064_v2, %v6063_v50  ;;  %v1876_v45 = vmul.f32 %v6064_v2, %v6065_v27 }
 0x202   :  { %v1858_v40 = vadd.f32 %v1852_v28, %v6061_v29  ;;  %v2101_v10 = vmul.f32 %v4876_v49, %v6062_v17  ;;  %v1877_v14 = vmul.f32 %v6064_v2, %v6066_v12  ;;  %v2102_v24 = vmul.f32 %v4889_v60, %v6062_v17  ;;  %v6074_v28 = vld [vmem:[#allocation71_spill] sm:$0xff] }
 0x203   :  { %v1862_v63 = vmul.f32 0.1, %v1856_v23  ;;  %v2106_v18 = vmul.f32 %v4896_v57, %v6067_v32  ;;  %v1863_v33 = vmul.f32 0.1, %v1857_v30  ;;  %v2107_v21 = vmul.f32 %v4903_v13, %v6067_v32 }
 0x204   :  { %v2108_v52 = vmul.f32 %v4916_v25, %v6067_v32  ;;  %v2118_v49 = vmul.f32 %v4863_v20, %v6068_v36  ;;  %v1864_v53 = vmul.f32 0.1, %v1858_v40  ;;  %v1882_v46 = vmul.f32 %v6070_v1, %v6069_v0  ;;  %v6082_v32 = vld [vmem:[#allocation105_spill] sm:$0xff] }
 0x205   :  { %v2112_v44 = vadd.f32 %v2106_v18, %v2100_v26  ;;  %v2119_v60 = vmul.f32 %v4883_v15, %v6068_v36  ;;  %v1883_v57 = vmul.f32 %v6070_v1, %v6071_v51  ;;  %v2113_v34 = vadd.f32 %v2107_v21, %v2101_v10  ;;  %v6078_v10 = vld [vmem:[#allocation104_spill] sm:$0xff] }
 0x206   :  { %v2114_v62 = vadd.f32 %v2108_v52, %v2102_v24  ;;  %v2120_v13 = vmul.f32 %v4910_v35, %v6068_v36  ;;  %v1868_v25 = vmax.f32 %v1856_v23, %v1862_v63  ;;  %v1884_v20 = vmul.f32 %v6070_v1, %v6072_v41  ;;  %v6083_v52 = vld [vmem:[#allocation77_spill] sm:$0xff] }
 0x207   :  { %v2124_v43 = vadd.f32 %v2118_v49, %v2112_v44  ;;  %v2130_v42 = vmul.f32 %v4925_v58, %v6073_v19  ;;  %v1869_v7 = vmax.f32 %v1857_v30, %v1863_v33  ;;  %v2125_v9 = vadd.f32 %v2119_v60, %v2113_v34  ;;  %v6084_v49 = vld [vmem:[#allocation78_spill] sm:$0xff] }
 0x208   :  { %v2126_v16 = vadd.f32 %v2120_v13, %v2114_v62  ;;  %v2131_v15 = vmul.f32 %v4932_v38, %v6073_v19  ;;  %v1609_v8 = vadd.f32 %v1603_v5, %v1311_v55  ;;  %v1870_v6 = vmax.f32 %v1858_v40, %v1864_v53  ;;  %v6075_v55 = vld [vmem:[#allocation121_spill] sm:$0xff]  ;;  %v2229_v41 = vpop.permute.xlu0 %2228 }
 0x209   :  { %v2132_v31 = vmul.f32 %v4940_v4, %v6073_v19  ;;  %v2136_v35 = vadd.f32 %v2130_v42, %v2124_v43  ;;  %v1888_v61 = vadd.f32 %v1882_v46, %v1875_v48  ;;  %v2142_v29 = vmul.f32 %v4945_v56, %v6074_v28  ;;  %v6076_v48 = vld [vmem:[#allocation91_spill] sm:$0xff]  ;;  %v6077_v56 = vld [vmem:[#allocation106_spill] sm:$0xff] }
 0x20a   :  { %v2137_v39 = vadd.f32 %v2131_v15, %v2125_v9  ;;  %v2143_v58 = vmul.f32 %v4953_v22, %v6074_v28  ;;  %v1889_v23 = vadd.f32 %v1883_v57, %v1876_v45  ;;  %v1890_v30 = vadd.f32 %v1884_v20, %v1877_v14  ;;  %v6079_v45 = vld [vmem:[#allocation73_spill] sm:$0xff]  ;;  %v6085_v19 = vld [vmem:[#allocation30_spill] sm:$0xff] }
 0x20b   :  { %v2138_v17 = vadd.f32 %v2132_v31, %v2126_v16  ;;  %v2144_v38 = vmul.f32 %v4960_v59, %v6074_v28  ;;  %v1895_v5 = vmul.f32 %v6075_v55, %v1868_v25  ;;  %v1896_v4 = vmul.f32 %v6075_v55, %v1869_v7  ;;  %v6080_v59 = vld [vmem:[#allocation92_spill] sm:$0xff]  ;;  %v6081_v14 = vld [vmem:[#allocation25_spill] sm:$0xff] }
 0x20c   :  { %v2148_v26 = vadd.f32 %v2142_v29, %v2136_v35  ;;  %v2149_v40 = vadd.f32 %v2143_v58, %v2137_v39  ;;  %v1897_v50 = vmul.f32 %v6075_v55, %v1870_v6  ;;  %v2173_v27 = vmul.f32 %v6077_v56, %v6076_v48  ;;  %v6086_v31 = vld [vmem:[#allocation29_spill] sm:$0xff] }
 0x20d   :  { %v2150_v2 = vadd.f32 %v2144_v38, %v2138_v17  ;;  %v2174_v22 = vmul.f32 %v6077_v56, %v6078_v10  ;;  %v2180_v24 = vmul.f32 %v6081_v14, %v6080_v59  ;;  %v2181_v18 = vmul.f32 %v6081_v14, %v6082_v32 }
 0x20e   :  { %v2154_v63 = vadd.f32 %v2148_v26, %v6079_v45  ;;  %v2155_v12 = vadd.f32 %v2149_v40, %v6079_v45  ;;  %v1610_v33 = vadd.f32 %v1604_v11, %v5242_v47  ;;  %v2175_v36 = vmul.f32 %v6077_v56, %v6083_v52 }
 0x20f   :  { %v2156_v21 = vadd.f32 %v2150_v2, %v6079_v45  ;;  %v2182_v53 = vmul.f32 %v6081_v14, %v6084_v49  ;;  %v1901_v0 = vadd.f32 %v1895_v5, %v1888_v61  ;;  %v1902_v1 = vadd.f32 %v1896_v4, %v1889_v23  ;;  %v6087_v23 = vld [vmem:[#allocation108_spill] sm:$0xff] }
 0x210   :  { %v2160_v46 = vmul.f32 0.1, %v2154_v63  ;;  %v2161_v44 = vmul.f32 0.1, %v2155_v12  ;;  %v1611_v60 = vadd.f32 %v5246_v54, %v5244_v3  ;;  %v1903_v51 = vadd.f32 %v1897_v50, %v1890_v30  ;;  %v6088_v50 = vld [vmem:[#allocation107_spill] sm:$0xff] }
 0x211   :  { %v2162_v57 = vmul.f32 0.1, %v2156_v21  ;;  %v2186_v47 = vadd.f32 %v2180_v24, %v2173_v27  ;;  %v2187_v11 = vadd.f32 %v2181_v18, %v2174_v22  ;;  %v2188_v25 = vadd.f32 %v2182_v53, %v2175_v36 }
 0x212   :  { %v2166_v34 = vmax.f32 %v2154_v63, %v2160_v46  ;;  %v2167_v62 = vmax.f32 %v2155_v12, %v2161_v44  ;;  %v1907_v20 = vadd.f32 %v1901_v0, %v1609_v8  ;;  %v1908_v43 = vadd.f32 %v1902_v1, %v1610_v33 }
 0x213   :  { %v2168_v13 = vmax.f32 %v2156_v21, %v2162_v57  ;;  %v1909_v9 = vadd.f32 %v1903_v51, %v1611_v60  ;;  %v2235_v6 = vsel %vm2232_vm0, %v2227_v37, %v2229_v41  ;;  %v2236_v35 = vsel %vm2232_vm0, %v2229_v41, %v6086_v31 }
 0x214   :  { %v2193_v42 = vmul.f32 %v6085_v19, %v2166_v34  ;;  %v2194_v7 = vmul.f32 %v6085_v19, %v2167_v62  ;;  %v6089_v2 = vperm.slane %v6088_v50, 0  ;;  %v6090_v56 = vperm.slane %v6088_v50, 1 }
 0x215   :  { %v2195_v16 = vmul.f32 %v6085_v19, %v2168_v13  ;;  %v6091_v10 = vperm.slane %v6088_v50, 2  ;;  %v2299_v32 = vstv %s5345_s6 }
 0x216   :  { %v2199_v15 = vadd.f32 %v2193_v42, %v2186_v47  ;;  %v2200_v3 = vadd.f32 %v2194_v7, %v2187_v11 }
 0x217   :  { %v2201_v54 = vadd.f32 %v2195_v16, %v2188_v25 }
 0x218   :  { %v2205_v61 = vadd.f32 %v2199_v15, %v1907_v20  ;;  %v2206_v39 = vadd.f32 %v2200_v3, %v1908_v43 }
 0x219   :  { %v2207_v28 = vadd.f32 %v2201_v54, %v1909_v9 }
 0x21a   :  { %v2246_v8 = vadd.f32 %v2235_v6, %v2205_v61  ;;  %v2247_v29 = vadd.f32 %v2236_v35, %v2206_v39 }
 0x21b   :  { %v2248_v58 = vadd.f32 %v6086_v31, %v2207_v28 }
 0x21c   :  { %v2254_v30 = vadd.f32 %v6087_v23, %v2246_v8  ;;  %v2255_v17 = vadd.f32 %v6087_v23, %v2247_v29 }
 0x21d   :  { %v2256_v38 = vadd.f32 %v6087_v23, %v2248_v58 }
 0x21e   :  { %v2260_v55 = vmul.f32 0.1, %v2254_v30  ;;  %v2261_v5 = vmul.f32 0.1, %v2255_v17 }
 0x21f   :  { %v2262_v4 = vmul.f32 0.1, %v2256_v38 }
 0x220   :  { %v2266_v37 = vmax.f32 %v2254_v30, %v2260_v55  ;;  %v2267_v26 = vmax.f32 %v2255_v17, %v2261_v5 }
 0x221   :  { %v2268_v40 = vmax.f32 %v2256_v38, %v2262_v4 }
 0x222   :  { %v2280_v48 = vmul.f32 %v6089_v2, %v2266_v37  ;;  %v2281_v27 = vmul.f32 %v6090_v56, %v2267_v26 }
 0x223   :  { %v2282_v22 = vmul.f32 %v6091_v10, %v2268_v40 }
 0x224   :  { %v2290_v45 = vsel %vm2289_vm2, %v2280_v48, 0.0  ;;  %v2291_v63 = vsel %vm2289_vm2, %v2281_v27, 0.0 }
 0x225   :  { %v2292_v12 = vadd.f32 %v2291_v63, %v2290_v45  ;;  %v2294_v59 = vsel %vm2293_vm3, %v2282_v22, 0.0 }
 0x227   :  { %v2295_v14 = vadd.f32 %v2294_v59, %v2292_v12 }
 0x229   :  { %2296 = vadd.xlane.f32.xlu1 %v2295_v14 }
 0x23a   :  { %v2288_v24 = vpop.xlane.xlu0 %2287 }
 0x23b   :  { %v2300_v18 = vadd.f32 %v2299_v32, %v2288_v24 }
 0x23d   :  { %2303 = vst.msk [vmem:[%s5346_s7] sm:$0xff] %vm2302_vm4, %v2300_v18 }
 0x29c   :  { %v2297_v33 = vpop.xlane.xlu1 %2296 }
 0x29d   :  { %v2301_v21 = vadd.f32 %v2299_v32, %v2297_v33 }
 0x29f   :  { %2305 = vst.msk [vmem:[%s5346_s7 + $0x8] sm:$0x3] %vm2304_vm5, %v2301_v21 }
 0x2a0   :  { %2310 = vsyncpa [#allocation5], 1 }
 0x2a1   :  { %2311 = vsyncpa [#allocation7], 1 }

</bundles_post_ra>
